<compile_context>
chip_gen: v5e
topology: v5e:2x2
jax: 0.10.0
libtpu: 0.0.40
codegen_flags: <defaults>
</compile_context>

<pallas_src>
import numpy as np
import jax
import jax.numpy as jnp
from jax import lax
from jax.experimental import pallas as pl
from jax.experimental.pallas import tpu as pltpu


# Interior of the padded scratch starts at this (sublane-aligned) column; the
# single zero halo column sits at PADL - 1 on the left and PADL + W on the right.
PADL = 8


def _leaky_relu(x, slope=0.2):
    return jnp.where(x >= 0, x, slope * x)


def _fill_im2col(pad_ref, cols_ref, h, c, H, W):
    """Write h (H, W, c) into the zero-bordered pad scratch, then scatter the 9
    shifted 3x3 taps into cols_ref[:, :9*c] as a lane-concatenated im2col LHS."""
    # Sublane-aligned interior store (column PADL, width W), lanes [:c].
    pad_ref[1:H + 1, PADL:PADL + W, :c] = h
    k = 0
    for dy in range(3):
        for dx in range(3):
            c0 = PADL - 1 + dx
            patch = pad_ref[dy:dy + H, c0:c0 + W, :c]            # (H, W, c)
            cols_ref[:, k * c:(k + 1) * c] = patch.reshape(H * W, c)
            k += 1


def downconv_kernel(x_ref, tb1_ref, b2_ref, w1_ref, w2_ref, wsk_ref,
                    out_ref, pad_ref, cols_ref):
    _, H, W, cin = x_ref.shape
    cout = w1_ref.shape[-1]          # true output channels
    Hp, Wp, cm = pad_ref.shape
    cdt = pad_ref.dtype
    HW = H * W
    inv_sqrt2 = jnp.float32(1.0 / np.sqrt(2.0))

    # Zero only the 1-element halo border.  The interior is fully overwritten by
    # the im2col fills; this runs every step because under "parallel" semantics
    # each TensorCore has its own scratch (program_id==0 gating would be unsafe).
    zrow = jnp.zeros((1, Wp, cm), cdt)
    zcol = jnp.zeros((Hp, 1, cm), cdt)
    pad_ref[0:1, :, :] = zrow                       # top halo row
    pad_ref[H + 1:H + 2, :, :] = zrow               # bottom halo row
    pad_ref[:, PADL - 1:PADL, :] = zcol             # left halo column
    pad_ref[:, PADL + W:PADL + W + 1, :] = zcol     # right halo column

    x = x_ref[0]                                    # (H, W, cin), compute dtype
    xf = x.reshape(HW, cin)                         # flat view for the skip matmul

    # --- conv1: act(x) -> im2col -> single (HW, 9*cin) @ (9*cin, cout) matmul.
    # Activation in f32 (v5e-friendly), cast once at the scratch-store boundary.
    h1 = _leaky_relu(xf.astype(jnp.float32)).astype(cdt)
    _fill_im2col(pad_ref, cols_ref, h1.reshape(H, W, cin), cin, H, W)
    out1 = jnp.dot(cols_ref[:, :9 * cin], w1_ref[...],
                   preferred_element_type=jnp.float32)           # (HW, cout) f32
    out1 = out1 + tb1_ref[0]                        # + (conv1 bias + dense_t1(t_emb))

    # --- act -> conv2: im2col -> single (HW, 9*cout) @ (9*cout, coutp) matmul.
    # w2 was zero-padded on its output axis to a lane-aligned width coutp.
    h2 = _leaky_relu(out1).astype(cdt)
    _fill_im2col(pad_ref, cols_ref, h2.reshape(H, W, cout), cout, H, W)
    out2 = jnp.dot(cols_ref[:, :9 * cout], w2_ref[...],
                   preferred_element_type=jnp.float32)           # (HW, coutp) f32

    # --- skip: 1x1 conv (no bias) on the raw input, same lane-padded width.
    skip = jnp.dot(xf, wsk_ref[...], preferred_element_type=jnp.float32)

    # Lane-dense channel-first store: transpose the tile-aligned (HW, coutp) sum
    # on the XLU, keep the real cout rows, add conv2 bias and scale by 1/sqrt(2).
    y_t = jnp.transpose(out2 + skip)                # (coutp, HW), full 128-lane tiles
    y = (y_t[:cout, :] + b2_ref[...]) * inv_sqrt2   # (cout, HW) f32
    out_ref[...] = y.reshape(1, cout, HW).astype(out_ref.dtype)


def down_conv_block(x_nchw, t_emb, params, *, compute_dtype=jnp.bfloat16):
    """Forward pass of DownConvBlock (downsample=False). Input/output are NCHW."""
    B, Cin, H, W = x_nchw.shape
    Cout = params["b1"].shape[-1]
    Cm = max(Cin, Cout)
    Coutp = ((Cout + 127) // 128) * 128             # lane-aligned width for conv2/skip
    Hp, Wp = H + 2, PADL + W + 1
    HW = H * W

    # NCHW -> NHWC (channels on the lane axis) for the kernel input.
    x_nhwc = jnp.transpose(x_nchw, (0, 2, 3, 1)).astype(compute_dtype)

    # Hoisted out of the kernel: tiny time-embedding dense with conv1's bias folded in.
    tb1 = (t_emb.astype(jnp.float32) @ params["wd"].astype(jnp.float32)
           + params["bd"] + params["b1"]).reshape(B, 1, Cout).astype(jnp.float32)
    # conv2 bias as a column: it is added after the in-kernel channel transpose.
    b2_col = params["b2"].reshape(Cout, 1).astype(jnp.float32)

    # im2col weight layouts; zero-pad the OUTPUT channels of conv2/skip to Coutp
    # so the final in-kernel transpose is tile-aligned (zero columns -> exact).
    w1f = params["w1"].reshape(9 * Cin, Cout).astype(compute_dtype)
    w2f = params["w2"].reshape(9 * Cout, Cout).astype(compute_dtype)
    w2fp = jnp.zeros((9 * Cout, Coutp), compute_dtype).at[:, :Cout].set(w2f)
    wskp = jnp.zeros((Cin, Coutp), compute_dtype).at[:, :Cout].set(
        params["wskip"].astype(compute_dtype))

    itemsize = jnp.dtype(compute_dtype).itemsize
    flops = 2 * B * HW * (9 * Cin * Cout + 9 * Cout * Coutp + Cin * Coutp)
    bytes_accessed = int(x_nhwc.size * itemsize + B * Cout * HW * 4
                         + (w1f.size + w2fp.size + wskp.size) * itemsize
                         + (tb1.size + b2_col.size) * 4)

    # VMEM budget: double-buffered x/out blocks + (double-buffered) weights +
    # the two shared scratches + live f32 temporaries, capped under v7x's 64 MiB.
    x_blk = HW * Cin * itemsize
    o_blk = Cout * HW * 4
    w_bytes = (w1f.size + w2fp.size + wskp.size) * itemsize
    scratch_bytes = (Hp * Wp * Cm + HW * 9 * Cm) * itemsize
    f32_tmps = HW * Cout * 4 + 4 * HW * Coutp * 4   # out1 + {out2, skip, sum, transpose}
    vmem_limit = 2 * (x_blk + o_blk) + 2 * w_bytes + scratch_bytes + f32_tmps + (1 << 20)
    vmem_limit = int(min(max(vmem_limit, 4 << 20), 40 << 20))

    out_cf = pl.pallas_call(
        downconv_kernel,
        out_shape=jax.ShapeDtypeStruct((B, Cout, HW), jnp.float32),
        grid_spec=pltpu.PrefetchScalarGridSpec(
            num_scalar_prefetch=0,
            grid=(B,),
            in_specs=[
                pl.BlockSpec((1, H, W, Cin), lambda b: (b, 0, 0, 0)),   # x (NHWC)
                pl.BlockSpec((1, 1, Cout), lambda b: (b, 0, 0)),        # b1 + dense_t1(t)
                pl.BlockSpec((Cout, 1), lambda b: (0, 0)),              # conv2 bias (col)
                pl.BlockSpec((9 * Cin, Cout), lambda b: (0, 0)),        # w1 im2col
                pl.BlockSpec((9 * Cout, Coutp), lambda b: (0, 0)),      # w2 im2col (padded)
                pl.BlockSpec((Cin, Coutp), lambda b: (0, 0)),           # skip 1x1 (padded)
            ],
            out_specs=pl.BlockSpec((1, Cout, HW), lambda b: (b, 0, 0)),  # lane-dense NC(HW)
            scratch_shapes=[
                pltpu.VMEM((Hp, Wp, Cm), compute_dtype),    # zero-bordered pad scratch
                pltpu.VMEM((HW, 9 * Cm), compute_dtype),    # im2col columns scratch
            ],
        ),
        compiler_params=pltpu.CompilerParams(
            dimension_semantics=("parallel",),   # batch axis -> 2 TCs on v7x
            vmem_limit_bytes=vmem_limit,
        ),
        cost_estimate=pl.CostEstimate(flops=flops, transcendentals=0,
                                      bytes_accessed=bytes_accessed),
    )(x_nhwc, tb1, b2_col, w1f, w2fp, wskp)

    # (B, Cout, H*W) -> (B, Cout, H, W): pure reshape, no HBM transpose.
    return out_cf.reshape(B, Cout, H, W)


def ref_forward(x_nchw, t_emb, params):
    """Pure-JAX reference (mirrors the PyTorch forward, downsample=False)."""
    act = lambda v: jnp.where(v >= 0, v, 0.2 * v)
    dn = ("NCHW", "HWIO", "NCHW")
    out = act(x_nchw)
    out = lax.conv_general_dilated(out, params["w1"], (1, 1), "SAME",
                                   dimension_numbers=dn)
    out = out + params["b1"].reshape(1, -1, 1, 1)
    out = out + (t_emb @ params["wd"] + params["bd"][0])[:, :, None, None]
    out = act(out)
    out = lax.conv_general_dilated(out, params["w2"], (1, 1), "SAME",
                                   dimension_numbers=dn)
    out = out + params["b2"].reshape(1, -1, 1, 1)
    skip = lax.conv_general_dilated(
        x_nchw, params["wskip"].reshape(1, 1, *params["wskip"].shape),
        (1, 1), "VALID", dimension_numbers=dn)
    return (out + skip) / np.sqrt(2.0)


def init_params(key, in_channel, out_channel, t_emb_dim):
    ks = jax.random.split(key, 7)
    s = 0.1
    return {
        # conv2d(in_channel, out_channel, 3, padding=1)           -> HWIO
        "w1": s * jax.random.normal(ks[0], (3, 3, in_channel, out_channel), jnp.float32),
        "b1": s * jax.random.normal(ks[1], (1, out_channel), jnp.float32),
        # dense(t_emb_dim, out_channel)
        "wd": s * jax.random.normal(ks[2], (t_emb_dim, out_channel), jnp.float32),
        "bd": s * jax.random.normal(ks[3], (1, out_channel), jnp.float32),
        # conv2d(out_channel, out_channel, 3, padding=1, init_scale=0.0)
        # (initialized nonzero here so the kernel path is actually exercised)
        "w2": s * jax.random.normal(ks[4], (3, 3, out_channel, out_channel), jnp.float32),
        "b2": s * jax.random.normal(ks[5], (1, out_channel), jnp.float32),
        # skip: conv2d(in_channel, out_channel, 1, padding=0, bias=False)
        "wskip": s * jax.random.normal(ks[6], (in_channel, out_channel), jnp.float32),
    }


if __name__ == "__main__":
    key = jax.random.PRNGKey(0)
    k_x, k_t, k_p = jax.random.split(key, 3)

    B, Cin, Cout, H, W, T = 2, 4, 8, 16, 16, 32
    x = jax.random.normal(k_x, (B, Cin, H, W), jnp.float32)       # NCHW, like PyTorch
    t_emb = jax.random.normal(k_t, (B, T), jnp.float32)
    params = init_params(k_p, Cin, Cout, T)

    ref = jax.block_until_ready(ref_forward(x, t_emb, params))

    # Exactness check of the algorithm with f32 MXU operands.
    out_f32 = jax.block_until_ready(
        down_conv_block(x, t_emb, params, compute_dtype=jnp.float32))
    np.testing.assert_allclose(np.asarray(out_f32), np.asarray(ref),
                               rtol=5e-5, atol=5e-5)

    # Perf path (v5e/v6e/v7x): bf16 MXU operands, f32 accumulation.
    out_bf16 = jax.block_until_ready(
        down_conv_block(x, t_emb, params, compute_dtype=jnp.bfloat16))
    np.testing.assert_allclose(np.asarray(out_bf16), np.asarray(ref),
                               rtol=5e-2, atol=5e-2)

    print("KERNEL_OK")
</pallas_src>

<mosaic_0001>
module attributes {stable_mosaic.version = 11 : i64} {
  func.func @downconv_kernel(%arg0: i32, %arg1: memref<1x16x16x4xf32, #tpu.memory_space<vmem>>, %arg2: memref<1x1x8xf32, #tpu.memory_space<vmem>>, %arg3: memref<8x1xf32, #tpu.memory_space<vmem>>, %arg4: memref<36x8xf32, #tpu.memory_space<vmem>>, %arg5: memref<72x128xf32, #tpu.memory_space<vmem>>, %arg6: memref<4x128xf32, #tpu.memory_space<vmem>>, %arg7: memref<1x8x256xf32, #tpu.memory_space<vmem>>, %arg8: memref<18x25x8xf32, #tpu.memory_space<vmem>>, %arg9: memref<256x72xf32, #tpu.memory_space<vmem>>) attributes {dimension_semantics = [#tpu.dimension_semantics<parallel>], iteration_bounds = array<i64: 2>, scalar_prefetch = 0 : i64, scratch_operands = 2 : i64, tpu.core_type = #tpu.core_type<tc>, window_params = [{transform_indices = @transform_0, window_bounds = array<i64: 1, 16, 16, 4>}, {transform_indices = @transform_1, window_bounds = array<i64: 1, 1, 8>}, {pipeline_mode = #tpu.pipeline_mode<synchronous>, transform_indices = @transform_2, window_bounds = array<i64: 8, 1>}, {pipeline_mode = #tpu.pipeline_mode<synchronous>, transform_indices = @transform_3, window_bounds = array<i64: 36, 8>}, {pipeline_mode = #tpu.pipeline_mode<synchronous>, transform_indices = @transform_4, window_bounds = array<i64: 72, 128>}, {pipeline_mode = #tpu.pipeline_mode<synchronous>, transform_indices = @transform_5, window_bounds = array<i64: 4, 128>}, {transform_indices = @transform_6, window_bounds = array<i64: 1, 8, 256>}]} {
    %cst = arith.constant 0.000000e+00 : f32
    %0 = vector.broadcast %cst : f32 to vector<1x25x8xf32>
    %cst_0 = arith.constant 0.000000e+00 : f32
    %1 = vector.broadcast %cst_0 : f32 to vector<18x1x8xf32>
    %c0 = arith.constant 0 : index
    %c0_1 = arith.constant 0 : index
    %c0_2 = arith.constant 0 : index
    %2 = vector.load %arg8[%c0, %c0_1, %c0_2] : memref<18x25x8xf32, #tpu.memory_space<vmem>>, vector<1x25x8xf32>
    tpu.vector_store %arg8[%c0, %c0_1, %c0_2], %0 {strides = array<i32>} : memref<18x25x8xf32, #tpu.memory_space<vmem>>, vector<1x25x8xf32>,
    %c17 = arith.constant 17 : index
    %c0_3 = arith.constant 0 : index
    %c0_4 = arith.constant 0 : index
    %3 = vector.load %arg8[%c17, %c0_3, %c0_4] : memref<18x25x8xf32, #tpu.memory_space<vmem>>, vector<1x25x8xf32>
    tpu.vector_store %arg8[%c17, %c0_3, %c0_4], %0 {strides = array<i32>} : memref<18x25x8xf32, #tpu.memory_space<vmem>>, vector<1x25x8xf32>,
    %c0_5 = arith.constant 0 : index
    %c7 = arith.constant 7 : index
    %c0_6 = arith.constant 0 : index
    %4 = vector.load %arg8[%c0_5, %c7, %c0_6] : memref<18x25x8xf32, #tpu.memory_space<vmem>>, vector<18x1x8xf32>
    tpu.vector_store %arg8[%c0_5, %c7, %c0_6], %1 {strides = array<i32>} : memref<18x25x8xf32, #tpu.memory_space<vmem>>, vector<18x1x8xf32>,
    %c0_7 = arith.constant 0 : index
    %c24 = arith.constant 24 : index
    %c0_8 = arith.constant 0 : index
    %5 = vector.load %arg8[%c0_7, %c24, %c0_8] : memref<18x25x8xf32, #tpu.memory_space<vmem>>, vector<18x1x8xf32>
    tpu.vector_store %arg8[%c0_7, %c24, %c0_8], %1 {strides = array<i32>} : memref<18x25x8xf32, #tpu.memory_space<vmem>>, vector<18x1x8xf32>,
    %c0_9 = arith.constant 0 : index
    %c0_10 = arith.constant 0 : index
    %c0_11 = arith.constant 0 : index
    %c0_12 = arith.constant 0 : index
    %6 = vector.load %arg1[%c0_9, %c0_10, %c0_11, %c0_12] : memref<1x16x16x4xf32, #tpu.memory_space<vmem>>, vector<1x16x16x4xf32>
    %7 = vector.shape_cast %6 : vector<1x16x16x4xf32> to vector<16x16x4xf32>
    %8 = vector.shape_cast %7 : vector<16x16x4xf32> to vector<256x4xf32>
    %cst_13 = arith.constant 0.000000e+00 : f32
    %9 = vector.broadcast %cst_13 : f32 to vector<256x4xf32>
    %10 = arith.cmpf oge, %8, %9 : vector<256x4xf32>
    %cst_14 = arith.constant 2.000000e-01 : f32
    %11 = vector.broadcast %cst_14 : f32 to vector<256x4xf32>
    %12 = arith.mulf %11, %8 : vector<256x4xf32>
    %13 = arith.select %10, %8, %12 : vector<256x4xi1>, vector<256x4xf32>
    %14 = vector.shape_cast %13 : vector<256x4xf32> to vector<16x16x4xf32>
    %c1 = arith.constant 1 : index
    %c8 = arith.constant 8 : index
    %c0_15 = arith.constant 0 : index
    %15 = vector.load %arg8[%c1, %c8, %c0_15] : memref<18x25x8xf32, #tpu.memory_space<vmem>>, vector<16x16x4xf32>
    tpu.vector_store %arg8[%c1, %c8, %c0_15], %14 {strides = array<i32>} : memref<18x25x8xf32, #tpu.memory_space<vmem>>, vector<16x16x4xf32>,
    %c0_16 = arith.constant 0 : index
    %c7_17 = arith.constant 7 : index
    %c0_18 = arith.constant 0 : index
    %16 = vector.load %arg8[%c0_16, %c7_17, %c0_18] : memref<18x25x8xf32, #tpu.memory_space<vmem>>, vector<16x16x4xf32>
    %17 = vector.shape_cast %16 : vector<16x16x4xf32> to vector<256x4xf32>
    %c0_19 = arith.constant 0 : index
    %c0_20 = arith.constant 0 : index
    %18 = vector.load %arg9[%c0_19, %c0_20] : memref<256x72xf32, #tpu.memory_space<vmem>>, vector<256x4xf32>
    tpu.vector_store %arg9[%c0_19, %c0_20], %17 {strides = array<i32>} : memref<256x72xf32, #tpu.memory_space<vmem>>, vector<256x4xf32>,
    %c0_21 = arith.constant 0 : index
    %c8_22 = arith.constant 8 : index
    %c0_23 = arith.constant 0 : index
    %19 = vector.load %arg8[%c0_21, %c8_22, %c0_23] : memref<18x25x8xf32, #tpu.memory_space<vmem>>, vector<16x16x4xf32>
    %20 = vector.shape_cast %19 : vector<16x16x4xf32> to vector<256x4xf32>
    %c0_24 = arith.constant 0 : index
    %c4 = arith.constant 4 : index
    %21 = vector.load %arg9[%c0_24, %c4] : memref<256x72xf32, #tpu.memory_space<vmem>>, vector<256x4xf32>
    tpu.vector_store %arg9[%c0_24, %c4], %20 {strides = array<i32>} : memref<256x72xf32, #tpu.memory_space<vmem>>, vector<256x4xf32>,
    %c0_25 = arith.constant 0 : index
    %c9 = arith.constant 9 : index
    %c0_26 = arith.constant 0 : index
    %22 = vector.load %arg8[%c0_25, %c9, %c0_26] : memref<18x25x8xf32, #tpu.memory_space<vmem>>, vector<16x16x4xf32>
    %23 = vector.shape_cast %22 : vector<16x16x4xf32> to vector<256x4xf32>
    %c0_27 = arith.constant 0 : index
    %c8_28 = arith.constant 8 : index
    %24 = vector.load %arg9[%c0_27, %c8_28] : memref<256x72xf32, #tpu.memory_space<vmem>>, vector<256x4xf32>
    tpu.vector_store %arg9[%c0_27, %c8_28], %23 {strides = array<i32>} : memref<256x72xf32, #tpu.memory_space<vmem>>, vector<256x4xf32>,
    %c1_29 = arith.constant 1 : index
    %c7_30 = arith.constant 7 : index
    %c0_31 = arith.constant 0 : index
    %25 = vector.load %arg8[%c1_29, %c7_30, %c0_31] : memref<18x25x8xf32, #tpu.memory_space<vmem>>, vector<16x16x4xf32>
    %26 = vector.shape_cast %25 : vector<16x16x4xf32> to vector<256x4xf32>
    %c0_32 = arith.constant 0 : index
    %c12 = arith.constant 12 : index
    %27 = vector.load %arg9[%c0_32, %c12] : memref<256x72xf32, #tpu.memory_space<vmem>>, vector<256x4xf32>
    tpu.vector_store %arg9[%c0_32, %c12], %26 {strides = array<i32>} : memref<256x72xf32, #tpu.memory_space<vmem>>, vector<256x4xf32>,
    %c1_33 = arith.constant 1 : index
    %c8_34 = arith.constant 8 : index
    %c0_35 = arith.constant 0 : index
    %28 = vector.load %arg8[%c1_33, %c8_34, %c0_35] : memref<18x25x8xf32, #tpu.memory_space<vmem>>, vector<16x16x4xf32>
    %29 = vector.shape_cast %28 : vector<16x16x4xf32> to vector<256x4xf32>
    %c0_36 = arith.constant 0 : index
    %c16 = arith.constant 16 : index
    %30 = vector.load %arg9[%c0_36, %c16] : memref<256x72xf32, #tpu.memory_space<vmem>>, vector<256x4xf32>
    tpu.vector_store %arg9[%c0_36, %c16], %29 {strides = array<i32>} : memref<256x72xf32, #tpu.memory_space<vmem>>, vector<256x4xf32>,
    %c1_37 = arith.constant 1 : index
    %c9_38 = arith.constant 9 : index
    %c0_39 = arith.constant 0 : index
    %31 = vector.load %arg8[%c1_37, %c9_38, %c0_39] : memref<18x25x8xf32, #tpu.memory_space<vmem>>, vector<16x16x4xf32>
    %32 = vector.shape_cast %31 : vector<16x16x4xf32> to vector<256x4xf32>
    %c0_40 = arith.constant 0 : index
    %c20 = arith.constant 20 : index
    %33 = vector.load %arg9[%c0_40, %c20] : memref<256x72xf32, #tpu.memory_space<vmem>>, vector<256x4xf32>
    tpu.vector_store %arg9[%c0_40, %c20], %32 {strides = array<i32>} : memref<256x72xf32, #tpu.memory_space<vmem>>, vector<256x4xf32>,
    %c2 = arith.constant 2 : index
    %c7_41 = arith.constant 7 : index
    %c0_42 = arith.constant 0 : index
    %34 = vector.load %arg8[%c2, %c7_41, %c0_42] : memref<18x25x8xf32, #tpu.memory_space<vmem>>, vector<16x16x4xf32>
    %35 = vector.shape_cast %34 : vector<16x16x4xf32> to vector<256x4xf32>
    %c0_43 = arith.constant 0 : index
    %c24_44 = arith.constant 24 : index
    %36 = vector.load %arg9[%c0_43, %c24_44] : memref<256x72xf32, #tpu.memory_space<vmem>>, vector<256x4xf32>
    tpu.vector_store %arg9[%c0_43, %c24_44], %35 {strides = array<i32>} : memref<256x72xf32, #tpu.memory_space<vmem>>, vector<256x4xf32>,
    %c2_45 = arith.constant 2 : index
    %c8_46 = arith.constant 8 : index
    %c0_47 = arith.constant 0 : index
    %37 = vector.load %arg8[%c2_45, %c8_46, %c0_47] : memref<18x25x8xf32, #tpu.memory_space<vmem>>, vector<16x16x4xf32>
    %38 = vector.shape_cast %37 : vector<16x16x4xf32> to vector<256x4xf32>
    %c0_48 = arith.constant 0 : index
    %c28 = arith.constant 28 : index
    %39 = vector.load %arg9[%c0_48, %c28] : memref<256x72xf32, #tpu.memory_space<vmem>>, vector<256x4xf32>
    tpu.vector_store %arg9[%c0_48, %c28], %38 {strides = array<i32>} : memref<256x72xf32, #tpu.memory_space<vmem>>, vector<256x4xf32>,
    %c2_49 = arith.constant 2 : index
    %c9_50 = arith.constant 9 : index
    %c0_51 = arith.constant 0 : index
    %40 = vector.load %arg8[%c2_49, %c9_50, %c0_51] : memref<18x25x8xf32, #tpu.memory_space<vmem>>, vector<16x16x4xf32>
    %41 = vector.shape_cast %40 : vector<16x16x4xf32> to vector<256x4xf32>
    %c0_52 = arith.constant 0 : index
    %c32 = arith.constant 32 : index
    %42 = vector.load %arg9[%c0_52, %c32] : memref<256x72xf32, #tpu.memory_space<vmem>>, vector<256x4xf32>
    tpu.vector_store %arg9[%c0_52, %c32], %41 {strides = array<i32>} : memref<256x72xf32, #tpu.memory_space<vmem>>, vector<256x4xf32>,
    %c0_53 = arith.constant 0 : index
    %c0_54 = arith.constant 0 : index
    %43 = vector.load %arg9[%c0_53, %c0_54] : memref<256x72xf32, #tpu.memory_space<vmem>>, vector<256x36xf32>
    %c0_55 = arith.constant 0 : index
    %c0_56 = arith.constant 0 : index
    %44 = vector.load %arg4[%c0_55, %c0_56] : memref<36x8xf32, #tpu.memory_space<vmem>>, vector<36x8xf32>
    %cst_57 = arith.constant dense<0.000000e+00> : vector<256x8xf32>
    %45 = tpu.matmul %43, %44, %cst_57 {dimension_numbers = #tpu.dot_dimension_numbers<[1], [0], [0], [1], [0, 0, 1, 1], [], []>} : vector<256x36xf32>, vector<36x8xf32>, vector<256x8xf32> -> vector<256x8xf32>
    %c0_58 = arith.constant 0 : index
    %c0_59 = arith.constant 0 : index
    %c0_60 = arith.constant 0 : index
    %46 = vector.load %arg2[%c0_58, %c0_59, %c0_60] : memref<1x1x8xf32, #tpu.memory_space<vmem>>, vector<1x1x8xf32>
    %47 = vector.shape_cast %46 : vector<1x1x8xf32> to vector<1x8xf32>
    %48 = vector.broadcast %47 : vector<1x8xf32> to vector<256x8xf32>
    %49 = arith.addf %45, %48 : vector<256x8xf32>
    %cst_61 = arith.constant 0.000000e+00 : f32
    %50 = vector.broadcast %cst_61 : f32 to vector<256x8xf32>
    %51 = arith.cmpf oge, %49, %50 : vector<256x8xf32>
    %cst_62 = arith.constant 2.000000e-01 : f32
    %52 = vector.broadcast %cst_62 : f32 to vector<256x8xf32>
    %53 = arith.mulf %52, %49 : vector<256x8xf32>
    %54 = arith.select %51, %49, %53 : vector<256x8xi1>, vector<256x8xf32>
    %55 = vector.shape_cast %54 : vector<256x8xf32> to vector<16x16x8xf32>
    %c1_63 = arith.constant 1 : index
    %c8_64 = arith.constant 8 : index
    %c0_65 = arith.constant 0 : index
    %56 = vector.load %arg8[%c1_63, %c8_64, %c0_65] : memref<18x25x8xf32, #tpu.memory_space<vmem>>, vector<16x16x8xf32>
    tpu.vector_store %arg8[%c1_63, %c8_64, %c0_65], %55 {strides = array<i32>} : memref<18x25x8xf32, #tpu.memory_space<vmem>>, vector<16x16x8xf32>,
    %c0_66 = arith.constant 0 : index
    %c7_67 = arith.constant 7 : index
    %c0_68 = arith.constant 0 : index
    %57 = vector.load %arg8[%c0_66, %c7_67, %c0_68] : memref<18x25x8xf32, #tpu.memory_space<vmem>>, vector<16x16x8xf32>
    %58 = vector.shape_cast %57 : vector<16x16x8xf32> to vector<256x8xf32>
    %c0_69 = arith.constant 0 : index
    %c0_70 = arith.constant 0 : index
    %59 = vector.load %arg9[%c0_69, %c0_70] : memref<256x72xf32, #tpu.memory_space<vmem>>, vector<256x8xf32>
    tpu.vector_store %arg9[%c0_69, %c0_70], %58 {strides = array<i32>} : memref<256x72xf32, #tpu.memory_space<vmem>>, vector<256x8xf32>,
    %c0_71 = arith.constant 0 : index
    %c8_72 = arith.constant 8 : index
    %c0_73 = arith.constant 0 : index
    %60 = vector.load %arg8[%c0_71, %c8_72, %c0_73] : memref<18x25x8xf32, #tpu.memory_space<vmem>>, vector<16x16x8xf32>
    %61 = vector.shape_cast %60 : vector<16x16x8xf32> to vector<256x8xf32>
    %c0_74 = arith.constant 0 : index
    %c8_75 = arith.constant 8 : index
    %62 = vector.load %arg9[%c0_74, %c8_75] : memref<256x72xf32, #tpu.memory_space<vmem>>, vector<256x8xf32>
    tpu.vector_store %arg9[%c0_74, %c8_75], %61 {strides = array<i32>} : memref<256x72xf32, #tpu.memory_space<vmem>>, vector<256x8xf32>,
    %c0_76 = arith.constant 0 : index
    %c9_77 = arith.constant 9 : index
    %c0_78 = arith.constant 0 : index
    %63 = vector.load %arg8[%c0_76, %c9_77, %c0_78] : memref<18x25x8xf32, #tpu.memory_space<vmem>>, vector<16x16x8xf32>
    %64 = vector.shape_cast %63 : vector<16x16x8xf32> to vector<256x8xf32>
    %c0_79 = arith.constant 0 : index
    %c16_80 = arith.constant 16 : index
    %65 = vector.load %arg9[%c0_79, %c16_80] : memref<256x72xf32, #tpu.memory_space<vmem>>, vector<256x8xf32>
    tpu.vector_store %arg9[%c0_79, %c16_80], %64 {strides = array<i32>} : memref<256x72xf32, #tpu.memory_space<vmem>>, vector<256x8xf32>,
    %c1_81 = arith.constant 1 : index
    %c7_82 = arith.constant 7 : index
    %c0_83 = arith.constant 0 : index
    %66 = vector.load %arg8[%c1_81, %c7_82, %c0_83] : memref<18x25x8xf32, #tpu.memory_space<vmem>>, vector<16x16x8xf32>
    %67 = vector.shape_cast %66 : vector<16x16x8xf32> to vector<256x8xf32>
    %c0_84 = arith.constant 0 : index
    %c24_85 = arith.constant 24 : index
    %68 = vector.load %arg9[%c0_84, %c24_85] : memref<256x72xf32, #tpu.memory_space<vmem>>, vector<256x8xf32>
    tpu.vector_store %arg9[%c0_84, %c24_85], %67 {strides = array<i32>} : memref<256x72xf32, #tpu.memory_space<vmem>>, vector<256x8xf32>,
    %c1_86 = arith.constant 1 : index
    %c8_87 = arith.constant 8 : index
    %c0_88 = arith.constant 0 : index
    %69 = vector.load %arg8[%c1_86, %c8_87, %c0_88] : memref<18x25x8xf32, #tpu.memory_space<vmem>>, vector<16x16x8xf32>
    %70 = vector.shape_cast %69 : vector<16x16x8xf32> to vector<256x8xf32>
    %c0_89 = arith.constant 0 : index
    %c32_90 = arith.constant 32 : index
    %71 = vector.load %arg9[%c0_89, %c32_90] : memref<256x72xf32, #tpu.memory_space<vmem>>, vector<256x8xf32>
    tpu.vector_store %arg9[%c0_89, %c32_90], %70 {strides = array<i32>} : memref<256x72xf32, #tpu.memory_space<vmem>>, vector<256x8xf32>,
    %c1_91 = arith.constant 1 : index
    %c9_92 = arith.constant 9 : index
    %c0_93 = arith.constant 0 : index
    %72 = vector.load %arg8[%c1_91, %c9_92, %c0_93] : memref<18x25x8xf32, #tpu.memory_space<vmem>>, vector<16x16x8xf32>
    %73 = vector.shape_cast %72 : vector<16x16x8xf32> to vector<256x8xf32>
    %c0_94 = arith.constant 0 : index
    %c40 = arith.constant 40 : index
    %74 = vector.load %arg9[%c0_94, %c40] : memref<256x72xf32, #tpu.memory_space<vmem>>, vector<256x8xf32>
    tpu.vector_store %arg9[%c0_94, %c40], %73 {strides = array<i32>} : memref<256x72xf32, #tpu.memory_space<vmem>>, vector<256x8xf32>,
    %c2_95 = arith.constant 2 : index
    %c7_96 = arith.constant 7 : index
    %c0_97 = arith.constant 0 : index
    %75 = vector.load %arg8[%c2_95, %c7_96, %c0_97] : memref<18x25x8xf32, #tpu.memory_space<vmem>>, vector<16x16x8xf32>
    %76 = vector.shape_cast %75 : vector<16x16x8xf32> to vector<256x8xf32>
    %c0_98 = arith.constant 0 : index
    %c48 = arith.constant 48 : index
    %77 = vector.load %arg9[%c0_98, %c48] : memref<256x72xf32, #tpu.memory_space<vmem>>, vector<256x8xf32>
    tpu.vector_store %arg9[%c0_98, %c48], %76 {strides = array<i32>} : memref<256x72xf32, #tpu.memory_space<vmem>>, vector<256x8xf32>,
    %c2_99 = arith.constant 2 : index
    %c8_100 = arith.constant 8 : index
    %c0_101 = arith.constant 0 : index
    %78 = vector.load %arg8[%c2_99, %c8_100, %c0_101] : memref<18x25x8xf32, #tpu.memory_space<vmem>>, vector<16x16x8xf32>
    %79 = vector.shape_cast %78 : vector<16x16x8xf32> to vector<256x8xf32>
    %c0_102 = arith.constant 0 : index
    %c56 = arith.constant 56 : index
    %80 = vector.load %arg9[%c0_102, %c56] : memref<256x72xf32, #tpu.memory_space<vmem>>, vector<256x8xf32>
    tpu.vector_store %arg9[%c0_102, %c56], %79 {strides = array<i32>} : memref<256x72xf32, #tpu.memory_space<vmem>>, vector<256x8xf32>,
    %c2_103 = arith.constant 2 : index
    %c9_104 = arith.constant 9 : index
    %c0_105 = arith.constant 0 : index
    %81 = vector.load %arg8[%c2_103, %c9_104, %c0_105] : memref<18x25x8xf32, #tpu.memory_space<vmem>>, vector<16x16x8xf32>
    %82 = vector.shape_cast %81 : vector<16x16x8xf32> to vector<256x8xf32>
    %c0_106 = arith.constant 0 : index
    %c64 = arith.constant 64 : index
    %83 = vector.load %arg9[%c0_106, %c64] : memref<256x72xf32, #tpu.memory_space<vmem>>, vector<256x8xf32>
    tpu.vector_store %arg9[%c0_106, %c64], %82 {strides = array<i32>} : memref<256x72xf32, #tpu.memory_space<vmem>>, vector<256x8xf32>,
    %c0_107 = arith.constant 0 : index
    %c0_108 = arith.constant 0 : index
    %84 = vector.load %arg9[%c0_107, %c0_108] : memref<256x72xf32, #tpu.memory_space<vmem>>, vector<256x72xf32>
    %c0_109 = arith.constant 0 : index
    %c0_110 = arith.constant 0 : index
    %85 = vector.load %arg5[%c0_109, %c0_110] : memref<72x128xf32, #tpu.memory_space<vmem>>, vector<72x128xf32>
    %cst_111 = arith.constant dense<0.000000e+00> : vector<256x128xf32>
    %86 = tpu.matmul %84, %85, %cst_111 {dimension_numbers = #tpu.dot_dimension_numbers<[1], [0], [0], [1], [0, 0, 1, 1], [], []>} : vector<256x72xf32>, vector<72x128xf32>, vector<256x128xf32> -> vector<256x128xf32>
    %c0_112 = arith.constant 0 : index
    %c0_113 = arith.constant 0 : index
    %87 = vector.load %arg6[%c0_112, %c0_113] : memref<4x128xf32, #tpu.memory_space<vmem>>, vector<4x128xf32>
    %cst_114 = arith.constant dense<0.000000e+00> : vector<256x128xf32>
    %88 = tpu.matmul %8, %87, %cst_114 {dimension_numbers = #tpu.dot_dimension_numbers<[1], [0], [0], [1], [0, 0, 1, 1], [], []>} : vector<256x4xf32>, vector<4x128xf32>, vector<256x128xf32> -> vector<256x128xf32>
    %89 = arith.addf %86, %88 : vector<256x128xf32>
    %90 = tpu.transpose %89, [1, 0] : vector<256x128xf32> -> vector<128x256xf32>
    %91 = vector.extract_strided_slice %90 {offsets = [0, 0], sizes = [8, 256], strides = [1, 1]} : vector<128x256xf32> to vector<8x256xf32>
    %c0_115 = arith.constant 0 : index
    %c0_116 = arith.constant 0 : index
    %92 = vector.load %arg3[%c0_115, %c0_116] : memref<8x1xf32, #tpu.memory_space<vmem>>, vector<8x1xf32>
    %93 = vector.broadcast %92 : vector<8x1xf32> to vector<8x256xf32>
    %94 = arith.addf %91, %93 : vector<8x256xf32>
    %cst_117 = arith.constant 0.707106769 : f32
    %95 = vector.broadcast %cst_117 : f32 to vector<8x256xf32>
    %96 = arith.mulf %94, %95 : vector<8x256xf32>
    %97 = vector.shape_cast %96 : vector<8x256xf32> to vector<1x8x256xf32>
    %c0_118 = arith.constant 0 : index
    %c0_119 = arith.constant 0 : index
    %c0_120 = arith.constant 0 : index
    %98 = vector.load %arg7[%c0_118, %c0_119, %c0_120] : memref<1x8x256xf32, #tpu.memory_space<vmem>>, vector<1x8x256xf32>
    tpu.vector_store %arg7[%c0_118, %c0_119, %c0_120], %97 {strides = array<i32>} : memref<1x8x256xf32, #tpu.memory_space<vmem>>, vector<1x8x256xf32>,
    return
  }
  func.func @transform_0(%arg0: i32) -> (i32, i32, i32, i32) {
    %c0_i32 = arith.constant 0 : i32
    %c0_i32_0 = arith.constant 0 : i32
    %c0_i32_1 = arith.constant 0 : i32
    %c0_i32_2 = arith.constant 0 : i32
    return %arg0, %c0_i32, %c0_i32_0, %c0_i32_1 : i32, i32, i32, i32
  }
  func.func @transform_1(%arg0: i32) -> (i32, i32, i32) {
    %c0_i32 = arith.constant 0 : i32
    %c0_i32_0 = arith.constant 0 : i32
    %c0_i32_1 = arith.constant 0 : i32
    return %arg0, %c0_i32, %c0_i32_0 : i32, i32, i32
  }
  func.func @transform_2(%arg0: i32) -> (i32, i32) {
    %c0_i32 = arith.constant 0 : i32
    %c0_i32_0 = arith.constant 0 : i32
    %c0_i32_1 = arith.constant 0 : i32
    return %c0_i32, %c0_i32_0 : i32, i32
  }
  func.func @transform_3(%arg0: i32) -> (i32, i32) {
    %c0_i32 = arith.constant 0 : i32
    %c0_i32_0 = arith.constant 0 : i32
    %c0_i32_1 = arith.constant 0 : i32
    return %c0_i32, %c0_i32_0 : i32, i32
  }
  func.func @transform_4(%arg0: i32) -> (i32, i32) {
    %c0_i32 = arith.constant 0 : i32
    %c0_i32_0 = arith.constant 0 : i32
    %c0_i32_1 = arith.constant 0 : i32
    return %c0_i32, %c0_i32_0 : i32, i32
  }
  func.func @transform_5(%arg0: i32) -> (i32, i32) {
    %c0_i32 = arith.constant 0 : i32
    %c0_i32_0 = arith.constant 0 : i32
    %c0_i32_1 = arith.constant 0 : i32
    return %c0_i32, %c0_i32_0 : i32, i32
  }
  func.func @transform_6(%arg0: i32) -> (i32, i32, i32) {
    %c0_i32 = arith.constant 0 : i32
    %c0_i32_0 = arith.constant 0 : i32
    %c0_i32_1 = arith.constant 0 : i32
    return %arg0, %c0_i32, %c0_i32_0 : i32, i32, i32
  }
}

</mosaic_0001>

<bundles_post_ra>
// kernel: tpu_custom_call.1
= control target key start
LH: loop header
LB: loop body
LE: loop exit
PB: predicated region body
PF: predicated region fallthrough
CT: control target
= control target key end

     0   :  { %11 = vsyncpa [#allocation5], 0  ;;  %s7383_s0 = inlined_call_operand.vmem [shape: f32[2,16,16,4], index: 0, kind: input, shape index: {}]   ;;  %s7384_s1 = inlined_call_operand.vmem [shape: f32[2,1,8], index: 1, kind: input, shape index: {}]   ;;  %s7385_s2 = inlined_call_operand.vmem [shape: f32[8,1], index: 2, kind: input, shape index: {}]   ;;  %s7386_s3 = inlined_call_operand.vmem [shape: f32[36,8], index: 3, kind: input, shape index: {}]   ;;  %s7387_s4 = inlined_call_operand.vmem [shape: f32[72,128], index: 4, kind: input, shape index: {}]   ;;  %s7388_s5 = inlined_call_operand.vmem [shape: f32[4,128], index: 5, kind: input, shape index: {}]   ;;  %s7389_s6 = inlined_call_operand.hbm [shape: f32[2,8,256], index: 6, kind: output, shape index: {}]  }
   0x1   :  { %13 = vsyncpa [#allocation5 + $0x1], 0  ;;  %s5026_s21 = smov 0   ;;  %s5028_s22 = smov 0  }
   0x2   :  { %s5030_s23 = smov 0   ;;  %s5032_s24 = smov 0  }
   0x3 LB: > { %s5047_s25 = sadd.s32 4294967295, %s4975_s24   ;;  %s4698_s26 = sadd.s32 4294967294, %s4975_s24   ;;  %s4975_s24 = sphi %s5032_s24, %s7491_s24   ;;  %s4971_s23 = sphi %s5030_s23, %s7490_s23   ;;  %s4967_s22 = sphi %s5028_s22, %s7489_s22   ;;  %s4963_s21 = sphi %s5026_s21, %s7488_s21  }
   0x4   : > { %s5051_s27 = sadd.s32 1, %s4975_s24   ;;  %s162_s28 = sadd.s32 1, %s4971_s23 }
   0x5   : > { %s159_s29 = ssub.s32 %s4975_s24, %s5051_s27  ;;  %p172_p0 = scmp.ne.s32.totalorder %s4971_s23, %s4967_s22 }
   0x6   : > { %p160_p1 = scmp.eq.s32.totalorder %s159_s29, 0  ;;  %p173_p2 = scmp.eq.s32.totalorder %s5047_s25, 1 }
   0x7   : > { %p178_p3 = scmp.ne.s32.totalorder %s4967_s22, %s4963_s21  ;;  %p179_p4 = scmp.eq.s32.totalorder %s4698_s26, 1 }
   0x8   : > { %s5062_s30 = scalar_select %p160_p1, %s4971_s23, %s162_s28  }
   0x9   : > { %p5064_p5 = por %p173_p2, %p172_p0  ;;  %p5068_p6 = por %p179_p4, %p178_p3 }
   0xa   : > { %p4701_p7 = scmp.ge.s32.totalorder %s4975_s24, 1  ;;  %p223_p8 = scmp.lt.s32.totalorder %s4975_s24, 3 }
   0xc   : > { %p224_p9 = pnand %p4701_p7, %p223_p8 }
   0xe   : > { %227 = sbr.rel (%p224_p9) target bundleno = 2077 (0x81d), region = 44 }
  0x13   : > { %vm264_vm0 = vcmask 64512   ;;  %p256_p10 = scmp.lt.s32.totalorder %s5047_s25, 1  ;;  %v4977_v0 = vmov 0.0   ;;  %vm440_vm1 = vcmask 31744   ;;  %s4978_s17 = smov 4  }
  0x14   : > { %266 = vst.msk [vmem:[#allocation2 + $0x8] sm:$0xff] %vm264_vm0, %v4977_v0  ;;  %s4979_s18 = smov 8   ;;  %s4980_s19 = smov 12  }
  0x15   : > { %265 = vst.msk [vmem:[#allocation2] sm:$0xff] %vm264_vm0, %v4977_v0  ;;  %s5080_s9 = scalar_select %p256_p10, %s5047_s25, 1 }
  0x16   : > { %267 = vst.msk [vmem:[#allocation2 + $0x10] sm:$0xff] %vm264_vm0, %v4977_v0  ;;  %s4981_s20 = smov 16   ;;  %s4982_s26 = smov 20  }
  0x17   : > { %271 = vst.msk [vmem:[#allocation2 + $0x220] sm:$0xff] %vm264_vm0, %v4977_v0  ;;  %s4808_s10 = sshll.u32 %s5080_s9, 8  ;;  %s263_s13 = scalar_lea.vmem %s7384_s1, %s5080_s9 }
  0x18   : > { %272 = vst.msk [vmem:[#allocation2 + $0x228] sm:$0xff] %vm264_vm0, %v4977_v0  ;;  %s5096_s16 = scalar_lea.vmem %s7383_s0, %s4808_s10  ;;  %s4983_s28 = smov 24  }
  0x19   : > { %273 = vst.msk [vmem:[#allocation2 + $0x230] sm:$0xff] %vm264_vm0, %v4977_v0  ;;  %v311_v1 = vld [vmem:[%s5096_s16] sm:$0xff]  ;;  %v312_v3 = vld [vmem:[%s5096_s16 + $0x8] sm:$0xff]  ;;  %v313_v8 = vld [vmem:[%s5096_s16 + $0x10] sm:$0xff]  ;;  %s4984_s29 = smov 28   ;;  %s4985_s10 = smov 32  }
  0x1a   : > { %v315_v2 = vld [vmem:[%s5096_s16 + $0x20] sm:$0xff]  ;;  %vm343_vm2 = vcmp.ge.f32.partialorder %v311_v1, 0.0  ;;  %v375_v4 = vmul.f32 0.2, %v311_v1  ;;  %vm344_vm4 = vcmp.ge.f32.partialorder %v312_v3, 0.0  ;;  %v318_v9 = vld [vmem:[%s5096_s16 + $0x38] sm:$0xff] }
  0x1b   : > { %vm347_vm3 = vcmp.ge.f32.partialorder %v315_v2, 0.0  ;;  %v379_v5 = vmul.f32 0.2, %v315_v2  ;;  %v537_v6 = vld [vmem:[#allocation2 + $0x8] sm:$0xff]  ;;  %v376_v7 = vmul.f32 0.2, %v312_v3 }
  0x1c   : > { %601 = vrot.lane.b32.xlu0 %v537_v6, %s4978_s17  ;;  %v407_v10 = vsel %vm343_vm2, %v311_v1, %v375_v4  ;;  %vm345_vm5 = vcmp.ge.f32.partialorder %v313_v8, 0.0  ;;  %v377_v12 = vmul.f32 0.2, %v313_v8  ;;  %v316_v13 = vld [vmem:[%s5096_s16 + $0x28] sm:$0xff]  ;;  %v314_v14 = vld [vmem:[%s5096_s16 + $0x18] sm:$0xff]  ;;  %v321_v15 = vld [vmem:[%s5096_s16 + $0x50] sm:$0xff] }
  0x1d   : > { %v411_v11 = vsel %vm347_vm3, %v315_v2, %v379_v5  ;;  %441 = vst.msk [vmem:[#allocation2 + $0x28] sm:$0xff] %vm440_vm1, %v407_v10  ;;  %v408_v16 = vsel %vm344_vm4, %v312_v3, %v376_v7  ;;  %vm350_vm6 = vcmp.ge.f32.partialorder %v318_v9, 0.0  ;;  %v382_v17 = vmul.f32 0.2, %v318_v9  ;;  %v538_v21 = vld [vmem:[#allocation2 + $0x10] sm:$0xff]  ;;  %v319_v24 = vld [vmem:[%s5096_s16 + $0x40] sm:$0xff] }
  0x1e   : > { %vm348_vm7 = vcmp.ge.f32.partialorder %v316_v13, 0.0  ;;  %445 = vst.msk [vmem:[#allocation2 + $0x68] sm:$0xff] %vm440_vm1, %v411_v11  ;;  %v409_v18 = vsel %vm345_vm5, %v313_v8, %v377_v12  ;;  %v380_v19 = vmul.f32 0.2, %v316_v13  ;;  %vm346_vm8 = vcmp.ge.f32.partialorder %v314_v14, 0.0  ;;  %v317_v25 = vld [vmem:[%s5096_s16 + $0x30] sm:$0xff] }
  0x1f   : > { %v378_v20 = vmul.f32 0.2, %v314_v14  ;;  %442 = vst.msk [vmem:[#allocation2 + $0x30] sm:$0xff] %vm440_vm1, %v408_v16  ;;  %v414_v22 = vsel %vm350_vm6, %v318_v9, %v382_v17  ;;  %vm353_vm9 = vcmp.ge.f32.partialorder %v321_v15, 0.0  ;;  %v385_v23 = vmul.f32 0.2, %v321_v15 }
  0x20   : > { %443 = vst.msk [vmem:[#allocation2 + $0x48] sm:$0xff] %vm440_vm1, %v409_v18  ;;  %v412_v26 = vsel %vm348_vm7, %v316_v13, %v380_v19  ;;  %vm351_vm10 = vcmp.ge.f32.partialorder %v319_v24, 0.0  ;;  %v383_v28 = vmul.f32 0.2, %v319_v24  ;;  %v324_v29 = vld [vmem:[%s5096_s16 + $0x68] sm:$0xff]  ;;  %v322_v30 = vld [vmem:[%s5096_s16 + $0x58] sm:$0xff] }
  0x21   : > { %v410_v27 = vsel %vm346_vm8, %v314_v14, %v378_v20  ;;  %448 = vst.msk [vmem:[#allocation2 + $0x90] sm:$0xff] %vm440_vm1, %v414_v22  ;;  %v417_v31 = vsel %vm353_vm9, %v321_v15, %v385_v23  ;;  %vm349_vm11 = vcmp.ge.f32.partialorder %v317_v25, 0.0  ;;  %v381_v32 = vmul.f32 0.2, %v317_v25  ;;  %v320_v33 = vld [vmem:[%s5096_s16 + $0x48] sm:$0xff]  ;;  %v327_v39 = vld [vmem:[%s5096_s16 + $0x80] sm:$0xff] }
  0x22   : > { %vm356_vm12 = vcmp.ge.f32.partialorder %v324_v29, 0.0  ;;  %446 = vst.msk [vmem:[#allocation2 + $0x70] sm:$0xff] %vm440_vm1, %v412_v26  ;;  %v415_v34 = vsel %vm351_vm10, %v319_v24, %v383_v28  ;;  %v388_v35 = vmul.f32 0.2, %v324_v29  ;;  %vm354_vm13 = vcmp.ge.f32.partialorder %v322_v30, 0.0  ;;  %v325_v40 = vld [vmem:[%s5096_s16 + $0x70] sm:$0xff] }
  0x23   : > { %v386_v36 = vmul.f32 0.2, %v322_v30  ;;  %444 = vst.msk [vmem:[#allocation2 + $0x50] sm:$0xff] %vm440_vm1, %v410_v27  ;;  %v413_v37 = vsel %vm349_vm11, %v317_v25, %v381_v32  ;;  %vm352_vm14 = vcmp.ge.f32.partialorder %v320_v33, 0.0  ;;  %v384_v38 = vmul.f32 0.2, %v320_v33 }
  0x24   : > { %603 = vrot.lane.b32.xlu0 %v538_v21, %s4978_s17  ;;  %v539_v41 = vld [vmem:[#allocation2 + $0x28] sm:$0xff]  ;;  %451 = vst.msk [vmem:[#allocation2 + $0xc8] sm:$0xff] %vm440_vm1, %v417_v31  ;;  %v420_v42 = vsel %vm356_vm12, %v324_v29, %v388_v35  ;;  %vm359_vm15 = vcmp.ge.f32.partialorder %v327_v39, 0.0  ;;  %v391_v43 = vmul.f32 0.2, %v327_v39  ;;  %vm357_vm2 = vcmp.ge.f32.partialorder %v325_v40, 0.0 }
  0x25   : > { %605 = vrot.lane.b32.xlu1 %v539_v41, %s4978_s17  ;;  %449 = vst.msk [vmem:[#allocation2 + $0xa8] sm:$0xff] %vm440_vm1, %v415_v34  ;;  %v418_v44 = vsel %vm354_vm13, %v322_v30, %v386_v36  ;;  %v389_v45 = vmul.f32 0.2, %v325_v40  ;;  %v416_v46 = vsel %vm352_vm14, %v320_v33, %v384_v38  ;;  %v323_v49 = vld [vmem:[%s5096_s16 + $0x60] sm:$0xff]  ;;  %v330_v52 = vld [vmem:[%s5096_s16 + $0x98] sm:$0xff]  ;;  %v543_v53 = vld [vmem:[#allocation2 + $0x68] sm:$0xff] }
  0x26   : > { %447 = vst.msk [vmem:[#allocation2 + $0x88] sm:$0xff] %vm440_vm1, %v413_v37  ;;  %v423_v48 = vsel %vm359_vm15, %v327_v39, %v391_v43  ;;  %v387_v51 = vmul.f32 0.2, %v323_v49  ;;  %vm355_vm3 = vcmp.ge.f32.partialorder %v323_v49, 0.0  ;;  %v394_v54 = vmul.f32 0.2, %v330_v52 }
  0x27   : > { %v541_v47 = vld [vmem:[#allocation2 + $0x48] sm:$0xff]  ;;  %454 = vst.msk [vmem:[#allocation2 + $0xf0] sm:$0xff] %vm440_vm1, %v420_v42  ;;  %v421_v50 = vsel %vm357_vm2, %v325_v40, %v389_v45  ;;  %v540_v56 = vld [vmem:[#allocation2 + $0x30] sm:$0xff]  ;;  %vm362_vm4 = vcmp.ge.f32.partialorder %v330_v52, 0.0  ;;  %v326_v62 = vld [vmem:[%s5096_s16 + $0x78] sm:$0xff]  ;;  %vm268_vm2 = vcmask 57344  }
  0x28   : > { %609 = vrot.lane.b32.xlu2 %v541_v47, %s4978_s17  ;;  %452 = vst.msk [vmem:[#allocation2 + $0xd0] sm:$0xff] %vm440_vm1, %v418_v44  ;;  %v328_v55 = vld [vmem:[%s5096_s16 + $0x88] sm:$0xff]  ;;  %v419_v57 = vsel %vm355_vm3, %v323_v49, %v387_v51  ;;  %v426_v59 = vsel %vm362_vm4, %v330_v52, %v394_v54  ;;  %v390_v63 = vmul.f32 0.2, %v326_v62  ;;  %v333_v1 = vld [vmem:[%s5096_s16 + $0xb0] sm:$0xff]  ;;  %vm358_vm6 = vcmp.ge.f32.partialorder %v326_v62, 0.0 }
  0x29   : > { %450 = vst.msk [vmem:[#allocation2 + $0xb0] sm:$0xff] %vm440_vm1, %v416_v46  ;;  %v392_v58 = vmul.f32 0.2, %v328_v55  ;;  %vm360_vm5 = vcmp.ge.f32.partialorder %v328_v55, 0.0  ;;  %v546_v2 = vld [vmem:[#allocation2 + $0x90] sm:$0xff]  ;;  %v331_v4 = vld [vmem:[%s5096_s16 + $0xa0] sm:$0xff] }
  0x2a   : > { %457 = vst.msk [vmem:[#allocation2 + $0x128] sm:$0xff] %vm440_vm1, %v423_v48  ;;  %v542_v61 = vld [vmem:[#allocation2 + $0x50] sm:$0xff]  ;;  %v397_v3 = vmul.f32 0.2, %v333_v1  ;;  %v422_v6 = vsel %vm358_vm6, %v326_v62, %v390_v63  ;;  %vm365_vm7 = vcmp.ge.f32.partialorder %v333_v1, 0.0  ;;  %vm363_vm8 = vcmp.ge.f32.partialorder %v331_v4, 0.0 }
  0x2b   : > { %455 = vst.msk [vmem:[#allocation2 + $0x108] sm:$0xff] %vm440_vm1, %v421_v50  ;;  %v424_v60 = vsel %vm360_vm5, %v328_v55, %v392_v58  ;;  %v544_v5 = vld [vmem:[#allocation2 + $0x70] sm:$0xff]  ;;  %v395_v7 = vmul.f32 0.2, %v331_v4  ;;  %v336_v13 = vld [vmem:[%s5096_s16 + $0xc8] sm:$0xff]  ;;  %v334_v16 = vld [vmem:[%s5096_s16 + $0xb8] sm:$0xff] }
  0x2c   : > { %613 = vrot.lane.b32.xlu0 %v543_v53, %s4978_s17  ;;  %453 = vst.msk [vmem:[#allocation2 + $0xe8] sm:$0xff] %vm440_vm1, %v419_v57  ;;  %v429_v8 = vsel %vm365_vm7, %v333_v1, %v397_v3  ;;  %v329_v11 = vld [vmem:[%s5096_s16 + $0x90] sm:$0xff]  ;;  %v549_v14 = vld [vmem:[#allocation2 + $0xc8] sm:$0xff]  ;;  %v400_v15 = vmul.f32 0.2, %v336_v13  ;;  %vm368_vm10 = vcmp.ge.f32.partialorder %v336_v13, 0.0 }
  0x2d   : > { %607 = vrot.lane.b32.xlu1 %v540_v56, %s4978_s17  ;;  %460 = vst.msk [vmem:[#allocation2 + $0x150] sm:$0xff] %vm440_vm1, %v426_v59  ;;  %v427_v9 = vsel %vm363_vm8, %v331_v4, %v395_v7  ;;  %v5153_v10 = vld [vmem:[#allocation2 + $0x88] sm:$0xff]  ;;  %v393_v12 = vmul.f32 0.2, %v329_v11  ;;  %vm361_vm9 = vcmp.ge.f32.partialorder %v329_v11, 0.0  ;;  %vm366_vm11 = vcmp.ge.f32.partialorder %v334_v16, 0.0 }
  0x2e   : > { %458 = vst.msk [vmem:[#allocation2 + $0x130] sm:$0xff] %vm440_vm1, %v424_v60  ;;  %v547_v17 = vld [vmem:[#allocation2 + $0xa8] sm:$0xff]  ;;  %v398_v19 = vmul.f32 0.2, %v334_v16  ;;  %v432_v20 = vsel %vm368_vm10, %v336_v13, %v400_v15  ;;  %v339_v25 = vld [vmem:[%s5096_s16 + $0xe0] sm:$0xff]  ;;  %v552_v26 = vld [vmem:[#allocation2 + $0xf0] sm:$0xff] }
  0x2f   : > { %456 = vst.msk [vmem:[#allocation2 + $0x110] sm:$0xff] %vm440_vm1, %v422_v6  ;;  %v425_v18 = vsel %vm361_vm9, %v329_v11, %v393_v12  ;;  %v332_v23 = vld [vmem:[%s5096_s16 + $0xa8] sm:$0xff]  ;;  %v403_v27 = vmul.f32 0.2, %v339_v25  ;;  %v337_v28 = vld [vmem:[%s5096_s16 + $0xd0] sm:$0xff]  ;;  %vm371_vm13 = vcmp.ge.f32.partialorder %v339_v25, 0.0 }
  0x30   : > { %611 = vrot.lane.b32.xlu2 %v542_v61, %s4978_s17  ;;  %463 = vst.msk [vmem:[#allocation2 + $0x188] sm:$0xff] %vm440_vm1, %v429_v8  ;;  %v430_v21 = vsel %vm366_vm11, %v334_v16, %v398_v19  ;;  %v5165_v22 = vld [vmem:[#allocation2 + $0xb0] sm:$0xff]  ;;  %v396_v24 = vmul.f32 0.2, %v332_v23  ;;  %vm364_vm12 = vcmp.ge.f32.partialorder %v332_v23, 0.0  ;;  %vm369_vm14 = vcmp.ge.f32.partialorder %v337_v28, 0.0 }
  0x31   : > { %461 = vst.msk [vmem:[#allocation2 + $0x168] sm:$0xff] %vm440_vm1, %v427_v9  ;;  %v550_v29 = vld [vmem:[#allocation2 + $0xd0] sm:$0xff]  ;;  %v401_v31 = vmul.f32 0.2, %v337_v28  ;;  %v435_v32 = vsel %vm371_vm13, %v339_v25, %v403_v27  ;;  %v335_v35 = vld [vmem:[%s5096_s16 + $0xc0] sm:$0xff]  ;;  %v555_v37 = vld [vmem:[#allocation2 + $0x128] sm:$0xff] }
  0x32   : > { %459 = vst.msk [vmem:[#allocation2 + $0x148] sm:$0xff] %vm440_vm1, %v425_v18  ;;  %v428_v30 = vsel %vm364_vm12, %v332_v23, %v396_v24  ;;  %v399_v36 = vmul.f32 0.2, %v335_v35  ;;  %vm367_vm15 = vcmp.ge.f32.partialorder %v335_v35, 0.0  ;;  %v553_v38 = vld [vmem:[#allocation2 + $0x108] sm:$0xff]  ;;  %v338_v52 = vld [vmem:[%s5096_s16 + $0xd8] sm:$0xff] }
  0x33   : > { %466 = vst.msk [vmem:[#allocation2 + $0x1b0] sm:$0xff] %vm440_vm1, %v432_v20  ;;  %v433_v33 = vsel %vm369_vm14, %v337_v28, %v401_v31  ;;  %v5177_v34 = vld [vmem:[#allocation2 + $0xe8] sm:$0xff]  ;;  %v402_v55 = vmul.f32 0.2, %v338_v52  ;;  %vm370_vm4 = vcmp.ge.f32.partialorder %v338_v52, 0.0  ;;  %vm697_vm5 = vcmask 64544  }
  0x34   : > { %619 = vrot.lane.b32.xlu0 %v546_v2, %s4978_s17  ;;  %464 = vst.msk [vmem:[#allocation2 + $0x190] sm:$0xff] %vm440_vm1, %v430_v21  ;;  %v431_v39 = vsel %vm367_vm15, %v335_v35, %v399_v36  ;;  %v558_v41 = vld [vmem:[#allocation2 + $0x150] sm:$0xff]  ;;  %v340_v50 = vld [vmem:[%s5096_s16 + $0xe8] sm:$0xff]  ;;  %vm890_vm6 = vcmask 97344   ;;  %vm1083_vm9 = vcmask 130144   ;;  %vm1276_vm10 = vcmask 162944  }
  0x35   : > { %615 = vrot.lane.b32.xlu1 %v544_v5, %s4978_s17  ;;  %462 = vst.msk [vmem:[#allocation2 + $0x170] sm:$0xff] %vm440_vm1, %v428_v30  ;;  %v556_v42 = vld [vmem:[#allocation2 + $0x130] sm:$0xff]  ;;  %v404_v54 = vmul.f32 0.2, %v340_v50  ;;  %vm372_vm3 = vcmp.ge.f32.partialorder %v340_v50, 0.0  ;;  %v434_v57 = vsel %vm370_vm4, %v338_v52, %v402_v55  ;;  %vm1469_vm11 = vcmask 195744  }
  0x36   : > { %469 = vst.msk [vmem:[#allocation2 + $0x1e8] sm:$0xff] %vm440_vm1, %v435_v32  ;;  %v5188_v40 = vld [vmem:[#allocation2 + $0x110] sm:$0xff]  ;;  %vm1663_vm12 = vcmask 228544   ;;  %vm1856_vm13 = vcmask 261344   ;;  %vm2220_vm14 = vcmask 1043456   ;;  %vm2049_vm15 = vcmask 294144  }
  0x37   : > { %467 = vst.msk [vmem:[#allocation2 + $0x1c8] sm:$0xff] %vm440_vm1, %v433_v33  ;;  %v561_v44 = vld [vmem:[#allocation2 + $0x188] sm:$0xff]  ;;  %v436_v56 = vsel %vm372_vm3, %v340_v50, %v404_v54  ;;  %s4986_s9 = smov 40   ;;  %s4809_s15 = sshll.u32 %s5047_s25, 4 }
  0x38   : > { %617 = vrot.lane.b32.xlu2 %v5153_v10, %s4978_s17  ;;  %465 = vst.msk [vmem:[#allocation2 + $0x1a8] sm:$0xff] %vm440_vm1, %v431_v39  ;;  %v559_v45 = vld [vmem:[#allocation2 + $0x168] sm:$0xff] }
  0x39   : > { %269 = vst.msk [vmem:[#allocation2 + $0x18] sm:$0x1] %vm268_vm2, %v4977_v0  ;;  %v5210_v43 = vld [vmem:[#allocation2 + $0x148] sm:$0xff] }
  0x3a   : > { %293 = vst.msk [vmem:[#allocation2 + $0x18] sm:$0x1] %vm268_vm2, %v4977_v0  ;;  %v5244_v47 = vld [vmem:[#allocation2 + $0x1b0] sm:$0xff] }
  0x3b   : > { %274 = vst.msk [vmem:[#allocation2 + $0x238] sm:$0x1] %vm268_vm2, %v4977_v0  ;;  %v5248_v48 = vld [vmem:[#allocation2 + $0x190] sm:$0xff] }
  0x3c   : > { %625 = vrot.lane.b32.xlu0 %v549_v14, %s4978_s17  ;;  %275 = vst.msk [vmem:[#allocation2 + $0x7] sm:$0x1] %vm268_vm2, %v4977_v0  ;;  %v5232_v46 = vld [vmem:[#allocation2 + $0x170] sm:$0xff] }
  0x3d   : > { %621 = vrot.lane.b32.xlu1 %v547_v17, %s4978_s17  ;;  %276 = vst.msk [vmem:[#allocation2 + $0x27] sm:$0x1] %vm268_vm2, %v4977_v0  ;;  %v5273_v51 = vld [vmem:[#allocation2 + $0x1e8] sm:$0xff] }
  0x3e   : > { %277 = vst.msk [vmem:[#allocation2 + $0x47] sm:$0x1] %vm268_vm2, %v4977_v0  ;;  %v5278_v53 = vld [vmem:[#allocation2 + $0x1c8] sm:$0xff] }
  0x3f   : > { %278 = vst.msk [vmem:[#allocation2 + $0x67] sm:$0x1] %vm268_vm2, %v4977_v0  ;;  %v5260_v49 = vld [vmem:[#allocation2 + $0x1a8] sm:$0xff] }
  0x40   : > { %623 = vrot.lane.b32.xlu2 %v5165_v22, %s4978_s17  ;;  %279 = vst.msk [vmem:[#allocation2 + $0x87] sm:$0x1] %vm268_vm2, %v4977_v0  ;;  %v5307_v61 = vld [vmem:[#allocation2 + $0x4f] sm:$0xff] }
  0x41   : > { %280 = vst.msk [vmem:[#allocation2 + $0xa7] sm:$0x1] %vm268_vm2, %v4977_v0  ;;  %v731_v58 = vld [vmem:[#allocation2 + $0x11] sm:$0xff]  ;;  %v5333_v4 = vld [vmem:[#allocation2 + $0x29] sm:$0xff] }
  0x42   : > { %281 = vst.msk [vmem:[#allocation2 + $0xc7] sm:$0x1] %vm268_vm2, %v4977_v0  ;;  %v474_v63 = vld [vmem:[#allocation2 + $0xf] sm:$0xff] }
  0x43   : > { %282 = vst.msk [vmem:[#allocation2 + $0xe7] sm:$0x1] %vm268_vm2, %v4977_v0  ;;  %v473_v60 = vld [vmem:[#allocation2 + $0x7] sm:$0xff]  ;;  %v5341_v8 = vld [vmem:[#allocation2 + $0x2f] sm:$0xff] }
  0x44   : > { %631 = vrot.lane.b32.xlu0 %v552_v26, %s4978_s17  ;;  %283 = vst.msk [vmem:[#allocation2 + $0x107] sm:$0x1] %vm268_vm2, %v4977_v0  ;;  %v5318_v1 = vld [vmem:[#allocation2 + $0x27] sm:$0xff]  ;;  %v5351_v11 = vld [vmem:[#allocation2 + $0xaf] sm:$0xff] }
  0x45   : > { %627 = vrot.lane.b32.xlu1 %v550_v29, %s4978_s17  ;;  %284 = vst.msk [vmem:[#allocation2 + $0x127] sm:$0x1] %vm268_vm2, %v4977_v0  ;;  %v5299_v59 = vld [vmem:[#allocation2 + $0x47] sm:$0xff]  ;;  %v5363_v15 = vld [vmem:[#allocation2 + $0x8f] sm:$0xff] }
  0x46   : > { %285 = vst.msk [vmem:[#allocation2 + $0x147] sm:$0x1] %vm268_vm2, %v4977_v0  ;;  %v730_v5 = vld [vmem:[#allocation2 + $0x9] sm:$0xff] }
  0x47   : > { %286 = vst.msk [vmem:[#allocation2 + $0x167] sm:$0x1] %vm268_vm2, %v4977_v0  ;;  %v5329_v3 = vld [vmem:[#allocation2 + $0x87] sm:$0xff]  ;;  %v5365_v16 = vld [vmem:[#allocation2 + $0x6f] sm:$0xff] }
  0x48   : > { %629 = vrot.lane.b32.xlu2 %v5177_v34, %s4978_s17  ;;  %287 = vst.msk [vmem:[#allocation2 + $0x187] sm:$0x1] %vm268_vm2, %v4977_v0  ;;  %v5339_v7 = vld [vmem:[#allocation2 + $0x67] sm:$0xff]  ;;  %v5402_v27 = vld [vmem:[#allocation2 + $0x10f] sm:$0xff] }
  0x49   : > { %288 = vst.msk [vmem:[#allocation2 + $0x1a7] sm:$0x1] %vm268_vm2, %v4977_v0  ;;  %v5361_v14 = vld [vmem:[#allocation2 + $0xa9] sm:$0xff] }
  0x4a   : > { %289 = vst.msk [vmem:[#allocation2 + $0x1c7] sm:$0x1] %vm268_vm2, %v4977_v0  ;;  %v5376_v18 = vld [vmem:[#allocation2 + $0xe7] sm:$0xff]  ;;  %v5416_v33 = vld [vmem:[#allocation2 + $0xef] sm:$0xff] }
  0x4b   : > { %290 = vst.msk [vmem:[#allocation2 + $0x1e7] sm:$0x1] %vm268_vm2, %v4977_v0  ;;  %v5380_v19 = vld [vmem:[#allocation2 + $0x89] sm:$0xff] }
  0x4c   : > { %637 = vrot.lane.b32.xlu0 %v555_v37, %s4978_s17  ;;  %291 = vst.msk [vmem:[#allocation2 + $0x207] sm:$0x1] %vm268_vm2, %v4977_v0  ;;  %v5383_v21 = vld [vmem:[#allocation2 + $0x69] sm:$0xff] }
  0x4d   : > { %633 = vrot.lane.b32.xlu1 %v553_v38, %s4978_s17  ;;  %292 = vst.msk [vmem:[#allocation2 + $0x227] sm:$0x1] %vm268_vm2, %v4977_v0  ;;  %v5389_v24 = vld [vmem:[#allocation2 + $0xc7] sm:$0xff]  ;;  %v5418_v35 = vld [vmem:[#allocation2 + $0xcf] sm:$0xff] }
  0x4e   : > { %294 = vst.msk [vmem:[#allocation2 + $0x38] sm:$0x1] %vm268_vm2, %v4977_v0  ;;  %v5391_v25 = vld [vmem:[#allocation2 + $0xa7] sm:$0xff]  ;;  %v5456_v54 = vld [vmem:[#allocation2 + $0x16f] sm:$0xff] }
  0x4f   : > { %295 = vst.msk [vmem:[#allocation2 + $0x58] sm:$0x1] %vm268_vm2, %v4977_v0  ;;  %v5414_v32 = vld [vmem:[#allocation2 + $0x109] sm:$0xff] }
  0x50   : > { %635 = vrot.lane.b32.xlu2 %v5188_v40, %s4978_s17  ;;  %296 = vst.msk [vmem:[#allocation2 + $0x78] sm:$0x1] %vm268_vm2, %v4977_v0  ;;  %v5429_v37 = vld [vmem:[#allocation2 + $0x147] sm:$0xff] }
  0x51   : > { %297 = vst.msk [vmem:[#allocation2 + $0x98] sm:$0x1] %vm268_vm2, %v4977_v0  ;;  %v5433_v38 = vld [vmem:[#allocation2 + $0xe9] sm:$0xff] }
  0x52   : > { %298 = vst.msk [vmem:[#allocation2 + $0xb8] sm:$0x1] %vm268_vm2, %v4977_v0  ;;  %v5445_v50 = vld [vmem:[#allocation2 + $0x107] sm:$0xff] }
  0x53   : > { %299 = vst.msk [vmem:[#allocation2 + $0xd8] sm:$0x1] %vm268_vm2, %v4977_v0 }
  0x54   : > { %643 = vrot.lane.b32.xlu0 %v558_v41, %s4978_s17  ;;  %300 = vst.msk [vmem:[#allocation2 + $0xf8] sm:$0x1] %vm268_vm2, %v4977_v0 }
  0x55   : > { %639 = vrot.lane.b32.xlu1 %v556_v42, %s4978_s17  ;;  %301 = vst.msk [vmem:[#allocation2 + $0x118] sm:$0x1] %vm268_vm2, %v4977_v0  ;;  %v5357_v13 = vld [vmem:[#allocation2 + $0x31] sm:$0xff]  ;;  %v5437_v42 = vld [vmem:[#allocation2 + $0xc9] sm:$0xff] }
  0x56   : > { %302 = vst.msk [vmem:[#allocation2 + $0x138] sm:$0x1] %vm268_vm2, %v4977_v0  ;;  %v5355_v12 = vld [vmem:[#allocation2 + $0x51] sm:$0xff] }
  0x57   : > { %303 = vst.msk [vmem:[#allocation2 + $0x158] sm:$0x1] %vm268_vm2, %v4977_v0  ;;  %v5337_v6 = vld [vmem:[#allocation2 + $0x71] sm:$0xff] }
  0x58   : > { %641 = vrot.lane.b32.xlu2 %v5210_v43, %s4978_s17  ;;  %304 = vst.msk [vmem:[#allocation2 + $0x178] sm:$0x1] %vm268_vm2, %v4977_v0  ;;  %v5410_v31 = vld [vmem:[#allocation2 + $0x91] sm:$0xff] }
  0x59   : > { %305 = vst.msk [vmem:[#allocation2 + $0x198] sm:$0x1] %vm268_vm2, %v4977_v0  ;;  %v5406_v28 = vld [vmem:[#allocation2 + $0xb1] sm:$0xff] }
  0x5a   : > { %306 = vst.msk [vmem:[#allocation2 + $0x1b8] sm:$0x1] %vm268_vm2, %v4977_v0  ;;  %v5387_v23 = vld [vmem:[#allocation2 + $0xd1] sm:$0xff] }
  0x5b   : > { %307 = vst.msk [vmem:[#allocation2 + $0x1d8] sm:$0x1] %vm268_vm2, %v4977_v0 }
  0x5c   : > { %649 = vrot.lane.b32.xlu0 %v561_v44, %s4978_s17  ;;  %308 = vst.msk [vmem:[#allocation2 + $0x1f8] sm:$0x1] %vm268_vm2, %v4977_v0  ;;  %v5460_v55 = vld [vmem:[#allocation2 + $0x111] sm:$0xff] }
  0x5d   : > { %645 = vrot.lane.b32.xlu1 %v559_v45, %s4978_s17  ;;  %309 = vst.msk [vmem:[#allocation2 + $0x218] sm:$0x1] %vm268_vm2, %v4977_v0  ;;  %v5441_v44 = vld [vmem:[#allocation2 + $0x131] sm:$0xff]  ;;  %v5443_v45 = vld [vmem:[#allocation2 + $0x127] sm:$0xff] }
  0x5e   : > { %470 = vst.msk [vmem:[#allocation2 + $0x1f0] sm:$0xff] %vm440_vm1, %v436_v56 }
  0x5f   : > { %310 = vst.msk [vmem:[#allocation2 + $0x238] sm:$0x1] %vm268_vm2, %v4977_v0  ;;  %v5316_v0 = vld [vmem:[#allocation2 + $0x49] sm:$0xff]  ;;  %vm2123_vm2 = vcmask 293888  }
  0x60   : > { %647 = vrot.lane.b32.xlu2 %v5232_v46, %s4978_s17  ;;  %468 = vst.msk [vmem:[#allocation2 + $0x1d0] sm:$0xff] %vm440_vm1, %v434_v57 }
  0x61   : > { %509 = vst.msk [vmem:[#allocation3 + $0x20] sm:$0xff] %vm440_vm1, %v5299_v59 }
  0x62   : > { %505 = vst.msk [vmem:[#allocation3] sm:$0xff] %vm440_vm1, %v473_v60  ;;  %v5468_v60 = vld [vmem:[#allocation2 + $0x169] sm:$0xff] }
  0x63   : > { %510 = vst.msk [vmem:[#allocation3 + $0x28] sm:$0xff] %vm440_vm1, %v5307_v61 }
  0x64   : > { %655 = vrot.lane.b32.xlu0 %v5244_v47, %s4978_s17  ;;  %506 = vst.msk [vmem:[#allocation3 + $0x8] sm:$0xff] %vm440_vm1, %v474_v63  ;;  %v5470_v63 = vld [vmem:[#allocation2 + $0x14f] sm:$0xff] }
  0x65   : > { %651 = vrot.lane.b32.xlu1 %v5248_v48, %s4978_s17  ;;  %v5312_v62 = vld [vmem:[#allocation2 + $0x1f0] sm:$0xff]  ;;  %507 = vst.msk [vmem:[#allocation3 + $0x10] sm:$0xff] %vm440_vm1, %v5318_v1 }
  0x66   : > { %513 = vst.msk [vmem:[#allocation3 + $0x40] sm:$0xff] %vm440_vm1, %v5329_v3 }
  0x67   : > { %v5320_v2 = vld [vmem:[#allocation2 + $0x1d0] sm:$0xff]  ;;  %511 = vst.msk [vmem:[#allocation3 + $0x30] sm:$0xff] %vm440_vm1, %v5339_v7 }
  0x68   : > { %653 = vrot.lane.b32.xlu2 %v5260_v49, %s4978_s17  ;;  %508 = vst.msk [vmem:[#allocation3 + $0x18] sm:$0xff] %vm440_vm1, %v5341_v8 }
  0x69   : > { %516 = vst.msk [vmem:[#allocation3 + $0x58] sm:$0xff] %vm440_vm1, %v5351_v11 }
  0x6a   : > { %514 = vst.msk [vmem:[#allocation3 + $0x48] sm:$0xff] %vm440_vm1, %v5363_v15 }
  0x6b   : > { %512 = vst.msk [vmem:[#allocation3 + $0x38] sm:$0xff] %vm440_vm1, %v5365_v16 }
  0x6c   : > { %661 = vrot.lane.b32.xlu0 %v5273_v51, %s4978_s17  ;;  %519 = vst.msk [vmem:[#allocation3 + $0x70] sm:$0xff] %vm440_vm1, %v5376_v18 }
  0x6d   : > { %657 = vrot.lane.b32.xlu1 %v5278_v53, %s4978_s17  ;;  %517 = vst.msk [vmem:[#allocation3 + $0x60] sm:$0xff] %vm440_vm1, %v5389_v24 }
  0x6e   : > { %515 = vst.msk [vmem:[#allocation3 + $0x50] sm:$0xff] %vm440_vm1, %v5391_v25 }
  0x6f   : > { %522 = vst.msk [vmem:[#allocation3 + $0x88] sm:$0xff] %vm440_vm1, %v5402_v27 }
  0x70   : > { %659 = vrot.lane.b32.xlu2 %v5320_v2, %s4978_s17  ;;  %520 = vst.msk [vmem:[#allocation3 + $0x78] sm:$0xff] %vm440_vm1, %v5416_v33 }
  0x71   : > { %518 = vst.msk [vmem:[#allocation3 + $0x68] sm:$0xff] %vm440_vm1, %v5418_v35 }
  0x72   : > { %525 = vst.msk [vmem:[#allocation3 + $0xa0] sm:$0xff] %vm440_vm1, %v5429_v37 }
  0x73   : > { %7424 = vst [vmem:[#allocation7_spill] sm:$0xff] %v5433_v38 }
  0x74   : > { %796 = vrot.lane.b32.xlu0 %v731_v58, %s4979_s18  ;;  %7425 = vst [vmem:[#allocation8_spill] sm:$0xff] %v5441_v44  ;;  %v5464_v58 = vld [vmem:[#allocation2 + $0xf1] sm:$0xff] }
  0x75   : > { %663 = vrot.lane.b32.xlu1 %v5312_v62, %s4978_s17  ;;  %523 = vst.msk [vmem:[#allocation3 + $0x90] sm:$0xff] %vm440_vm1, %v5443_v45 }
  0x76   : > { %521 = vst.msk [vmem:[#allocation3 + $0x80] sm:$0xff] %vm440_vm1, %v5445_v50 }
  0x77   : > { %528 = vst.msk [vmem:[#allocation3 + $0xb8] sm:$0xff] %vm440_vm1, %v5456_v54 }
  0x78   : > { %794 = vrot.lane.b32.xlu2 %v730_v5, %s4979_s18  ;;  %7426 = vst [vmem:[#allocation9_spill] sm:$0xff] %v5460_v55  ;;  %v5472_v5 = vld [vmem:[#allocation2 + $0x12f] sm:$0xff] }
  0x79   : > { %7427 = vst [vmem:[#allocation10_spill] sm:$0xff] %v5468_v60 }
  0x7a   : > { %526 = vst.msk [vmem:[#allocation3 + $0xa8] sm:$0xff] %vm440_vm1, %v5470_v63 }
  0x7b   : > { %524 = vst.msk [vmem:[#allocation3 + $0x98] sm:$0xff] %vm440_vm1, %v5472_v5 }
  0x7c   : > { %802 = vrot.lane.b32.xlu0 %v5316_v0, %s4979_s18 }
  0x7d   : > { %798 = vrot.lane.b32.xlu1 %v5333_v4, %s4979_s18 }
  0x80   : > { %800 = vrot.lane.b32.xlu2 %v5357_v13, %s4979_s18 }
  0x82   : > { %v610_v9 = vpop.permute.xlu2 %609 }
  0x83   : > { %702 = vst.msk [vmem:[#allocation3 + $0x20] sm:$0xff] %vm697_vm5, %v610_v9 }
  0x84   : > { %808 = vrot.lane.b32.xlu0 %v5337_v6, %s4979_s18 }
  0x85   : > { %804 = vrot.lane.b32.xlu1 %v5355_v12, %s4979_s18 }
  0x88   : > { %806 = vrot.lane.b32.xlu2 %v5383_v21, %s4979_s18 }
  0x8a   : > { %v612_v17 = vpop.permute.xlu2 %611 }
  0x8b   : > { %703 = vst.msk [vmem:[#allocation3 + $0x28] sm:$0xff] %vm697_vm5, %v612_v17  ;;  %v5483_v17 = vld [vmem:[#allocation2 + $0x1a7] sm:$0xff] }
  0x8c   : > { %814 = vrot.lane.b32.xlu0 %v5361_v14, %s4979_s18  ;;  %531 = vst.msk [vmem:[#allocation3 + $0xd0] sm:$0xff] %vm440_vm1, %v5483_v17 }
  0x8d   : > { %810 = vrot.lane.b32.xlu1 %v5380_v19, %s4979_s18 }
  0x8e   : > { %v602_v20 = vpop.permute.xlu0 %601 }
  0x8f   : > { %698 = vst.msk [vmem:[#allocation3] sm:$0xff] %vm697_vm5, %v602_v20  ;;  %v5487_v20 = vld [vmem:[#allocation2 + $0x149] sm:$0xff] }
  0x90   : > { %812 = vrot.lane.b32.xlu2 %v5410_v31, %s4979_s18  ;;  %7428 = vst [vmem:[#allocation11_spill] sm:$0xff] %v5487_v20 }
  0x92   : > { %v618_v26 = vpop.permute.xlu2 %617 }
  0x93   : > { %706 = vst.msk [vmem:[#allocation3 + $0x40] sm:$0xff] %vm697_vm5, %v618_v26 }
  0x94   : > { %820 = vrot.lane.b32.xlu0 %v5387_v23, %s4979_s18 }
  0x95   : > { %816 = vrot.lane.b32.xlu1 %v5406_v28, %s4979_s18 }
  0x96   : > { %v604_v29 = vpop.permute.xlu0 %603 }
  0x97   : > { %699 = vst.msk [vmem:[#allocation3 + $0x8] sm:$0xff] %vm697_vm5, %v604_v29  ;;  %v606_v30 = vpop.permute.xlu1 %605 }
  0x98   : > { %700 = vst.msk [vmem:[#allocation3 + $0x10] sm:$0xff] %vm697_vm5, %v606_v30  ;;  %818 = vrot.lane.b32.xlu2 %v5437_v42, %s4979_s18  ;;  %v5491_v30 = vld [vmem:[#allocation2 + $0x129] sm:$0xff] }
  0x9a   : > { %v624_v36 = vpop.permute.xlu2 %623 }
  0x9b   : > { %709 = vst.msk [vmem:[#allocation3 + $0x58] sm:$0xff] %vm697_vm5, %v624_v36  ;;  %v5495_v36 = vld [vmem:[#allocation2 + $0x191] sm:$0xff] }
  0x9c   : > { %826 = vrot.lane.b32.xlu0 %v5414_v32, %s4979_s18  ;;  %7429 = vst [vmem:[#allocation12_spill] sm:$0xff] %v5495_v36 }
  0x9d   : > { %822 = vrot.lane.b32.xlu1 %v5433_v38, %s4979_s18  ;;  %v5564_v38 = vld [vmem:[#allocation2 + $0x1b1] sm:$0xff] }
  0x9e   : > { %v614_v39 = vpop.permute.xlu0 %613 }
  0x9f   : > { %704 = vst.msk [vmem:[#allocation3 + $0x30] sm:$0xff] %vm697_vm5, %v614_v39  ;;  %v608_v41 = vpop.permute.xlu1 %607  ;;  %v5497_v39 = vld [vmem:[#allocation2 + $0x187] sm:$0xff] }
  0xa0   : > { %701 = vst.msk [vmem:[#allocation3 + $0x18] sm:$0xff] %vm697_vm5, %v608_v41  ;;  %824 = vrot.lane.b32.xlu2 %v5464_v58, %s4979_s18  ;;  %v5499_v41 = vld [vmem:[#allocation2 + $0x167] sm:$0xff] }
  0xa1   : > { %529 = vst.msk [vmem:[#allocation3 + $0xc0] sm:$0xff] %vm440_vm1, %v5497_v39 }
  0xa2   : > { %v630_v52 = vpop.permute.xlu2 %629  ;;  %527 = vst.msk [vmem:[#allocation3 + $0xb0] sm:$0xff] %vm440_vm1, %v5499_v41 }
  0xa3   : > { %712 = vst.msk [vmem:[#allocation3 + $0x70] sm:$0xff] %vm697_vm5, %v630_v52 }
  0xa4   : > { %832 = vrot.lane.b32.xlu0 %v5441_v44, %s4979_s18  ;;  %v5547_v44 = vld [vmem:[#allocation2 + $0x1e7] sm:$0xff] }
  0xa5   : > { %828 = vrot.lane.b32.xlu1 %v5460_v55, %s4979_s18  ;;  %v5541_v55 = vld [vmem:[#allocation2 + $0x189] sm:$0xff]  ;;  %535 = vst.msk [vmem:[#allocation3 + $0xf0] sm:$0xff] %vm440_vm1, %v5547_v44 }
  0xa6   : > { %v620_v56 = vpop.permute.xlu0 %619 }
  0xa7   : > { %707 = vst.msk [vmem:[#allocation3 + $0x48] sm:$0xff] %vm697_vm5, %v620_v56  ;;  %v616_v57 = vpop.permute.xlu1 %615  ;;  %v5510_v56 = vld [vmem:[#allocation2 + $0x1cf] sm:$0xff] }
  0xa8   : > { %705 = vst.msk [vmem:[#allocation3 + $0x38] sm:$0xff] %vm697_vm5, %v616_v57  ;;  %830 = vrot.lane.b32.xlu2 %v5491_v30, %s4979_s18  ;;  %v5514_v57 = vld [vmem:[#allocation2 + $0x171] sm:$0xff] }
  0xa9   : > { %534 = vst.msk [vmem:[#allocation3 + $0xe8] sm:$0xff] %vm440_vm1, %v5510_v56 }
  0xaa   : > { %v636_v9 = vpop.permute.xlu2 %635  ;;  %7430 = vst [vmem:[#allocation13_spill] sm:$0xff] %v5514_v57 }
  0xab   : > { %715 = vst.msk [vmem:[#allocation3 + $0x88] sm:$0xff] %vm697_vm5, %v636_v9 }
  0xac   : > { %838 = vrot.lane.b32.xlu0 %v5468_v60, %s4979_s18 }
  0xad   : > { %834 = vrot.lane.b32.xlu1 %v5487_v20, %s4979_s18  ;;  %v5526_v20 = vld [vmem:[#allocation2 + $0x18f] sm:$0xff] }
  0xae   : > { %v626_v26 = vpop.permute.xlu0 %625  ;;  %530 = vst.msk [vmem:[#allocation3 + $0xc8] sm:$0xff] %vm440_vm1, %v5526_v20 }
  0xaf   : > { %710 = vst.msk [vmem:[#allocation3 + $0x60] sm:$0xff] %vm697_vm5, %v626_v26  ;;  %v622_v29 = vpop.permute.xlu1 %621 }
  0xb0   : > { %708 = vst.msk [vmem:[#allocation3 + $0x50] sm:$0xff] %vm697_vm5, %v622_v29  ;;  %v5518_v29 = vld [vmem:[#allocation2 + $0x151] sm:$0xff] }
  0xb1   : > { %7431 = vst [vmem:[#allocation14_spill] sm:$0xff] %v5518_v29  ;;  %836 = vrot.lane.b32.xlu2 %v5518_v29, %s4979_s18 }
  0xb2   : > { %v642_v52 = vpop.permute.xlu2 %641 }
  0xb3   : > { %718 = vst.msk [vmem:[#allocation3 + $0xa0] sm:$0xff] %vm697_vm5, %v642_v52  ;;  %v5522_v52 = vld [vmem:[#allocation2 + $0x1c9] sm:$0xff] }
  0xb4   : > { %844 = vrot.lane.b32.xlu0 %v5495_v36, %s4979_s18  ;;  %7432 = vst [vmem:[#allocation15_spill] sm:$0xff] %v5522_v52  ;;  %v5524_v36 = vld [vmem:[#allocation2 + $0x1af] sm:$0xff] }
  0xb5   : > { %840 = vrot.lane.b32.xlu1 %v5514_v57, %s4979_s18  ;;  %532 = vst.msk [vmem:[#allocation3 + $0xd8] sm:$0xff] %vm440_vm1, %v5524_v36 }
  0xb6   : > { %v632_v9 = vpop.permute.xlu0 %631 }
  0xb7   : > { %713 = vst.msk [vmem:[#allocation3 + $0x78] sm:$0xff] %vm697_vm5, %v632_v9  ;;  %v628_v26 = vpop.permute.xlu1 %627  ;;  %v5537_v9 = vld [vmem:[#allocation2 + $0x1a9] sm:$0xff] }
  0xb8   : > { %711 = vst.msk [vmem:[#allocation3 + $0x68] sm:$0xff] %vm697_vm5, %v628_v26 }
  0xb9   : > { %7433 = vst [vmem:[#allocation16_spill] sm:$0xff] %v5537_v9  ;;  %842 = vrot.lane.b32.xlu2 %v5541_v55, %s4979_s18 }
  0xba   : > { %v648_v60 = vpop.permute.xlu2 %647 }
  0xbb   : > { %721 = vst.msk [vmem:[#allocation3 + $0xb8] sm:$0xff] %vm697_vm5, %v648_v60  ;;  %v5545_v60 = vld [vmem:[#allocation2 + $0x1f1] sm:$0xff] }
  0xbc   : > { %850 = vrot.lane.b32.xlu0 %v5522_v52, %s4979_s18  ;;  %7434 = vst [vmem:[#allocation17_spill] sm:$0xff] %v5545_v60  ;;  %v5549_v52 = vld [vmem:[#allocation2 + $0x1c7] sm:$0xff] }
  0xbd   : > { %846 = vrot.lane.b32.xlu1 %v5537_v9, %s4979_s18  ;;  %533 = vst.msk [vmem:[#allocation3 + $0xe0] sm:$0xff] %vm440_vm1, %v5549_v52 }
  0xbe   : > { %v638_v26 = vpop.permute.xlu0 %637 }
  0xbf   : > { %716 = vst.msk [vmem:[#allocation3 + $0x90] sm:$0xff] %vm697_vm5, %v638_v26  ;;  %v634_v57 = vpop.permute.xlu1 %633 }
  0xc0   : > { %714 = vst.msk [vmem:[#allocation3 + $0x80] sm:$0xff] %vm697_vm5, %v634_v57  ;;  %v5560_v57 = vld [vmem:[#allocation2 + $0x1d1] sm:$0xff] }
  0xc1   : > { %7435 = vst [vmem:[#allocation18_spill] sm:$0xff] %v5560_v57  ;;  %848 = vrot.lane.b32.xlu2 %v5564_v38, %s4979_s18 }
  0xc2   : > { %v654_v29 = vpop.permute.xlu2 %653 }
  0xc3   : > { %724 = vst.msk [vmem:[#allocation3 + $0xd0] sm:$0xff] %vm697_vm5, %v654_v29  ;;  %v5568_v29 = vld [vmem:[#allocation2 + $0x1ef] sm:$0xff] }
  0xc4   : > { %856 = vrot.lane.b32.xlu0 %v5545_v60, %s4979_s18  ;;  %536 = vst.msk [vmem:[#allocation3 + $0xf8] sm:$0xff] %vm440_vm1, %v5568_v29  ;;  %v5578_v60 = vld [vmem:[#allocation2 + $0x1e9] sm:$0xff] }
  0xc5   : > { %852 = vrot.lane.b32.xlu1 %v5560_v57, %s4979_s18 }
  0xc6   : > { %v644_v26 = vpop.permute.xlu0 %643 }
  0xc7   : > { %719 = vst.msk [vmem:[#allocation3 + $0xa8] sm:$0xff] %vm697_vm5, %v644_v26  ;;  %v640_v9 = vpop.permute.xlu1 %639 }
  0xc8   : > { %717 = vst.msk [vmem:[#allocation3 + $0x98] sm:$0xff] %vm697_vm5, %v640_v9 }
  0xc9   : > { %854 = vrot.lane.b32.xlu2 %v5578_v60, %s4979_s18 }
  0xca   : > { %v660_v57 = vpop.permute.xlu2 %659 }
  0xcb   : > { %727 = vst.msk [vmem:[#allocation3 + $0xe8] sm:$0xff] %vm697_vm5, %v660_v57 }
  0xcc   : > { %991 = vrot.lane.b32.xlu0 %v5299_v59, %s4980_s19 }
  0xcd   : > { %987 = vrot.lane.b32.xlu1 %v5318_v1, %s4980_s19 }
  0xce   : > { %v650_v26 = vpop.permute.xlu0 %649 }
  0xcf   : > { %722 = vst.msk [vmem:[#allocation3 + $0xc0] sm:$0xff] %vm697_vm5, %v650_v26  ;;  %v646_v9 = vpop.permute.xlu1 %645 }
  0xd0   : > { %720 = vst.msk [vmem:[#allocation3 + $0xb0] sm:$0xff] %vm697_vm5, %v646_v9 }
  0xd1   : > { %989 = vrot.lane.b32.xlu2 %v5341_v8, %s4980_s19 }
  0xd2   : > { %v795_v1 = vpop.permute.xlu2 %794 }
  0xd3   : > { %891 = vst.msk [vmem:[#allocation3] sm:$0xff] %vm890_vm6, %v795_v1 }
  0xd4   : > { %997 = vrot.lane.b32.xlu0 %v5365_v16, %s4980_s19 }
  0xd5   : > { %993 = vrot.lane.b32.xlu1 %v5307_v61, %s4980_s19 }
  0xd6   : > { %v656_v59 = vpop.permute.xlu0 %655 }
  0xd7   : > { %725 = vst.msk [vmem:[#allocation3 + $0xd8] sm:$0xff] %vm697_vm5, %v656_v59  ;;  %v652_v26 = vpop.permute.xlu1 %651 }
  0xd8   : > { %723 = vst.msk [vmem:[#allocation3 + $0xc8] sm:$0xff] %vm697_vm5, %v652_v26 }
  0xd9   : > { %995 = vrot.lane.b32.xlu2 %v5339_v7, %s4980_s19 }
  0xda   : > { %v801_v61 = vpop.permute.xlu2 %800 }
  0xdb   : > { %894 = vst.msk [vmem:[#allocation3 + $0x18] sm:$0xff] %vm890_vm6, %v801_v61 }
  0xdc   : > { %1003 = vrot.lane.b32.xlu0 %v5391_v25, %s4980_s19 }
  0xdd   : > { %999 = vrot.lane.b32.xlu1 %v5329_v3, %s4980_s19 }
  0xde   : > { %v662_v16 = vpop.permute.xlu0 %661 }
  0xdf   : > { %728 = vst.msk [vmem:[#allocation3 + $0xf0] sm:$0xff] %vm697_vm5, %v662_v16  ;;  %v658_v57 = vpop.permute.xlu1 %657 }
  0xe0   : > { %726 = vst.msk [vmem:[#allocation3 + $0xe0] sm:$0xff] %vm697_vm5, %v658_v57 }
  0xe1   : > { %1001 = vrot.lane.b32.xlu2 %v5363_v15, %s4980_s19  ;;  %v341_v15 = vld [vmem:[%s5096_s16 + $0xf0] sm:$0xff] }
  0xe2   : > { %v807_v3 = vpop.permute.xlu2 %806  ;;  %v405_v1 = vmul.f32 0.2, %v341_v15  ;;  %vm373_vm7 = vcmp.ge.f32.partialorder %v341_v15, 0.0 }
  0xe3   : > { %897 = vst.msk [vmem:[#allocation3 + $0x30] sm:$0xff] %vm890_vm6, %v807_v3 }
  0xe4   : > { %1009 = vrot.lane.b32.xlu0 %v5418_v35, %s4980_s19 }
  0xe5   : > { %1005 = vrot.lane.b32.xlu1 %v5351_v11, %s4980_s19 }
  0xe6   : > { %v797_v8 = vpop.permute.xlu0 %796 }
  0xe7   : > { %892 = vst.msk [vmem:[#allocation3 + $0x8] sm:$0xff] %vm890_vm6, %v797_v8  ;;  %v664_v9 = vpop.permute.xlu1 %663  ;;  %v342_v8 = vld [vmem:[%s5096_s16 + $0xf8] sm:$0xff] }
  0xe8   : > { %729 = vst.msk [vmem:[#allocation3 + $0xf8] sm:$0xff] %vm697_vm5, %v664_v9  ;;  %v406_v9 = vmul.f32 0.2, %v342_v8  ;;  %vm374_vm8 = vcmp.ge.f32.partialorder %v342_v8, 0.0 }
  0xe9   : > { %1007 = vrot.lane.b32.xlu2 %v5389_v24, %s4980_s19 }
  0xea   : > { %v813_v11 = vpop.permute.xlu2 %812 }
  0xeb   : > { %900 = vst.msk [vmem:[#allocation3 + $0x48] sm:$0xff] %vm890_vm6, %v813_v11 }
  0xec   : > { %1015 = vrot.lane.b32.xlu0 %v5445_v50, %s4980_s19 }
  0xed   : > { %1011 = vrot.lane.b32.xlu1 %v5376_v18, %s4980_s19  ;;  %v437_v18 = vsel %vm373_vm7, %v341_v15, %v405_v1 }
  0xee   : > { %v803_v7 = vpop.permute.xlu0 %802  ;;  %471 = vst.msk [vmem:[#allocation2 + $0x208] sm:$0xff] %vm440_vm1, %v437_v18  ;;  %v1116_v18 = vld [vmem:[#allocation2 + $0x28] sm:$0xff] }
  0xef   : > { %895 = vst.msk [vmem:[#allocation3 + $0x20] sm:$0xff] %vm890_vm6, %v803_v7  ;;  %v799_v59 = vpop.permute.xlu1 %798 }
  0xf0   : > { %893 = vst.msk [vmem:[#allocation3 + $0x10] sm:$0xff] %vm890_vm6, %v799_v59  ;;  %v438_v59 = vsel %vm374_vm8, %v342_v8, %v406_v9  ;;  %v1117_v9 = vld [vmem:[#allocation2 + $0x30] sm:$0xff] }
  0xf1   : > { %1013 = vrot.lane.b32.xlu2 %v5416_v33, %s4980_s19  ;;  %472 = vst.msk [vmem:[#allocation2 + $0x210] sm:$0xff] %vm440_vm1, %v438_v59 }
  0xf2   : > { %v819_v57 = vpop.permute.xlu2 %818 }
  0xf3   : > { %903 = vst.msk [vmem:[#allocation3 + $0x60] sm:$0xff] %vm890_vm6, %v819_v57 }
  0xf4   : > { %1021 = vrot.lane.b32.xlu0 %v5472_v5, %s4980_s19 }
  0xf5   : > { %1017 = vrot.lane.b32.xlu1 %v5402_v27, %s4980_s19  ;;  %v5671_v57 = vld [vmem:[#allocation2 + $0x207] sm:$0xff] }
  0xf6   : > { %v809_v26 = vpop.permute.xlu0 %808 }
  0xf7   : > { %898 = vst.msk [vmem:[#allocation3 + $0x38] sm:$0xff] %vm890_vm6, %v809_v26  ;;  %v805_v16 = vpop.permute.xlu1 %804 }
  0xf8   : > { %896 = vst.msk [vmem:[#allocation3 + $0x28] sm:$0xff] %vm890_vm6, %v805_v16 }
  0xf9   : > { %1019 = vrot.lane.b32.xlu2 %v5443_v45, %s4980_s19 }
  0xfa   : > { %v825_v3 = vpop.permute.xlu2 %824 }
  0xfb   : > { %906 = vst.msk [vmem:[#allocation3 + $0x78] sm:$0xff] %vm890_vm6, %v825_v3 }
  0xfc   : > { %1027 = vrot.lane.b32.xlu0 %v5499_v41, %s4980_s19 }
  0xfd   : > { %1023 = vrot.lane.b32.xlu1 %v5429_v37, %s4980_s19 }
  0xfe   : > { %v815_v61 = vpop.permute.xlu0 %814 }
  0xff   : > { %901 = vst.msk [vmem:[#allocation3 + $0x50] sm:$0xff] %vm890_vm6, %v815_v61  ;;  %v811_v27 = vpop.permute.xlu1 %810 }
 0x100   : > { %899 = vst.msk [vmem:[#allocation3 + $0x40] sm:$0xff] %vm890_vm6, %v811_v27 }
 0x101   : > { %1025 = vrot.lane.b32.xlu2 %v5470_v63, %s4980_s19 }
 0x102   : > { %v831_v11 = vpop.permute.xlu2 %830 }
 0x103   : > { %909 = vst.msk [vmem:[#allocation3 + $0x90] sm:$0xff] %vm890_vm6, %v831_v11  ;;  %v5694_v11 = vld [vmem:[#allocation2 + $0x68] sm:$0xff] }
 0x104   : > { %1033 = vrot.lane.b32.xlu0 %v5526_v20, %s4980_s19 }
 0x105   : > { %1029 = vrot.lane.b32.xlu1 %v5456_v54, %s4980_s19 }
 0x106   : > { %v821_v7 = vpop.permute.xlu0 %820 }
 0x107   : > { %904 = vst.msk [vmem:[#allocation3 + $0x68] sm:$0xff] %vm890_vm6, %v821_v7  ;;  %v817_v37 = vpop.permute.xlu1 %816  ;;  %v5685_v7 = vld [vmem:[#allocation2 + $0x20f] sm:$0xff] }
 0x108   : > { %902 = vst.msk [vmem:[#allocation3 + $0x58] sm:$0xff] %vm890_vm6, %v817_v37 }
 0x109   : > { %1031 = vrot.lane.b32.xlu2 %v5497_v39, %s4980_s19 }
 0x10b   : > { %v837_v54 = vpop.permute.xlu2 %836 }
 0x10c   : > { %1039 = vrot.lane.b32.xlu0 %v5549_v52, %s4980_s19  ;;  %912 = vst.msk [vmem:[#allocation3 + $0xa8] sm:$0xff] %vm890_vm6, %v837_v54 }
 0x10d   : > { %1035 = vrot.lane.b32.xlu1 %v5483_v17, %s4980_s19 }
 0x10e   : > { %v827_v15 = vpop.permute.xlu0 %826 }
 0x10f   : > { %907 = vst.msk [vmem:[#allocation3 + $0x80] sm:$0xff] %vm890_vm6, %v827_v15  ;;  %v823_v26 = vpop.permute.xlu1 %822 }
 0x110   : > { %905 = vst.msk [vmem:[#allocation3 + $0x70] sm:$0xff] %vm890_vm6, %v823_v26  ;;  %v5697_v26 = vld [vmem:[#allocation2 + $0x48] sm:$0xff] }
 0x111   : > { %1037 = vrot.lane.b32.xlu2 %v5524_v36, %s4980_s19 }
 0x113   : > { %v843_v16 = vpop.permute.xlu2 %842 }
 0x114   : > { %1045 = vrot.lane.b32.xlu0 %v5568_v29, %s4980_s19  ;;  %915 = vst.msk [vmem:[#allocation3 + $0xc0] sm:$0xff] %vm890_vm6, %v843_v16 }
 0x115   : > { %1041 = vrot.lane.b32.xlu1 %v5510_v56, %s4980_s19  ;;  %v5676_v56 = vld [vmem:[#allocation2 + $0x50] sm:$0xff] }
 0x116   : > { %v833_v1 = vpop.permute.xlu0 %832 }
 0x117   : > { %910 = vst.msk [vmem:[#allocation3 + $0x98] sm:$0xff] %vm890_vm6, %v833_v1  ;;  %v829_v17 = vpop.permute.xlu1 %828  ;;  %v5707_v1 = vld [vmem:[#allocation2 + $0x90] sm:$0xff] }
 0x118   : > { %908 = vst.msk [vmem:[#allocation3 + $0x88] sm:$0xff] %vm890_vm6, %v829_v17  ;;  %v5710_v17 = vld [vmem:[#allocation2 + $0x70] sm:$0xff] }
 0x119   : > { %1043 = vrot.lane.b32.xlu2 %v5547_v44, %s4980_s19 }
 0x11b   : > { %v849_v8 = vpop.permute.xlu2 %848 }
 0x11c   : > { %1180 = vrot.lane.b32.xlu0 %v1116_v18, %s4981_s20  ;;  %918 = vst.msk [vmem:[#allocation3 + $0xd8] sm:$0xff] %vm890_vm6, %v849_v8  ;;  %v5723_v8 = vld [vmem:[#allocation2 + $0xa8] sm:$0xff] }
 0x11d   : > { %1047 = vrot.lane.b32.xlu1 %v5671_v57, %s4980_s19 }
 0x11e   : > { %v839_v61 = vpop.permute.xlu0 %838 }
 0x11f   : > { %913 = vst.msk [vmem:[#allocation3 + $0xb0] sm:$0xff] %vm890_vm6, %v839_v61  ;;  %v835_v27 = vpop.permute.xlu1 %834  ;;  %v5720_v61 = vld [vmem:[#allocation2 + $0xc8] sm:$0xff] }
 0x120   : > { %911 = vst.msk [vmem:[#allocation3 + $0xa0] sm:$0xff] %vm890_vm6, %v835_v27 }
 0x121   : > { %1049 = vrot.lane.b32.xlu2 %v5685_v7, %s4980_s19 }
 0x123   : > { %v855_v37 = vpop.permute.xlu2 %854 }
 0x124   : > { %1186 = vrot.lane.b32.xlu0 %v5676_v56, %s4981_s20  ;;  %921 = vst.msk [vmem:[#allocation3 + $0xf0] sm:$0xff] %vm890_vm6, %v855_v37  ;;  %v5736_v37 = vld [vmem:[#allocation2 + $0xd0] sm:$0xff] }
 0x125   : > { %1182 = vrot.lane.b32.xlu1 %v1117_v9, %s4981_s20 }
 0x126   : > { %v845_v3 = vpop.permute.xlu0 %844 }
 0x127   : > { %916 = vst.msk [vmem:[#allocation3 + $0xc8] sm:$0xff] %vm890_vm6, %v845_v3  ;;  %v841_v59 = vpop.permute.xlu1 %840  ;;  %v5733_v3 = vld [vmem:[#allocation2 + $0xf0] sm:$0xff] }
 0x128   : > { %914 = vst.msk [vmem:[#allocation3 + $0xb8] sm:$0xff] %vm890_vm6, %v841_v59 }
 0x129   : > { %1184 = vrot.lane.b32.xlu2 %v5697_v26, %s4981_s20 }
 0x12c   : > { %1192 = vrot.lane.b32.xlu0 %v5153_v10, %s4981_s20  ;;  %v990_v10 = vpop.permute.xlu2 %989 }
 0x12d   : > { %1188 = vrot.lane.b32.xlu1 %v5694_v11, %s4981_s20  ;;  %1085 = vst.msk [vmem:[#allocation3 + $0x8] sm:$0xff] %vm1083_vm9, %v990_v10 }
 0x12e   : > { %v851_v15 = vpop.permute.xlu0 %850 }
 0x12f   : > { %919 = vst.msk [vmem:[#allocation3 + $0xe0] sm:$0xff] %vm890_vm6, %v851_v15  ;;  %v847_v54 = vpop.permute.xlu1 %846 }
 0x130   : > { %917 = vst.msk [vmem:[#allocation3 + $0xd0] sm:$0xff] %vm890_vm6, %v847_v54  ;;  %v5746_v54 = vld [vmem:[#allocation2 + $0x128] sm:$0xff] }
 0x131   : > { %1190 = vrot.lane.b32.xlu2 %v5710_v17, %s4981_s20 }
 0x134   : > { %1198 = vrot.lane.b32.xlu0 %v5165_v22, %s4981_s20  ;;  %v996_v22 = vpop.permute.xlu2 %995 }
 0x135   : > { %1194 = vrot.lane.b32.xlu1 %v5707_v1, %s4981_s20  ;;  %1088 = vst.msk [vmem:[#allocation3 + $0x20] sm:$0xff] %vm1083_vm9, %v996_v22  ;;  %v5759_v22 = vld [vmem:[#allocation2 + $0x150] sm:$0xff] }
 0x136   : > { %v857_v18 = vpop.permute.xlu0 %856 }
 0x137   : > { %922 = vst.msk [vmem:[#allocation3 + $0xf8] sm:$0xff] %vm890_vm6, %v857_v18  ;;  %v853_v16 = vpop.permute.xlu1 %852  ;;  %v5749_v18 = vld [vmem:[#allocation2 + $0x108] sm:$0xff] }
 0x138   : > { %920 = vst.msk [vmem:[#allocation3 + $0xe8] sm:$0xff] %vm890_vm6, %v853_v16 }
 0x139   : > { %1196 = vrot.lane.b32.xlu2 %v5723_v8, %s4981_s20 }
 0x13c   : > { %1204 = vrot.lane.b32.xlu0 %v5177_v34, %s4981_s20  ;;  %v1002_v34 = vpop.permute.xlu2 %1001 }
 0x13d   : > { %1200 = vrot.lane.b32.xlu1 %v5720_v61, %s4981_s20  ;;  %1091 = vst.msk [vmem:[#allocation3 + $0x38] sm:$0xff] %vm1083_vm9, %v1002_v34 }
 0x13e   : > { %v992_v27 = vpop.permute.xlu0 %991 }
 0x13f   : > { %1086 = vst.msk [vmem:[#allocation3 + $0x10] sm:$0xff] %vm1083_vm9, %v992_v27  ;;  %v988_v9 = vpop.permute.xlu1 %987 }
 0x140   : > { %1084 = vst.msk [vmem:[#allocation3] sm:$0xff] %vm1083_vm9, %v988_v9  ;;  %v5762_v9 = vld [vmem:[#allocation2 + $0x130] sm:$0xff] }
 0x141   : > { %1202 = vrot.lane.b32.xlu2 %v5736_v37, %s4981_s20 }
 0x144   : > { %1210 = vrot.lane.b32.xlu0 %v5188_v40, %s4981_s20  ;;  %v1008_v40 = vpop.permute.xlu2 %1007 }
 0x145   : > { %1206 = vrot.lane.b32.xlu1 %v5733_v3, %s4981_s20  ;;  %1094 = vst.msk [vmem:[#allocation3 + $0x50] sm:$0xff] %vm1083_vm9, %v1008_v40  ;;  %v5775_v40 = vld [vmem:[#allocation2 + $0x168] sm:$0xff] }
 0x146   : > { %v998_v59 = vpop.permute.xlu0 %997 }
 0x147   : > { %1089 = vst.msk [vmem:[#allocation3 + $0x28] sm:$0xff] %vm1083_vm9, %v998_v59  ;;  %v994_v15 = vpop.permute.xlu1 %993  ;;  %v5772_v59 = vld [vmem:[#allocation2 + $0x188] sm:$0xff] }
 0x148   : > { %1087 = vst.msk [vmem:[#allocation3 + $0x18] sm:$0xff] %vm1083_vm9, %v994_v15 }
 0x149   : > { %1208 = vrot.lane.b32.xlu2 %v5749_v18, %s4981_s20 }
 0x14c   : > { %1216 = vrot.lane.b32.xlu0 %v5210_v43, %s4981_s20  ;;  %v1014_v43 = vpop.permute.xlu2 %1013 }
 0x14d   : > { %1212 = vrot.lane.b32.xlu1 %v5746_v54, %s4981_s20  ;;  %1097 = vst.msk [vmem:[#allocation3 + $0x68] sm:$0xff] %vm1083_vm9, %v1014_v43  ;;  %v5788_v43 = vld [vmem:[#allocation2 + $0x208] sm:$0xff] }
 0x14e   : > { %v1004_v10 = vpop.permute.xlu0 %1003 }
 0x14f   : > { %1092 = vst.msk [vmem:[#allocation3 + $0x40] sm:$0xff] %vm1083_vm9, %v1004_v10  ;;  %v1000_v16 = vpop.permute.xlu1 %999 }
 0x150   : > { %1090 = vst.msk [vmem:[#allocation3 + $0x30] sm:$0xff] %vm1083_vm9, %v1000_v16 }
 0x151   : > { %1214 = vrot.lane.b32.xlu2 %v5762_v9, %s4981_s20 }
 0x154   : > { %1222 = vrot.lane.b32.xlu0 %v5232_v46, %s4981_s20  ;;  %v1020_v46 = vpop.permute.xlu2 %1019 }
 0x155   : > { %1218 = vrot.lane.b32.xlu1 %v5759_v22, %s4981_s20  ;;  %1100 = vst.msk [vmem:[#allocation3 + $0x80] sm:$0xff] %vm1083_vm9, %v1020_v46  ;;  %v5805_v46 = vld [vmem:[#allocation2 + $0x210] sm:$0xff] }
 0x156   : > { %v1010_v27 = vpop.permute.xlu0 %1009 }
 0x157   : > { %1095 = vst.msk [vmem:[#allocation3 + $0x58] sm:$0xff] %vm1083_vm9, %v1010_v27  ;;  %v1006_v34 = vpop.permute.xlu1 %1005 }
 0x158   : > { %1093 = vst.msk [vmem:[#allocation3 + $0x48] sm:$0xff] %vm1083_vm9, %v1006_v34 }
 0x159   : > { %1220 = vrot.lane.b32.xlu2 %v5775_v40, %s4981_s20 }
 0x15c   : > { %1228 = vrot.lane.b32.xlu0 %v5260_v49, %s4981_s20  ;;  %v1026_v49 = vpop.permute.xlu2 %1025 }
 0x15d   : > { %1224 = vrot.lane.b32.xlu1 %v5772_v59, %s4981_s20  ;;  %1103 = vst.msk [vmem:[#allocation3 + $0x98] sm:$0xff] %vm1083_vm9, %v1026_v49 }
 0x15e   : > { %v1016_v15 = vpop.permute.xlu0 %1015 }
 0x15f   : > { %1098 = vst.msk [vmem:[#allocation3 + $0x70] sm:$0xff] %vm1083_vm9, %v1016_v15  ;;  %v1012_v10 = vpop.permute.xlu1 %1011 }
 0x160   : > { %1096 = vst.msk [vmem:[#allocation3 + $0x60] sm:$0xff] %vm1083_vm9, %v1012_v10 }
 0x161   : > { %1226 = vrot.lane.b32.xlu2 %v5248_v48, %s4981_s20 }
 0x164   : > { %1234 = vrot.lane.b32.xlu0 %v5320_v2, %s4981_s20  ;;  %v1032_v2 = vpop.permute.xlu2 %1031 }
 0x165   : > { %1230 = vrot.lane.b32.xlu1 %v5244_v47, %s4981_s20  ;;  %1106 = vst.msk [vmem:[#allocation3 + $0xb0] sm:$0xff] %vm1083_vm9, %v1032_v2 }
 0x166   : > { %v1022_v16 = vpop.permute.xlu0 %1021 }
 0x167   : > { %1101 = vst.msk [vmem:[#allocation3 + $0x88] sm:$0xff] %vm1083_vm9, %v1022_v16  ;;  %v1018_v27 = vpop.permute.xlu1 %1017 }
 0x168   : > { %1099 = vst.msk [vmem:[#allocation3 + $0x78] sm:$0xff] %vm1083_vm9, %v1018_v27  ;;  %v7438_v27 = vld [vmem:[#allocation8_spill] sm:$0xff] }
 0x169   : > { %1232 = vrot.lane.b32.xlu2 %v5278_v53, %s4981_s20 }
 0x16c   : > { %1240 = vrot.lane.b32.xlu0 %v5788_v43, %s4981_s20  ;;  %v1038_v48 = vpop.permute.xlu2 %1037 }
 0x16d   : > { %1236 = vrot.lane.b32.xlu1 %v5273_v51, %s4981_s20  ;;  %1109 = vst.msk [vmem:[#allocation3 + $0xc8] sm:$0xff] %vm1083_vm9, %v1038_v48  ;;  %v7440_v48 = vld [vmem:[#allocation10_spill] sm:$0xff] }
 0x16e   : > { %v1028_v34 = vpop.permute.xlu0 %1027 }
 0x16f   : > { %1104 = vst.msk [vmem:[#allocation3 + $0xa0] sm:$0xff] %vm1083_vm9, %v1028_v34  ;;  %v1024_v47 = vpop.permute.xlu1 %1023 }
 0x170   : > { %1102 = vst.msk [vmem:[#allocation3 + $0x90] sm:$0xff] %vm1083_vm9, %v1024_v47 }
 0x171   : > { %1238 = vrot.lane.b32.xlu2 %v5312_v62, %s4981_s20 }
 0x174   : > { %1375 = vrot.lane.b32.xlu0 %v5357_v13, %s4982_s26  ;;  %v1044_v53 = vpop.permute.xlu2 %1043 }
 0x175   : > { %1242 = vrot.lane.b32.xlu1 %v5805_v46, %s4981_s20  ;;  %1112 = vst.msk [vmem:[#allocation3 + $0xe0] sm:$0xff] %vm1083_vm9, %v1044_v53 }
 0x176   : > { %v1034_v15 = vpop.permute.xlu0 %1033 }
 0x177   : > { %1107 = vst.msk [vmem:[#allocation3 + $0xb8] sm:$0xff] %vm1083_vm9, %v1034_v15  ;;  %v1030_v51 = vpop.permute.xlu1 %1029 }
 0x178   : > { %1105 = vst.msk [vmem:[#allocation3 + $0xa8] sm:$0xff] %vm1083_vm9, %v1030_v51  ;;  %v7441_v51 = vld [vmem:[#allocation11_spill] sm:$0xff] }
 0x179   : > { %1373 = vrot.lane.b32.xlu2 %v5333_v4, %s4982_s26 }
 0x17c   : > { %1381 = vrot.lane.b32.xlu0 %v5383_v21, %s4982_s26  ;;  %v1050_v62 = vpop.permute.xlu2 %1049 }
 0x17d   : > { %1377 = vrot.lane.b32.xlu1 %v5316_v0, %s4982_s26  ;;  %1115 = vst.msk [vmem:[#allocation3 + $0xf8] sm:$0xff] %vm1083_vm9, %v1050_v62  ;;  %v7443_v62 = vld [vmem:[#allocation13_spill] sm:$0xff] }
 0x17e   : > { %v1040_v13 = vpop.permute.xlu0 %1039 }
 0x17f   : > { %1110 = vst.msk [vmem:[#allocation3 + $0xd0] sm:$0xff] %vm1083_vm9, %v1040_v13  ;;  %v1036_v10 = vpop.permute.xlu1 %1035  ;;  %v7442_v13 = vld [vmem:[#allocation12_spill] sm:$0xff] }
 0x180   : > { %1108 = vst.msk [vmem:[#allocation3 + $0xc0] sm:$0xff] %vm1083_vm9, %v1036_v10 }
 0x181   : > { %1379 = vrot.lane.b32.xlu2 %v5355_v12, %s4982_s26 }
 0x184   : > { %1387 = vrot.lane.b32.xlu0 %v5410_v31, %s4982_s26  ;;  %v1185_v0 = vpop.permute.xlu2 %1184 }
 0x185   : > { %1383 = vrot.lane.b32.xlu1 %v5337_v6, %s4982_s26  ;;  %1279 = vst.msk [vmem:[#allocation3 + $0x10] sm:$0xff] %vm1276_vm10, %v1185_v0  ;;  %v5891_v0 = vld [vmem:[#allocation2 + $0x211] sm:$0xff] }
 0x186   : > { %v1046_v21 = vpop.permute.xlu0 %1045 }
 0x187   : > { %1113 = vst.msk [vmem:[#allocation3 + $0xe8] sm:$0xff] %vm1083_vm9, %v1046_v21  ;;  %v1042_v49 = vpop.permute.xlu1 %1041 }
 0x188   : > { %1111 = vst.msk [vmem:[#allocation3 + $0xd8] sm:$0xff] %vm1083_vm9, %v1042_v49  ;;  %v7444_v49 = vld [vmem:[#allocation15_spill] sm:$0xff] }
 0x189   : > { %1385 = vrot.lane.b32.xlu2 %v5380_v19, %s4982_s26 }
 0x18c   : > { %1393 = vrot.lane.b32.xlu0 %v5437_v42, %s4982_s26  ;;  %v1191_v12 = vpop.permute.xlu2 %1190 }
 0x18d   : > { %1389 = vrot.lane.b32.xlu1 %v5361_v14, %s4982_s26  ;;  %1282 = vst.msk [vmem:[#allocation3 + $0x28] sm:$0xff] %vm1276_vm10, %v1191_v12 }
 0x18e   : > { %v1181_v4 = vpop.permute.xlu0 %1180 }
 0x18f   : > { %1277 = vst.msk [vmem:[#allocation3] sm:$0xff] %vm1276_vm10, %v1181_v4  ;;  %v1048_v6 = vpop.permute.xlu1 %1047 }
 0x190   : > { %1114 = vst.msk [vmem:[#allocation3 + $0xf0] sm:$0xff] %vm1083_vm9, %v1048_v6  ;;  %v7445_v6 = vld [vmem:[#allocation16_spill] sm:$0xff] }
 0x191   : > { %1391 = vrot.lane.b32.xlu2 %v5406_v28, %s4982_s26  ;;  %v7437_v28 = vld [vmem:[#allocation14_spill] sm:$0xff] }
 0x194   : > { %1399 = vrot.lane.b32.xlu0 %v5464_v58, %s4982_s26  ;;  %v1197_v14 = vpop.permute.xlu2 %1196 }
 0x195   : > { %1395 = vrot.lane.b32.xlu1 %v5387_v23, %s4982_s26  ;;  %1285 = vst.msk [vmem:[#allocation3 + $0x40] sm:$0xff] %vm1276_vm10, %v1197_v14  ;;  %v7436_v23 = vld [vmem:[#allocation7_spill] sm:$0xff] }
 0x196   : > { %v1187_v31 = vpop.permute.xlu0 %1186 }
 0x197   : > { %1280 = vst.msk [vmem:[#allocation3 + $0x18] sm:$0xff] %vm1276_vm10, %v1187_v31  ;;  %v1183_v42 = vpop.permute.xlu1 %1182  ;;  %v7446_v31 = vld [vmem:[#allocation17_spill] sm:$0xff] }
 0x198   : > { %1278 = vst.msk [vmem:[#allocation3 + $0x8] sm:$0xff] %vm1276_vm10, %v1183_v42  ;;  %v1505_v42 = vld [vmem:[#allocation2 + $0x67] sm:$0xff] }
 0x199   : > { %1397 = vrot.lane.b32.xlu2 %v7436_v23, %s4982_s26  ;;  %v1503_v23 = vld [vmem:[#allocation2 + $0x47] sm:$0xff] }
 0x19c   : > { %1405 = vrot.lane.b32.xlu0 %v5491_v30, %s4982_s26  ;;  %v1203_v16 = vpop.permute.xlu2 %1202 }
 0x19d   : > { %1401 = vrot.lane.b32.xlu1 %v5414_v32, %s4982_s26  ;;  %1288 = vst.msk [vmem:[#allocation3 + $0x58] sm:$0xff] %vm1276_vm10, %v1203_v16  ;;  %v7439_v32 = vld [vmem:[#allocation9_spill] sm:$0xff] }
 0x19e   : > { %v1193_v19 = vpop.permute.xlu0 %1192  ;;  %v5908_v16 = vld [vmem:[#allocation2 + $0x209] sm:$0xff] }
 0x19f   : > { %1283 = vst.msk [vmem:[#allocation3 + $0x30] sm:$0xff] %vm1276_vm10, %v1193_v19  ;;  %v1189_v58 = vpop.permute.xlu1 %1188  ;;  %v7447_v19 = vld [vmem:[#allocation18_spill] sm:$0xff] }
 0x1a0   : > { %1281 = vst.msk [vmem:[#allocation3 + $0x20] sm:$0xff] %vm1276_vm10, %v1189_v58 }
 0x1a1   : > { %1403 = vrot.lane.b32.xlu2 %v7439_v32, %s4982_s26  ;;  %v1506_v32 = vld [vmem:[#allocation2 + $0x6f] sm:$0xff] }
 0x1a4   : > { %1411 = vrot.lane.b32.xlu0 %v7437_v28, %s4982_s26  ;;  %v1209_v34 = vpop.permute.xlu2 %1208 }
 0x1a5   : > { %1407 = vrot.lane.b32.xlu1 %v7438_v27, %s4982_s26  ;;  %1291 = vst.msk [vmem:[#allocation3 + $0x70] sm:$0xff] %vm1276_vm10, %v1209_v34 }
 0x1a6   : > { %v1199_v30 = vpop.permute.xlu0 %1198 }
 0x1a7   : > { %1286 = vst.msk [vmem:[#allocation3 + $0x48] sm:$0xff] %vm1276_vm10, %v1199_v30  ;;  %v1195_v2 = vpop.permute.xlu1 %1194  ;;  %v1508_v30 = vld [vmem:[#allocation2 + $0x8f] sm:$0xff] }
 0x1a8   : > { %1284 = vst.msk [vmem:[#allocation3 + $0x38] sm:$0xff] %vm1276_vm10, %v1195_v2 }
 0x1a9   : > { %1409 = vrot.lane.b32.xlu2 %v7441_v51, %s4982_s26 }
 0x1ac   : > { %1417 = vrot.lane.b32.xlu0 %v5541_v55, %s4982_s26  ;;  %v1215_v53 = vpop.permute.xlu2 %1214 }
 0x1ad   : > { %1413 = vrot.lane.b32.xlu1 %v7440_v48, %s4982_s26  ;;  %1294 = vst.msk [vmem:[#allocation3 + $0x88] sm:$0xff] %vm1276_vm10, %v1215_v53  ;;  %v1507_v53 = vld [vmem:[#allocation2 + $0x87] sm:$0xff] }
 0x1ae   : > { %v1205_v47 = vpop.permute.xlu0 %1204 }
 0x1af   : > { %1289 = vst.msk [vmem:[#allocation3 + $0x60] sm:$0xff] %vm1276_vm10, %v1205_v47  ;;  %v1201_v15 = vpop.permute.xlu1 %1200  ;;  %v1504_v47 = vld [vmem:[#allocation2 + $0x4f] sm:$0xff] }
 0x1b0   : > { %1287 = vst.msk [vmem:[#allocation3 + $0x50] sm:$0xff] %vm1276_vm10, %v1201_v15 }
 0x1b1   : > { %1415 = vrot.lane.b32.xlu2 %v7443_v62, %s4982_s26 }
 0x1b4   : > { %1423 = vrot.lane.b32.xlu0 %v5564_v38, %s4982_s26  ;;  %v1221_v21 = vpop.permute.xlu2 %1220 }
 0x1b5   : > { %1419 = vrot.lane.b32.xlu1 %v7442_v13, %s4982_s26  ;;  %1297 = vst.msk [vmem:[#allocation3 + $0xa0] sm:$0xff] %vm1276_vm10, %v1221_v21  ;;  %v1513_v21 = vld [vmem:[#allocation2 + $0xe7] sm:$0xff] }
 0x1b6   : > { %v1211_v55 = vpop.permute.xlu0 %1210 }
 0x1b7   : > { %1292 = vst.msk [vmem:[#allocation3 + $0x78] sm:$0xff] %vm1276_vm10, %v1211_v55  ;;  %v1207_v10 = vpop.permute.xlu1 %1206 }
 0x1b8   : > { %1290 = vst.msk [vmem:[#allocation3 + $0x68] sm:$0xff] %vm1276_vm10, %v1207_v10  ;;  %v1510_v10 = vld [vmem:[#allocation2 + $0xaf] sm:$0xff] }
 0x1b9   : > { %1421 = vrot.lane.b32.xlu2 %v7445_v6, %s4982_s26  ;;  %v1519_v6 = vld [vmem:[#allocation2 + $0x147] sm:$0xff] }
 0x1bc   : > { %1429 = vrot.lane.b32.xlu0 %v5578_v60, %s4982_s26  ;;  %v1227_v60 = vpop.permute.xlu2 %1226 }
 0x1bd   : > { %1425 = vrot.lane.b32.xlu1 %v7444_v49, %s4982_s26  ;;  %1300 = vst.msk [vmem:[#allocation3 + $0xb8] sm:$0xff] %vm1276_vm10, %v1227_v60  ;;  %v1516_v49 = vld [vmem:[#allocation2 + $0x10f] sm:$0xff] }
 0x1be   : > { %v1217_v38 = vpop.permute.xlu0 %1216 }
 0x1bf   : > { %1295 = vst.msk [vmem:[#allocation3 + $0x90] sm:$0xff] %vm1276_vm10, %v1217_v38  ;;  %v1213_v4 = vpop.permute.xlu1 %1212 }
 0x1c0   : > { %1293 = vst.msk [vmem:[#allocation3 + $0x80] sm:$0xff] %vm1276_vm10, %v1213_v4 }
 0x1c1   : > { %1427 = vrot.lane.b32.xlu2 %v7447_v19, %s4982_s26  ;;  %v1528_v19 = vld [vmem:[#allocation2 + $0x1cf] sm:$0xff] }
 0x1c4   : > { %1435 = vrot.lane.b32.xlu0 %v5891_v0, %s4982_s26  ;;  %v1233_v58 = vpop.permute.xlu2 %1232 }
 0x1c5   : > { %1431 = vrot.lane.b32.xlu1 %v7446_v31, %s4982_s26  ;;  %1303 = vst.msk [vmem:[#allocation3 + $0xd0] sm:$0xff] %vm1276_vm10, %v1233_v58 }
 0x1c6   : > { %v1223_v12 = vpop.permute.xlu0 %1222 }
 0x1c7   : > { %1298 = vst.msk [vmem:[#allocation3 + $0xa8] sm:$0xff] %vm1276_vm10, %v1223_v12  ;;  %v1219_v14 = vpop.permute.xlu1 %1218  ;;  %v1522_v12 = vld [vmem:[#allocation2 + $0x16f] sm:$0xff] }
 0x1c8   : > { %1296 = vst.msk [vmem:[#allocation3 + $0x98] sm:$0xff] %vm1276_vm10, %v1219_v14 }
 0x1c9   : > { %1433 = vrot.lane.b32.xlu2 %v5908_v16, %s4982_s26 }
 0x1cc   : > { %1571 = vrot.lane.b32.xlu0 %v1505_v42, %s4983_s28  ;;  %v1239_v2 = vpop.permute.xlu2 %1238  ;;  %v1525_v42 = vld [vmem:[#allocation2 + $0x1a7] sm:$0xff] }
 0x1cd   : > { %1567 = vrot.lane.b32.xlu1 %v1503_v23, %s4983_s28  ;;  %1306 = vst.msk [vmem:[#allocation3 + $0xe8] sm:$0xff] %vm1276_vm10, %v1239_v2 }
 0x1ce   : > { %v1229_v28 = vpop.permute.xlu0 %1228 }
 0x1cf   : > { %1301 = vst.msk [vmem:[#allocation3 + $0xc0] sm:$0xff] %vm1276_vm10, %v1229_v28  ;;  %v1225_v27 = vpop.permute.xlu1 %1224 }
 0x1d0   : > { %1299 = vst.msk [vmem:[#allocation3 + $0xb0] sm:$0xff] %vm1276_vm10, %v1225_v27 }
 0x1d1   : > { %1569 = vrot.lane.b32.xlu2 %v1504_v47, %s4983_s28 }
 0x1d4   : > { %1577 = vrot.lane.b32.xlu0 %v1508_v30, %s4983_s28  ;;  %v1374_v15 = vpop.permute.xlu2 %1373  ;;  %v1534_v30 = vld [vmem:[#allocation2 + $0x22f] sm:$0xff] }
 0x1d5   : > { %1573 = vrot.lane.b32.xlu1 %v1506_v32, %s4983_s28  ;;  %1470 = vst.msk [vmem:[#allocation3] sm:$0xff] %vm1469_vm11, %v1374_v15 }
 0x1d6   : > { %v1235_v34 = vpop.permute.xlu0 %1234 }
 0x1d7   : > { %1304 = vst.msk [vmem:[#allocation3 + $0xd8] sm:$0xff] %vm1276_vm10, %v1235_v34  ;;  %v1231_v48 = vpop.permute.xlu1 %1230 }
 0x1d8   : > { %1302 = vst.msk [vmem:[#allocation3 + $0xc8] sm:$0xff] %vm1276_vm10, %v1231_v48 }
 0x1d9   : > { %1575 = vrot.lane.b32.xlu2 %v1507_v53, %s4983_s28 }
 0x1dc   : > { %1583 = vrot.lane.b32.xlu0 %v5389_v24, %s4983_s28  ;;  %v1380_v13 = vpop.permute.xlu2 %1379 }
 0x1dd   : > { %1579 = vrot.lane.b32.xlu1 %v5391_v25, %s4983_s28  ;;  %1473 = vst.msk [vmem:[#allocation3 + $0x18] sm:$0xff] %vm1469_vm11, %v1380_v13  ;;  %v1717_v13 = vld [vmem:[#allocation2 + $0x190] sm:$0xff] }
 0x1de   : > { %v1241_v51 = vpop.permute.xlu0 %1240 }
 0x1df   : > { %1307 = vst.msk [vmem:[#allocation3 + $0xf0] sm:$0xff] %vm1276_vm10, %v1241_v51  ;;  %v1237_v55 = vpop.permute.xlu1 %1236 }
 0x1e0   : > { %1305 = vst.msk [vmem:[#allocation3 + $0xe0] sm:$0xff] %vm1276_vm10, %v1237_v55 }
 0x1e1   : > { %1581 = vrot.lane.b32.xlu2 %v1510_v10, %s4983_s28 }
 0x1e4   : > { %1589 = vrot.lane.b32.xlu0 %v5416_v33, %s4983_s28  ;;  %v1386_v25 = vpop.permute.xlu2 %1385 }
 0x1e5   : > { %1585 = vrot.lane.b32.xlu1 %v5418_v35, %s4983_s28  ;;  %1476 = vst.msk [vmem:[#allocation3 + $0x30] sm:$0xff] %vm1469_vm11, %v1386_v25 }
 0x1e6   : > { %v1376_v24 = vpop.permute.xlu0 %1375 }
 0x1e7   : > { %1471 = vst.msk [vmem:[#allocation3 + $0x8] sm:$0xff] %vm1469_vm11, %v1376_v24  ;;  %v1243_v62 = vpop.permute.xlu1 %1242 }
 0x1e8   : > { %1308 = vst.msk [vmem:[#allocation3 + $0xf8] sm:$0xff] %vm1276_vm10, %v1243_v62  ;;  %v1720_v62 = vld [vmem:[#allocation2 + $0x1c8] sm:$0xff] }
 0x1e9   : > { %1587 = vrot.lane.b32.xlu2 %v1513_v21, %s4983_s28 }
 0x1ec   : > { %1595 = vrot.lane.b32.xlu0 %v5443_v45, %s4983_s28  ;;  %v1392_v35 = vpop.permute.xlu2 %1391 }
 0x1ed   : > { %1591 = vrot.lane.b32.xlu1 %v5445_v50, %s4983_s28  ;;  %1479 = vst.msk [vmem:[#allocation3 + $0x48] sm:$0xff] %vm1469_vm11, %v1392_v35 }
 0x1ee   : > { %v1382_v33 = vpop.permute.xlu0 %1381 }
 0x1ef   : > { %1474 = vst.msk [vmem:[#allocation3 + $0x20] sm:$0xff] %vm1469_vm11, %v1382_v33  ;;  %v1378_v38 = vpop.permute.xlu1 %1377  ;;  %v1718_v33 = vld [vmem:[#allocation2 + $0x1a8] sm:$0xff] }
 0x1f0   : > { %1472 = vst.msk [vmem:[#allocation3 + $0x10] sm:$0xff] %vm1469_vm11, %v1378_v38  ;;  %v1723_v38 = vld [vmem:[#allocation2 + $0x1f0] sm:$0xff] }
 0x1f1   : > { %1593 = vrot.lane.b32.xlu2 %v1516_v49, %s4983_s28 }
 0x1f4   : > { %1601 = vrot.lane.b32.xlu0 %v5470_v63, %s4983_s28  ;;  %v1398_v50 = vpop.permute.xlu2 %1397 }
 0x1f5   : > { %1597 = vrot.lane.b32.xlu1 %v5472_v5, %s4983_s28  ;;  %1482 = vst.msk [vmem:[#allocation3 + $0x60] sm:$0xff] %vm1469_vm11, %v1398_v50  ;;  %v1726_v50 = vld [vmem:[#allocation2 + $0x228] sm:$0xff] }
 0x1f6   : > { %v1388_v45 = vpop.permute.xlu0 %1387 }
 0x1f7   : > { %1477 = vst.msk [vmem:[#allocation3 + $0x38] sm:$0xff] %vm1469_vm11, %v1388_v45  ;;  %v1384_v4 = vpop.permute.xlu1 %1383  ;;  %v1721_v45 = vld [vmem:[#allocation2 + $0x1d0] sm:$0xff] }
 0x1f8   : > { %1475 = vst.msk [vmem:[#allocation3 + $0x28] sm:$0xff] %vm1469_vm11, %v1384_v4  ;;  %v1719_v4 = vld [vmem:[#allocation2 + $0x1b0] sm:$0xff] }
 0x1f9   : > { %1599 = vrot.lane.b32.xlu2 %v1519_v6, %s4983_s28 }
 0x1fc   : > { %1607 = vrot.lane.b32.xlu0 %v5497_v39, %s4983_s28  ;;  %v1404_v5 = vpop.permute.xlu2 %1403 }
 0x1fd   : > { %1603 = vrot.lane.b32.xlu1 %v5499_v41, %s4983_s28  ;;  %1485 = vst.msk [vmem:[#allocation3 + $0x78] sm:$0xff] %vm1469_vm11, %v1404_v5  ;;  %v1890_v5 = vld [vmem:[#allocation2 + $0x51] sm:$0xff] }
 0x1fe   : > { %v1394_v63 = vpop.permute.xlu0 %1393 }
 0x1ff   : > { %1480 = vst.msk [vmem:[#allocation3 + $0x50] sm:$0xff] %vm1469_vm11, %v1394_v63  ;;  %v1390_v60 = vpop.permute.xlu1 %1389 }
 0x200   : > { %1478 = vst.msk [vmem:[#allocation3 + $0x40] sm:$0xff] %vm1469_vm11, %v1390_v60  ;;  %v1722_v60 = vld [vmem:[#allocation2 + $0x1e8] sm:$0xff] }
 0x201   : > { %1605 = vrot.lane.b32.xlu2 %v1522_v12, %s4983_s28 }
 0x204   : > { %1613 = vrot.lane.b32.xlu0 %v5524_v36, %s4983_s28  ;;  %v1410_v41 = vpop.permute.xlu2 %1409 }
 0x205   : > { %1609 = vrot.lane.b32.xlu1 %v5526_v20, %s4983_s28  ;;  %1488 = vst.msk [vmem:[#allocation3 + $0x90] sm:$0xff] %vm1469_vm11, %v1410_v41 }
 0x206   : > { %v1400_v39 = vpop.permute.xlu0 %1399 }
 0x207   : > { %1483 = vst.msk [vmem:[#allocation3 + $0x68] sm:$0xff] %vm1469_vm11, %v1400_v39  ;;  %v1396_v31 = vpop.permute.xlu1 %1395 }
 0x208   : > { %1481 = vst.msk [vmem:[#allocation3 + $0x58] sm:$0xff] %vm1469_vm11, %v1396_v31  ;;  %v1727_v31 = vld [vmem:[#allocation2 + $0x230] sm:$0xff] }
 0x209   : > { %1611 = vrot.lane.b32.xlu2 %v1525_v42, %s4983_s28 }
 0x20c   : > { %1619 = vrot.lane.b32.xlu0 %v5547_v44, %s4983_s28  ;;  %v1416_v20 = vpop.permute.xlu2 %1415 }
 0x20d   : > { %1615 = vrot.lane.b32.xlu1 %v5549_v52, %s4983_s28  ;;  %1491 = vst.msk [vmem:[#allocation3 + $0xa8] sm:$0xff] %vm1469_vm11, %v1416_v20 }
 0x20e   : > { %v1406_v36 = vpop.permute.xlu0 %1405 }
 0x20f   : > { %1486 = vst.msk [vmem:[#allocation3 + $0x80] sm:$0xff] %vm1469_vm11, %v1406_v36  ;;  %v1402_v14 = vpop.permute.xlu1 %1401  ;;  %v1893_v36 = vld [vmem:[#allocation2 + $0x89] sm:$0xff] }
 0x210   : > { %1484 = vst.msk [vmem:[#allocation3 + $0x70] sm:$0xff] %vm1469_vm11, %v1402_v14  ;;  %v1891_v14 = vld [vmem:[#allocation2 + $0x69] sm:$0xff] }
 0x211   : > { %1617 = vrot.lane.b32.xlu2 %v1528_v19, %s4983_s28 }
 0x214   : > { %1625 = vrot.lane.b32.xlu0 %v5685_v7, %s4983_s28  ;;  %v1422_v52 = vpop.permute.xlu2 %1421  ;;  %v1533_v7 = vld [vmem:[#allocation2 + $0x227] sm:$0xff] }
 0x215   : > { %1621 = vrot.lane.b32.xlu1 %v5568_v29, %s4983_s28  ;;  %1494 = vst.msk [vmem:[#allocation3 + $0xc0] sm:$0xff] %vm1469_vm11, %v1422_v52 }
 0x216   : > { %v1412_v44 = vpop.permute.xlu0 %1411 }
 0x217   : > { %1489 = vst.msk [vmem:[#allocation3 + $0x98] sm:$0xff] %vm1469_vm11, %v1412_v44  ;;  %v1408_v58 = vpop.permute.xlu1 %1407  ;;  %v1889_v44 = vld [vmem:[#allocation2 + $0x49] sm:$0xff] }
 0x218   : > { %1487 = vst.msk [vmem:[#allocation3 + $0x88] sm:$0xff] %vm1469_vm11, %v1408_v58 }
 0x219   : > { %1623 = vrot.lane.b32.xlu2 %v5671_v57, %s4983_s28 }
 0x21c   : > { %1760 = vrot.lane.b32.xlu0 %v5697_v26, %s4984_s29  ;;  %v1428_v29 = vpop.permute.xlu2 %1427 }
 0x21d   : > { %1627 = vrot.lane.b32.xlu1 %v1533_v7, %s4983_s28  ;;  %1497 = vst.msk [vmem:[#allocation3 + $0xd8] sm:$0xff] %vm1469_vm11, %v1428_v29  ;;  %v1894_v7 = vld [vmem:[#allocation2 + $0x91] sm:$0xff] }
 0x21e   : > { %v1418_v23 = vpop.permute.xlu0 %1417 }
 0x21f   : > { %1492 = vst.msk [vmem:[#allocation3 + $0xb0] sm:$0xff] %vm1469_vm11, %v1418_v23  ;;  %v1414_v28 = vpop.permute.xlu1 %1413  ;;  %v1892_v23 = vld [vmem:[#allocation2 + $0x71] sm:$0xff] }
 0x220   : > { %1490 = vst.msk [vmem:[#allocation3 + $0xa0] sm:$0xff] %vm1469_vm11, %v1414_v28 }
 0x221   : > { %1629 = vrot.lane.b32.xlu2 %v1534_v30, %s4983_s28  ;;  %v1897_v30 = vld [vmem:[#allocation2 + $0xc9] sm:$0xff] }
 0x224   : > { %1766 = vrot.lane.b32.xlu0 %v5710_v17, %s4984_s29  ;;  %v1434_v57 = vpop.permute.xlu2 %1433  ;;  %v1700_v17 = vld [vmem:[#allocation2 + $0x88] sm:$0xff] }
 0x225   : > { %1762 = vrot.lane.b32.xlu1 %v5676_v56, %s4984_s29  ;;  %1500 = vst.msk [vmem:[#allocation3 + $0xf0] sm:$0xff] %vm1469_vm11, %v1434_v57  ;;  %v1895_v57 = vld [vmem:[#allocation2 + $0xa9] sm:$0xff] }
 0x226   : > { %v1424_v26 = vpop.permute.xlu0 %1423 }
 0x227   : > { %1495 = vst.msk [vmem:[#allocation3 + $0xc8] sm:$0xff] %vm1469_vm11, %v1424_v26  ;;  %v1420_v27 = vpop.permute.xlu1 %1419 }
 0x228   : > { %1493 = vst.msk [vmem:[#allocation3 + $0xb8] sm:$0xff] %vm1469_vm11, %v1420_v27 }
 0x229   : > { %1764 = vrot.lane.b32.xlu2 %v5694_v11, %s4984_s29 }
 0x22c   : > { %1772 = vrot.lane.b32.xlu0 %v5723_v8, %s4984_s29  ;;  %v1570_v56 = vpop.permute.xlu2 %1569  ;;  %v1703_v8 = vld [vmem:[#allocation2 + $0xb0] sm:$0xff] }
 0x22d   : > { %1768 = vrot.lane.b32.xlu1 %v1700_v17, %s4984_s29  ;;  %1665 = vst.msk [vmem:[#allocation3 + $0x8] sm:$0xff] %vm1663_vm12, %v1570_v56  ;;  %v1899_v56 = vld [vmem:[#allocation2 + $0xe9] sm:$0xff] }
 0x22e   : > { %v1430_v2 = vpop.permute.xlu0 %1429 }
 0x22f   : > { %1498 = vst.msk [vmem:[#allocation3 + $0xe0] sm:$0xff] %vm1469_vm11, %v1430_v2  ;;  %v1426_v32 = vpop.permute.xlu1 %1425 }
 0x230   : > { %1496 = vst.msk [vmem:[#allocation3 + $0xd0] sm:$0xff] %vm1469_vm11, %v1426_v32 }
 0x231   : > { %1770 = vrot.lane.b32.xlu2 %v5707_v1, %s4984_s29 }
 0x234   : > { %1778 = vrot.lane.b32.xlu0 %v5736_v37, %s4984_s29  ;;  %v1576_v11 = vpop.permute.xlu2 %1575  ;;  %v1706_v37 = vld [vmem:[#allocation2 + $0xe8] sm:$0xff] }
 0x235   : > { %1774 = vrot.lane.b32.xlu1 %v1703_v8, %s4984_s29  ;;  %1668 = vst.msk [vmem:[#allocation3 + $0x20] sm:$0xff] %vm1663_vm12, %v1576_v11 }
 0x236   : > { %v1436_v34 = vpop.permute.xlu0 %1435 }
 0x237   : > { %1501 = vst.msk [vmem:[#allocation3 + $0xf8] sm:$0xff] %vm1469_vm11, %v1436_v34  ;;  %v1432_v47 = vpop.permute.xlu1 %1431 }
 0x238   : > { %1499 = vst.msk [vmem:[#allocation3 + $0xe8] sm:$0xff] %vm1469_vm11, %v1432_v47 }
 0x239   : > { %1776 = vrot.lane.b32.xlu2 %v5720_v61, %s4984_s29 }
 0x23c   : > { %1784 = vrot.lane.b32.xlu0 %v5749_v18, %s4984_s29  ;;  %v1582_v1 = vpop.permute.xlu2 %1581  ;;  %v1709_v18 = vld [vmem:[#allocation2 + $0x110] sm:$0xff] }
 0x23d   : > { %1780 = vrot.lane.b32.xlu1 %v1706_v37, %s4984_s29  ;;  %1671 = vst.msk [vmem:[#allocation3 + $0x38] sm:$0xff] %vm1663_vm12, %v1582_v1  ;;  %v1898_v1 = vld [vmem:[#allocation2 + $0xd1] sm:$0xff] }
 0x23e   : > { %v1572_v48 = vpop.permute.xlu0 %1571 }
 0x23f   : > { %1666 = vst.msk [vmem:[#allocation3 + $0x10] sm:$0xff] %vm1663_vm12, %v1572_v48  ;;  %v1568_v15 = vpop.permute.xlu1 %1567  ;;  %v1900_v48 = vld [vmem:[#allocation2 + $0xf1] sm:$0xff] }
 0x240   : > { %1664 = vst.msk [vmem:[#allocation3] sm:$0xff] %vm1663_vm12, %v1568_v15 }
 0x241   : > { %1782 = vrot.lane.b32.xlu2 %v5733_v3, %s4984_s29 }
 0x244   : > { %1790 = vrot.lane.b32.xlu0 %v5762_v9, %s4984_s29  ;;  %v1588_v61 = vpop.permute.xlu2 %1587  ;;  %v1712_v9 = vld [vmem:[#allocation2 + $0x148] sm:$0xff] }
 0x245   : > { %1786 = vrot.lane.b32.xlu1 %v1709_v18, %s4984_s29  ;;  %1674 = vst.msk [vmem:[#allocation3 + $0x50] sm:$0xff] %vm1663_vm12, %v1588_v61  ;;  %v1902_v61 = vld [vmem:[#allocation2 + $0x111] sm:$0xff] }
 0x246   : > { %v1578_v51 = vpop.permute.xlu0 %1577 }
 0x247   : > { %1669 = vst.msk [vmem:[#allocation3 + $0x28] sm:$0xff] %vm1663_vm12, %v1578_v51  ;;  %v1574_v53 = vpop.permute.xlu1 %1573 }
 0x248   : > { %1667 = vst.msk [vmem:[#allocation3 + $0x18] sm:$0xff] %vm1663_vm12, %v1574_v53 }
 0x249   : > { %1788 = vrot.lane.b32.xlu2 %v5746_v54, %s4984_s29 }
 0x24c   : > { %1796 = vrot.lane.b32.xlu0 %v5775_v40, %s4984_s29  ;;  %v1594_v3 = vpop.permute.xlu2 %1593  ;;  %v1715_v40 = vld [vmem:[#allocation2 + $0x170] sm:$0xff] }
 0x24d   : > { %1792 = vrot.lane.b32.xlu1 %v1712_v9, %s4984_s29  ;;  %1677 = vst.msk [vmem:[#allocation3 + $0x68] sm:$0xff] %vm1663_vm12, %v1594_v3 }
 0x24e   : > { %v1584_v55 = vpop.permute.xlu0 %1583 }
 0x24f   : > { %1672 = vst.msk [vmem:[#allocation3 + $0x40] sm:$0xff] %vm1663_vm12, %v1584_v55  ;;  %v1580_v24 = vpop.permute.xlu1 %1579 }
 0x250   : > { %1670 = vst.msk [vmem:[#allocation3 + $0x30] sm:$0xff] %vm1663_vm12, %v1580_v24  ;;  %v2118_v24 = vld [vmem:[%s7386_s3 + $0x20] sm:$0xf] }
 0x251   : > { %1794 = vrot.lane.b32.xlu2 %v5759_v22, %s4984_s29  ;;  %4705 = vmatpush.msk.msra.mxu0 %vm2220_vm14, %v2118_v24 }
 0x252   : > { %4810 = vmatpush.msk.msra.mxu3 %vm2220_vm14, %v2118_v24 }
 0x254   : > { %1802 = vrot.lane.b32.xlu0 %v1717_v13, %s4984_s29  ;;  %v1600_v54 = vpop.permute.xlu2 %1599 }
 0x255   : > { %1798 = vrot.lane.b32.xlu1 %v1715_v40, %s4984_s29  ;;  %1680 = vst.msk [vmem:[#allocation3 + $0x80] sm:$0xff] %vm1663_vm12, %v1600_v54  ;;  %v2116_v54 = vld [vmem:[%s7386_s3 + $0x10] sm:$0xff] }
 0x256   : > { %v1590_v10 = vpop.permute.xlu0 %1589 }
 0x257   : > { %1675 = vst.msk [vmem:[#allocation3 + $0x58] sm:$0xff] %vm1663_vm12, %v1590_v10  ;;  %v1586_v25 = vpop.permute.xlu1 %1585  ;;  %v1903_v10 = vld [vmem:[#allocation2 + $0x129] sm:$0xff] }
 0x258   : > { %1673 = vst.msk [vmem:[#allocation3 + $0x48] sm:$0xff] %vm1663_vm12, %v1586_v25 }
 0x259   : > { %1800 = vrot.lane.b32.xlu2 %v5772_v59, %s4984_s29 }
 0x25c   : > { %1808 = vrot.lane.b32.xlu0 %v1720_v62, %s4984_s29  ;;  %v1606_v22 = vpop.permute.xlu2 %1605  ;;  %v2117_v62 = vld [vmem:[%s7386_s3 + $0x18] sm:$0xff] }
 0x25d   : > { %1804 = vrot.lane.b32.xlu1 %v1718_v33, %s4984_s29  ;;  %1683 = vst.msk [vmem:[#allocation3 + $0x98] sm:$0xff] %vm1663_vm12, %v1606_v22  ;;  %2236 = vmatpush.msra.mxu0 %v2117_v62  ;;  %v2115_v33 = vld [vmem:[%s7386_s3 + $0x8] sm:$0xff]  ;;  %v2114_v22 = vld [vmem:[%s7386_s3] sm:$0xff] }
 0x25e   : > { %v1596_v21 = vpop.permute.xlu0 %1595  ;;  %4811 = vmatpush.msra.mxu3 %v2117_v62 }
 0x25f   : > { %1678 = vst.msk [vmem:[#allocation3 + $0x70] sm:$0xff] %vm1663_vm12, %v1596_v21  ;;  %v1592_v35 = vpop.permute.xlu1 %1591  ;;  %2237 = vmatpush.msra.mxu0 %v2116_v54 }
 0x260   : > { %1676 = vst.msk [vmem:[#allocation3 + $0x60] sm:$0xff] %vm1663_vm12, %v1592_v35  ;;  %4812 = vmatpush.msra.mxu3 %v2116_v54 }
 0x261   : > { %1806 = vrot.lane.b32.xlu2 %v1719_v4, %s4984_s29  ;;  %2238 = vmatpush.msra.mxu0 %v2115_v33 }
 0x262   : > { %4813 = vmatpush.msra.mxu3 %v2115_v33 }
 0x263   : > { %2239 = vmatpush.msra.mxu0 %v2114_v22 }
 0x264   : > { %1814 = vrot.lane.b32.xlu0 %v1723_v38, %s4984_s29  ;;  %v1612_v59 = vpop.permute.xlu2 %1611  ;;  %v1901_v38 = vld [vmem:[#allocation2 + $0x109] sm:$0xff]  ;;  %4814 = vmatpush.msra.mxu3 %v2114_v22 }
 0x265   : > { %1810 = vrot.lane.b32.xlu1 %v1721_v45, %s4984_s29  ;;  %1686 = vst.msk [vmem:[#allocation3 + $0xb0] sm:$0xff] %vm1663_vm12, %v1612_v59  ;;  %v1908_v59 = vld [vmem:[#allocation2 + $0x171] sm:$0xff]  ;;  %v1919_v22 = vld [vmem:[#allocation2 + $0x229] sm:$0xff] }
 0x266   : > { %v1602_v49 = vpop.permute.xlu0 %1601 }
 0x267   : > { %1681 = vst.msk [vmem:[#allocation3 + $0x88] sm:$0xff] %vm1663_vm12, %v1602_v49  ;;  %v1598_v63 = vpop.permute.xlu1 %1597  ;;  %v1905_v49 = vld [vmem:[#allocation2 + $0x149] sm:$0xff] }
 0x268   : > { %1679 = vst.msk [vmem:[#allocation3 + $0x78] sm:$0xff] %vm1663_vm12, %v1598_v63 }
 0x269   : > { %1812 = vrot.lane.b32.xlu2 %v1722_v60, %s4984_s29 }
 0x26c   : > { %1820 = vrot.lane.b32.xlu0 %v1726_v50, %s4984_s29  ;;  %v1618_v12 = vpop.permute.xlu2 %1617 }
 0x26d   : > { %1816 = vrot.lane.b32.xlu1 %v5788_v43, %s4984_s29  ;;  %1689 = vst.msk [vmem:[#allocation3 + $0xc8] sm:$0xff] %vm1663_vm12, %v1618_v12  ;;  %v1911_v12 = vld [vmem:[#allocation2 + $0x1a9] sm:$0xff] }
 0x26e   : > { %v1608_v6 = vpop.permute.xlu0 %1607 }
 0x26f   : > { %1684 = vst.msk [vmem:[#allocation3 + $0xa0] sm:$0xff] %vm1663_vm12, %v1608_v6  ;;  %v1604_v39 = vpop.permute.xlu1 %1603  ;;  %v1906_v6 = vld [vmem:[#allocation2 + $0x151] sm:$0xff] }
 0x270   : > { %1682 = vst.msk [vmem:[#allocation3 + $0x90] sm:$0xff] %vm1663_vm12, %v1604_v39 }
 0x271   : > { %1818 = vrot.lane.b32.xlu2 %v5805_v46, %s4984_s29  ;;  %v1896_v46 = vld [vmem:[#allocation2 + $0xb1] sm:$0xff] }
 0x274   : > { %1955 = vrot.lane.b32.xlu0 %v1890_v5, %s4985_s10  ;;  %v1624_v42 = vpop.permute.xlu2 %1623 }
 0x275   : > { %1822 = vrot.lane.b32.xlu1 %v1727_v31, %s4984_s29  ;;  %1692 = vst.msk [vmem:[#allocation3 + $0xe0] sm:$0xff] %vm1663_vm12, %v1624_v42  ;;  %v1904_v31 = vld [vmem:[#allocation2 + $0x131] sm:$0xff] }
 0x276   : > { %v1614_v41 = vpop.permute.xlu0 %1613 }
 0x277   : > { %1687 = vst.msk [vmem:[#allocation3 + $0xb8] sm:$0xff] %vm1663_vm12, %v1614_v41  ;;  %v1610_v43 = vpop.permute.xlu1 %1609  ;;  %v1909_v41 = vld [vmem:[#allocation2 + $0x189] sm:$0xff] }
 0x278   : > { %1685 = vst.msk [vmem:[#allocation3 + $0xa8] sm:$0xff] %vm1663_vm12, %v1610_v43 }
 0x279   : > { %1953 = vrot.lane.b32.xlu2 %v1889_v44, %s4985_s10  ;;  %v1912_v44 = vld [vmem:[#allocation2 + $0x1b1] sm:$0xff] }
 0x27c   : > { %1961 = vrot.lane.b32.xlu0 %v1893_v36, %s4985_s10  ;;  %v1630_v58 = vpop.permute.xlu2 %1629 }
 0x27d   : > { %1957 = vrot.lane.b32.xlu1 %v1891_v14, %s4985_s10  ;;  %1695 = vst.msk [vmem:[#allocation3 + $0xf8] sm:$0xff] %vm1663_vm12, %v1630_v58  ;;  %v1914_v14 = vld [vmem:[#allocation2 + $0x1d1] sm:$0xff] }
 0x27e   : > { %v1620_v20 = vpop.permute.xlu0 %1619 }
 0x27f   : > { %1690 = vst.msk [vmem:[#allocation3 + $0xd0] sm:$0xff] %vm1663_vm12, %v1620_v20  ;;  %v1616_v19 = vpop.permute.xlu1 %1615  ;;  %v1907_v20 = vld [vmem:[#allocation2 + $0x169] sm:$0xff] }
 0x280   : > { %1688 = vst.msk [vmem:[#allocation3 + $0xc0] sm:$0xff] %vm1663_vm12, %v1616_v19 }
 0x281   : > { %1959 = vrot.lane.b32.xlu2 %v1892_v23, %s4985_s10  ;;  %v1915_v23 = vld [vmem:[#allocation2 + $0x1e9] sm:$0xff] }
 0x284   : > { %1967 = vrot.lane.b32.xlu0 %v1896_v46, %s4985_s10  ;;  %v1765_v29 = vpop.permute.xlu2 %1764 }
 0x285   : > { %1963 = vrot.lane.b32.xlu1 %v1894_v7, %s4985_s10  ;;  %1859 = vst.msk [vmem:[#allocation3 + $0x10] sm:$0xff] %vm1856_vm13, %v1765_v29  ;;  %v1910_v7 = vld [vmem:[#allocation2 + $0x191] sm:$0xff] }
 0x286   : > { %v1626_v52 = vpop.permute.xlu0 %1625 }
 0x287   : > { %1693 = vst.msk [vmem:[#allocation3 + $0xe8] sm:$0xff] %vm1663_vm12, %v1626_v52  ;;  %v1622_v28 = vpop.permute.xlu1 %1621 }
 0x288   : > { %1691 = vst.msk [vmem:[#allocation3 + $0xd8] sm:$0xff] %vm1663_vm12, %v1622_v28 }
 0x289   : > { %1965 = vrot.lane.b32.xlu2 %v1895_v57, %s4985_s10 }
 0x28c   : > { %v1771_v17 = vpop.permute.xlu2 %1770  ;;  %1973 = vrot.lane.b32.xlu0 %v1899_v56, %s4985_s10 }
 0x28d   : > { %1969 = vrot.lane.b32.xlu1 %v1897_v30, %s4985_s10  ;;  %1862 = vst.msk [vmem:[#allocation3 + $0x28] sm:$0xff] %vm1856_vm13, %v1771_v17 }
 0x28e   : > { %v1761_v26 = vpop.permute.xlu0 %1760 }
 0x28f   : > { %1857 = vst.msk [vmem:[#allocation3] sm:$0xff] %vm1856_vm13, %v1761_v26  ;;  %v1628_v27 = vpop.permute.xlu1 %1627 }
 0x290   : > { %1694 = vst.msk [vmem:[#allocation3 + $0xf0] sm:$0xff] %vm1663_vm12, %v1628_v27  ;;  %v1913_v27 = vld [vmem:[#allocation2 + $0x1c9] sm:$0xff] }
 0x291   : > { %1971 = vrot.lane.b32.xlu2 %v1898_v1, %s4985_s10 }
 0x294   : > { %v1777_v8 = vpop.permute.xlu2 %1776  ;;  %1979 = vrot.lane.b32.xlu0 %v1902_v61, %s4985_s10 }
 0x295   : > { %1865 = vst.msk [vmem:[#allocation3 + $0x40] sm:$0xff] %vm1856_vm13, %v1777_v8  ;;  %1975 = vrot.lane.b32.xlu1 %v1900_v48, %s4985_s10 }
 0x296   : > { %v1767_v2 = vpop.permute.xlu0 %1766 }
 0x297   : > { %1860 = vst.msk [vmem:[#allocation3 + $0x18] sm:$0xff] %vm1856_vm13, %v1767_v2  ;;  %v1763_v32 = vpop.permute.xlu1 %1762 }
 0x298   : > { %1858 = vst.msk [vmem:[#allocation3 + $0x8] sm:$0xff] %vm1856_vm13, %v1763_v32 }
 0x299   : > { %1977 = vrot.lane.b32.xlu2 %v1901_v38, %s4985_s10 }
 0x29c   : > { %v1783_v11 = vpop.permute.xlu2 %1782  ;;  %1985 = vrot.lane.b32.xlu0 %v1905_v49, %s4985_s10 }
 0x29d   : > { %1868 = vst.msk [vmem:[#allocation3 + $0x58] sm:$0xff] %vm1856_vm13, %v1783_v11  ;;  %1981 = vrot.lane.b32.xlu1 %v1903_v10, %s4985_s10 }
 0x29e   : > { %v1773_v34 = vpop.permute.xlu0 %1772 }
 0x29f   : > { %1863 = vst.msk [vmem:[#allocation3 + $0x30] sm:$0xff] %vm1856_vm13, %v1773_v34  ;;  %v1769_v47 = vpop.permute.xlu1 %1768 }
 0x2a0   : > { %1861 = vst.msk [vmem:[#allocation3 + $0x20] sm:$0xff] %vm1856_vm13, %v1769_v47 }
 0x2a1   : > { %1983 = vrot.lane.b32.xlu2 %v1904_v31, %s4985_s10 }
 0x2a4   : > { %v1789_v18 = vpop.permute.xlu2 %1788  ;;  %1991 = vrot.lane.b32.xlu0 %v1908_v59, %s4985_s10  ;;  %v6212_v59 = vld [vmem:[%s263_s13] ss:$0 sm:$0xff]  ;;  %s4987_s13 = smov 48  }
 0x2a5   : > { %1871 = vst.msk [vmem:[#allocation3 + $0x70] sm:$0xff] %vm1856_vm13, %v1789_v18  ;;  %1987 = vrot.lane.b32.xlu1 %v1906_v6, %s4985_s10 }
 0x2a6   : > { %v1779_v37 = vpop.permute.xlu0 %1778 }
 0x2a7   : > { %1866 = vst.msk [vmem:[#allocation3 + $0x48] sm:$0xff] %vm1856_vm13, %v1779_v37  ;;  %v1775_v15 = vpop.permute.xlu1 %1774 }
 0x2a8   : > { %1864 = vst.msk [vmem:[#allocation3 + $0x38] sm:$0xff] %vm1856_vm13, %v1775_v15 }
 0x2a9   : > { %1989 = vrot.lane.b32.xlu2 %v1907_v20, %s4985_s10 }
 0x2ac   : > { %v1795_v9 = vpop.permute.xlu2 %1794  ;;  %1997 = vrot.lane.b32.xlu0 %v1911_v12, %s4985_s10 }
 0x2ad   : > { %1874 = vst.msk [vmem:[#allocation3 + $0x88] sm:$0xff] %vm1856_vm13, %v1795_v9  ;;  %1993 = vrot.lane.b32.xlu1 %v1909_v41, %s4985_s10 }
 0x2ae   : > { %v1785_v51 = vpop.permute.xlu0 %1784 }
 0x2af   : > { %1869 = vst.msk [vmem:[#allocation3 + $0x60] sm:$0xff] %vm1856_vm13, %v1785_v51  ;;  %v1781_v53 = vpop.permute.xlu1 %1780 }
 0x2b0   : > { %1867 = vst.msk [vmem:[#allocation3 + $0x50] sm:$0xff] %vm1856_vm13, %v1781_v53 }
 0x2b1   : > { %1995 = vrot.lane.b32.xlu2 %v1910_v7, %s4985_s10 }
 0x2b4   : > { %v1801_v3 = vpop.permute.xlu2 %1800  ;;  %2003 = vrot.lane.b32.xlu0 %v1914_v14, %s4985_s10 }
 0x2b5   : > { %1877 = vst.msk [vmem:[#allocation3 + $0xa0] sm:$0xff] %vm1856_vm13, %v1801_v3  ;;  %1999 = vrot.lane.b32.xlu1 %v1912_v44, %s4985_s10 }
 0x2b6   : > { %v1791_v55 = vpop.permute.xlu0 %1790 }
 0x2b7   : > { %1872 = vst.msk [vmem:[#allocation3 + $0x78] sm:$0xff] %vm1856_vm13, %v1791_v55  ;;  %v1787_v13 = vpop.permute.xlu1 %1786 }
 0x2b8   : > { %1870 = vst.msk [vmem:[#allocation3 + $0x68] sm:$0xff] %vm1856_vm13, %v1787_v13 }
 0x2b9   : > { %2001 = vrot.lane.b32.xlu2 %v1913_v27, %s4985_s10 }
 0x2bc   : > { %v1807_v21 = vpop.permute.xlu2 %1806  ;;  %2009 = vrot.lane.b32.xlu0 %v5908_v16, %s4985_s10 }
 0x2bd   : > { %1880 = vst.msk [vmem:[#allocation3 + $0xb8] sm:$0xff] %vm1856_vm13, %v1807_v21  ;;  %2005 = vrot.lane.b32.xlu1 %v1915_v23, %s4985_s10 }
 0x2be   : > { %v1797_v40 = vpop.permute.xlu0 %1796 }
 0x2bf   : > { %1875 = vst.msk [vmem:[#allocation3 + $0x90] sm:$0xff] %vm1856_vm13, %v1797_v40  ;;  %v1793_v25 = vpop.permute.xlu1 %1792 }
 0x2c0   : > { %1873 = vst.msk [vmem:[#allocation3 + $0x80] sm:$0xff] %vm1856_vm13, %v1793_v25  ;;  %v1920_v25 = vld [vmem:[#allocation2 + $0x231] sm:$0xff] }
 0x2c4   : > { %v1813_v4 = vpop.permute.xlu2 %1812  ;;  %2015 = vrot.lane.b32.xlu0 %v1920_v25, %s4985_s10 }
 0x2c5   : > { %1883 = vst.msk [vmem:[#allocation3 + $0xd0] sm:$0xff] %vm1856_vm13, %v1813_v4  ;;  %2011 = vrot.lane.b32.xlu1 %v5891_v0, %s4985_s10  ;;  %v1916_v0 = vld [vmem:[#allocation2 + $0x1f1] sm:$0xff] }
 0x2c6   : > { %v1803_v35 = vpop.permute.xlu0 %1802  ;;  %2007 = vrot.lane.b32.xlu2 %v1916_v0, %s4985_s10 }
 0x2c7   : > { %1878 = vst.msk [vmem:[#allocation3 + $0xa8] sm:$0xff] %vm1856_vm13, %v1803_v35  ;;  %v1799_v45 = vpop.permute.xlu1 %1798  ;;  %v2529_v35 = vld [vmem:[#allocation2 + $0x8] sm:$0xff] }
 0x2c8   : > { %1876 = vst.msk [vmem:[#allocation3 + $0x98] sm:$0xff] %vm1856_vm13, %v1799_v45 }
 0x2cc   : > { %v1819_v60 = vpop.permute.xlu2 %1818 }
 0x2cd   : > { %1886 = vst.msk [vmem:[#allocation3 + $0xe8] sm:$0xff] %vm1856_vm13, %v1819_v60  ;;  %2593 = vrot.lane.b32.xlu1 %v2529_v35, %s4979_s18 }
 0x2ce   : > { %v1809_v50 = vpop.permute.xlu0 %1808  ;;  %2013 = vrot.lane.b32.xlu2 %v1919_v22, %s4985_s10 }
 0x2cf   : > { %1881 = vst.msk [vmem:[#allocation3 + $0xc0] sm:$0xff] %vm1856_vm13, %v1809_v50  ;;  %v1805_v63 = vpop.permute.xlu1 %1804 }
 0x2d0   : > { %1879 = vst.msk [vmem:[#allocation3 + $0xb0] sm:$0xff] %vm1856_vm13, %v1805_v63  ;;  %v2530_v63 = vld [vmem:[#allocation2 + $0x10] sm:$0xff] }
 0x2d4   : > { %v1954_v36 = vpop.permute.xlu2 %1953 }
 0x2d5   : > { %2050 = vst.msk [vmem:[#allocation3] sm:$0xff] %vm2049_vm15, %v1954_v36 }
 0x2d6   : > { %v1815_v5 = vpop.permute.xlu0 %1814  ;;  %2595 = vrot.lane.b32.xlu2 %v2530_v63, %s4979_s18 }
 0x2d7   : > { %1884 = vst.msk [vmem:[#allocation3 + $0xd8] sm:$0xff] %vm1856_vm13, %v1815_v5  ;;  %v1811_v39 = vpop.permute.xlu1 %1810 }
 0x2d8   : > { %1882 = vst.msk [vmem:[#allocation3 + $0xc8] sm:$0xff] %vm1856_vm13, %v1811_v39 }
 0x2dc   : > { %v2082_v19 = vld [vmem:[#allocation3] sm:$0xff]  ;;  %v1960_v46 = vpop.permute.xlu2 %1959 }
 0x2dd   : > { %4706 = vmatmul.msk.f32.vlgmr.msra.gmra.mxu0 %vm2123_vm2, %v2082_v19  ;;  %2053 = vst.msk [vmem:[#allocation3 + $0x18] sm:$0xff] %vm2049_vm15, %v1960_v46 }
 0x2de   : > { %v1821_v43 = vpop.permute.xlu0 %1820 }
 0x2df   : > { %1887 = vst.msk [vmem:[#allocation3 + $0xf0] sm:$0xff] %vm1856_vm13, %v1821_v43  ;;  %v1817_v42 = vpop.permute.xlu1 %1816 }
 0x2e0   : > { %1885 = vst.msk [vmem:[#allocation3 + $0xe0] sm:$0xff] %vm1856_vm13, %v1817_v42 }
 0x2e4   : > { %v1966_v26 = vpop.permute.xlu2 %1965  ;;  %v2085_v2 = vld [vmem:[#allocation3 + $0x18] sm:$0xff] }
 0x2e5   : > { %2056 = vst.msk [vmem:[#allocation3 + $0x30] sm:$0xff] %vm2049_vm15, %v1966_v26 }
 0x2e6   : > { %v1956_v58 = vpop.permute.xlu0 %1955 }
 0x2e7   : > { %2051 = vst.msk [vmem:[#allocation3 + $0x8] sm:$0xff] %vm2049_vm15, %v1956_v58  ;;  %v1823_v52 = vpop.permute.xlu1 %1822 }
 0x2e8   : > { %1888 = vst.msk [vmem:[#allocation3 + $0xf8] sm:$0xff] %vm1856_vm13, %v1823_v52  ;;  %vm2689_vm13 = vcmask 130112  }
 0x2ec   : > { %v1972_v56 = vpop.permute.xlu2 %1971  ;;  %v2088_v11 = vld [vmem:[#allocation3 + $0x30] sm:$0xff] }
 0x2ed   : > { %2059 = vst.msk [vmem:[#allocation3 + $0x48] sm:$0xff] %vm2049_vm15, %v1972_v56 }
 0x2ee   : > { %v2083_v28 = vld [vmem:[#allocation3 + $0x8] sm:$0xff]  ;;  %v1962_v29 = vpop.permute.xlu0 %1961 }
 0x2ef   : > { %4707 = vmatmul.msk.f32.gmra.mxu0 %vm2123_vm2, %v2083_v28  ;;  %2054 = vst.msk [vmem:[#allocation3 + $0x20] sm:$0xff] %vm2049_vm15, %v1962_v29  ;;  %v1958_v30 = vpop.permute.xlu1 %1957 }
 0x2f0   : > { %2052 = vst.msk [vmem:[#allocation3 + $0x10] sm:$0xff] %vm2049_vm15, %v1958_v30 }
 0x2f4   : > { %v1978_v48 = vpop.permute.xlu2 %1977  ;;  %v2091_v51 = vld [vmem:[#allocation3 + $0x48] sm:$0xff] }
 0x2f5   : > { %2062 = vst.msk [vmem:[#allocation3 + $0x60] sm:$0xff] %vm2049_vm15, %v1978_v48 }
 0x2f6   : > { %v1968_v16 = vpop.permute.xlu0 %1967  ;;  %v2086_v8 = vld [vmem:[#allocation3 + $0x20] sm:$0xff] }
 0x2f7   : > { %2057 = vst.msk [vmem:[#allocation3 + $0x38] sm:$0xff] %vm2049_vm15, %v1968_v16  ;;  %v2084_v57 = vld [vmem:[#allocation3 + $0x10] sm:$0xff]  ;;  %v1964_v17 = vpop.permute.xlu1 %1963 }
 0x2f8   : > { %4708 = vmatmul.msk.f32.gmra.mxu0 %vm2123_vm2, %v2084_v57  ;;  %2055 = vst.msk [vmem:[#allocation3 + $0x28] sm:$0xff] %vm2049_vm15, %v1964_v17 }
 0x2fc   : > { %v1984_v61 = vpop.permute.xlu2 %1983  ;;  %v2094_v3 = vld [vmem:[#allocation3 + $0x60] sm:$0xff] }
 0x2fd   : > { %2065 = vst.msk [vmem:[#allocation3 + $0x78] sm:$0xff] %vm2049_vm15, %v1984_v61 }
 0x2fe   : > { %v1974_v34 = vpop.permute.xlu0 %1973  ;;  %v2089_v15 = vld [vmem:[#allocation3 + $0x38] sm:$0xff] }
 0x2ff   : > { %v1970_v32 = vpop.permute.xlu1 %1969  ;;  %2060 = vst.msk [vmem:[#allocation3 + $0x50] sm:$0xff] %vm2049_vm15, %v1974_v34  ;;  %v2087_v47 = vld [vmem:[#allocation3 + $0x28] sm:$0xff] }
 0x300   : > { %4709 = vmatmul.msk.f32.gmra.mxu0 %vm2123_vm2, %v2085_v2  ;;  %2058 = vst.msk [vmem:[#allocation3 + $0x40] sm:$0xff] %vm2049_vm15, %v1970_v32 }
 0x304   : > { %v1990_v13 = vpop.permute.xlu2 %1989  ;;  %v2097_v6 = vld [vmem:[#allocation3 + $0x78] sm:$0xff] }
 0x305   : > { %2068 = vst.msk [vmem:[#allocation3 + $0x90] sm:$0xff] %vm2049_vm15, %v1990_v13 }
 0x306   : > { %v1980_v1 = vpop.permute.xlu0 %1979  ;;  %v2092_v9 = vld [vmem:[#allocation3 + $0x50] sm:$0xff] }
 0x307   : > { %v1976_v37 = vpop.permute.xlu1 %1975  ;;  %2063 = vst.msk [vmem:[#allocation3 + $0x68] sm:$0xff] %vm2049_vm15, %v1980_v1  ;;  %v2090_v18 = vld [vmem:[#allocation3 + $0x40] sm:$0xff] }
 0x308   : > { %4710 = vmatmul.msk.f32.gmra.mxu0 %vm2123_vm2, %v2086_v8  ;;  %2061 = vst.msk [vmem:[#allocation3 + $0x58] sm:$0xff] %vm2049_vm15, %v1976_v37 }
 0x30c   : > { %v1996_v10 = vpop.permute.xlu2 %1995  ;;  %v2100_v27 = vld [vmem:[#allocation3 + $0x90] sm:$0xff] }
 0x30d   : > { %2071 = vst.msk [vmem:[#allocation3 + $0xa8] sm:$0xff] %vm2049_vm15, %v1996_v10 }
 0x30e   : > { %v1986_v55 = vpop.permute.xlu0 %1985  ;;  %v2095_v54 = vld [vmem:[#allocation3 + $0x68] sm:$0xff] }
 0x30f   : > { %v1982_v53 = vpop.permute.xlu1 %1981  ;;  %2066 = vst.msk [vmem:[#allocation3 + $0x80] sm:$0xff] %vm2049_vm15, %v1986_v55  ;;  %v2093_v24 = vld [vmem:[#allocation3 + $0x58] sm:$0xff] }
 0x310   : > { %4711 = vmatmul.msk.f32.gmra.mxu0 %vm2123_vm2, %v2087_v47  ;;  %2064 = vst.msk [vmem:[#allocation3 + $0x70] sm:$0xff] %vm2049_vm15, %v1982_v53 }
 0x314   : > { %v2002_v21 = vpop.permute.xlu2 %2001  ;;  %v2103_v13 = vld [vmem:[#allocation3 + $0xa8] sm:$0xff] }
 0x315   : > { %2074 = vst.msk [vmem:[#allocation3 + $0xc0] sm:$0xff] %vm2049_vm15, %v2002_v21 }
 0x316   : > { %v1992_v40 = vpop.permute.xlu0 %1991  ;;  %v2098_v36 = vld [vmem:[#allocation3 + $0x80] sm:$0xff] }
 0x317   : > { %2069 = vst.msk [vmem:[#allocation3 + $0x98] sm:$0xff] %vm2049_vm15, %v1992_v40  ;;  %v1988_v62 = vpop.permute.xlu1 %1987  ;;  %v2096_v45 = vld [vmem:[#allocation3 + $0x70] sm:$0xff] }
 0x318   : > { %4712 = vmatmul.msk.f32.gmra.mxu0 %vm2123_vm2, %v2088_v11  ;;  %2067 = vst.msk [vmem:[#allocation3 + $0x88] sm:$0xff] %vm2049_vm15, %v1988_v62 }
 0x31c   : > { %v2106_v50 = vld [vmem:[#allocation3 + $0xc0] sm:$0xff] }
 0x31d   : > { %4730 = vmatmul.msk.f32.vlgmr.msra.gmra.mxu3 %vm2123_vm2, %v2106_v50 }
 0x31e   : > { %v1998_v33 = vpop.permute.xlu0 %1997  ;;  %v2101_v8 = vld [vmem:[#allocation3 + $0x98] sm:$0xff] }
 0x31f   : > { %2072 = vst.msk [vmem:[#allocation3 + $0xb0] sm:$0xff] %vm2049_vm15, %v1998_v33  ;;  %v1994_v38 = vpop.permute.xlu1 %1993  ;;  %v2099_v52 = vld [vmem:[#allocation3 + $0x88] sm:$0xff] }
 0x320   : > { %4713 = vmatmul.msk.f32.gmra.mxu0 %vm2123_vm2, %v2089_v15  ;;  %2070 = vst.msk [vmem:[#allocation3 + $0xa0] sm:$0xff] %vm2049_vm15, %v1994_v38  ;;  %v2008_v43 = vpop.permute.xlu2 %2007 }
 0x321   : > { %2077 = vst.msk [vmem:[#allocation3 + $0xd8] sm:$0xff] %vm2049_vm15, %v2008_v43 }
 0x326   : > { %v2004_v49 = vpop.permute.xlu0 %2003 }
 0x327   : > { %v2000_v4 = vpop.permute.xlu1 %1999  ;;  %2075 = vst.msk [vmem:[#allocation3 + $0xc8] sm:$0xff] %vm2049_vm15, %v2004_v49  ;;  %v2102_v1 = vld [vmem:[#allocation3 + $0xa0] sm:$0xff] }
 0x328   : > { %4714 = vmatmul.msk.f32.gmra.mxu0 %vm2123_vm2, %v2090_v18  ;;  %2073 = vst.msk [vmem:[#allocation3 + $0xb8] sm:$0xff] %vm2049_vm15, %v2000_v4  ;;  %v2109_v23 = vld [vmem:[#allocation3 + $0xd8] sm:$0xff] }
 0x32e   : > { %v2107_v39 = vld [vmem:[#allocation3 + $0xc8] sm:$0xff]  ;;  %v2010_v7 = vpop.permute.xlu0 %2009 }
 0x32f   : > { %v2006_v5 = vpop.permute.xlu1 %2005  ;;  %4731 = vmatmul.msk.f32.gmra.mxu3 %vm2123_vm2, %v2107_v39  ;;  %2078 = vst.msk [vmem:[#allocation3 + $0xe0] sm:$0xff] %vm2049_vm15, %v2010_v7  ;;  %v2105_v49 = vld [vmem:[#allocation3 + $0xb8] sm:$0xff] }
 0x330   : > { %4715 = vmatmul.msk.f32.gmra.mxu0 %vm2123_vm2, %v2091_v51  ;;  %2076 = vst.msk [vmem:[#allocation3 + $0xd0] sm:$0xff] %vm2049_vm15, %v2006_v5 }
 0x336   : > { %v2110_v57 = vld [vmem:[#allocation3 + $0xe0] sm:$0xff] }
 0x337   : > { %v2108_v42 = vld [vmem:[#allocation3 + $0xd0] sm:$0xff]  ;;  %v2012_v16 = vpop.permute.xlu1 %2011 }
 0x338   : > { %4716 = vmatmul.msk.f32.gmra.mxu0 %vm2123_vm2, %v2092_v9  ;;  %4732 = vmatmul.msk.f32.gmra.mxu3 %vm2123_vm2, %v2108_v42  ;;  %2079 = vst.msk [vmem:[#allocation3 + $0xe8] sm:$0xff] %vm2049_vm15, %v2012_v16  ;;  %v2016_v16 = vpop.permute.xlu0 %2015 }
 0x339   : > { %2081 = vst.msk [vmem:[#allocation3 + $0xf8] sm:$0xff] %vm2049_vm15, %v2016_v16 }
 0x33f   : > { %v2111_v0 = vld [vmem:[#allocation3 + $0xe8] sm:$0xff] }
 0x340   : > { %4717 = vmatmul.msk.f32.gmra.mxu0 %vm2123_vm2, %v2093_v24  ;;  %4733 = vmatmul.msk.f32.gmra.mxu3 %vm2123_vm2, %v2109_v23 }
 0x348   : > { %4718 = vmatmul.msk.f32.gmra.mxu0 %vm2123_vm2, %v2094_v3  ;;  %4734 = vmatmul.msk.f32.gmra.mxu3 %vm2123_vm2, %v2110_v57 }
 0x350   : > { %4719 = vmatmul.msk.f32.gmra.mxu0 %vm2123_vm2, %v2095_v54  ;;  %4735 = vmatmul.msk.f32.gmra.mxu3 %vm2123_vm2, %v2111_v0  ;;  %v2104_v54 = vld [vmem:[#allocation3 + $0xb0] sm:$0xff] }
 0x358   : > { %4720 = vmatmul.msk.f32.gmra.mxu0 %vm2123_vm2, %v2096_v45 }
 0x35a   : > { %v2241_v60 = vpop.f32.mrf.mxu0 }
 0x35b   : > { %v2242_v12 = vadd.f32 %v6212_v59, %v2241_v60 }
 0x35d   : > { %vm2337_vm3 = vcmp.ge.f32.partialorder %v2242_v12, 0.0  ;;  %v2369_v31 = vmul.f32 0.2, %v2242_v12 }
 0x35f   : > { %v2401_v41 = vsel %vm2337_vm3, %v2242_v12, %v2369_v31 }
 0x360   : > { %4721 = vmatmul.msk.f32.gmra.mxu0 %vm2123_vm2, %v2097_v6  ;;  %2433 = vst.msk [vmem:[#allocation2 + $0x28] sm:$0xff] %vm264_vm0, %v2401_v41 }
 0x367   : > { %v2531_v19 = vld [vmem:[#allocation2 + $0x28] sm:$0xff] }
 0x368   : > { %4722 = vmatmul.msk.f32.gmra.mxu0 %vm2123_vm2, %v2098_v36  ;;  %v6223_v46 = vld [vmem:[#allocation2 + $0x27] sm:$0xff]  ;;  %2597 = vrot.lane.b32.xlu0 %v2531_v19, %s4979_s18  ;;  %v2014_v36 = vpop.permute.xlu2 %2013 }
 0x369   : > { %2499 = vst.msk [vmem:[#allocation3 + $0x10] sm:$0xff] %vm264_vm0, %v6223_v46 }
 0x36a   : > { %2080 = vst.msk [vmem:[#allocation3 + $0xf0] sm:$0xff] %vm2049_vm15, %v2014_v36 }
 0x36c   : > { %v2244_v14 = vpop.f32.mrf.mxu0 }
 0x36d   : > { %v2245_v20 = vadd.f32 %v6212_v59, %v2244_v14 }
 0x36f   : > { %vm2338_vm4 = vcmp.ge.f32.partialorder %v2245_v20, 0.0  ;;  %v2370_v44 = vmul.f32 0.2, %v2245_v20 }
 0x370   : > { %4723 = vmatmul.msk.f32.gmra.mxu0 %vm2123_vm2, %v2099_v52  ;;  %v2596_v7 = vpop.permute.xlu2 %2595 }
 0x371   : > { %v2402_v58 = vsel %vm2338_vm4, %v2245_v20, %v2370_v44 }
 0x372   : > { %2434 = vst.msk [vmem:[#allocation2 + $0x30] sm:$0xff] %vm264_vm0, %v2402_v58  ;;  %v2466_v58 = vld [vmem:[#allocation2 + $0xf] sm:$0xff] }
 0x373   : > { %2498 = vst.msk [vmem:[#allocation3 + $0x8] sm:$0xff] %vm264_vm0, %v2466_v58 }
 0x374   : > { %2691 = vst.msk [vmem:[#allocation3 + $0x8] sm:$0xff] %vm2689_vm13, %v2596_v7 }
 0x375   : > { %v2247_v28 = vpop.f32.mrf.mxu0 }
 0x376   : > { %v2248_v30 = vadd.f32 %v6212_v59, %v2247_v28 }
 0x378   : > { %vm2339_vm5 = vcmp.ge.f32.partialorder %v2248_v30, 0.0  ;;  %v2371_v17 = vmul.f32 0.2, %v2248_v30  ;;  %4724 = vmatmul.msk.f32.gmra.mxu0 %vm2123_vm2, %v2100_v27 }
 0x379   : > { %v2532_v29 = vld [vmem:[#allocation2 + $0x30] sm:$0xff] }
 0x37a   : > { %v6232_v26 = vld [vmem:[#allocation2 + $0x2f] sm:$0xff]  ;;  %2599 = vrot.lane.b32.xlu1 %v2532_v29, %s4979_s18  ;;  %v2403_v2 = vsel %vm2339_vm5, %v2248_v30, %v2371_v17 }
 0x37b   : > { %2500 = vst.msk [vmem:[#allocation3 + $0x18] sm:$0xff] %vm264_vm0, %v6232_v26 }
 0x37c   : > { %2435 = vst.msk [vmem:[#allocation2 + $0x48] sm:$0xff] %vm264_vm0, %v2403_v2 }
 0x37d   : > { %v2250_v32 = vpop.f32.mrf.mxu0 }
 0x37e   : > { %v2251_v56 = vadd.f32 %v6212_v59, %v2250_v32 }
 0x380   : > { %vm2340_vm6 = vcmp.ge.f32.partialorder %v2251_v56, 0.0  ;;  %v2372_v34 = vmul.f32 0.2, %v2251_v56  ;;  %4725 = vmatmul.msk.f32.gmra.mxu0 %vm2123_vm2, %v2101_v8  ;;  %v2465_v8 = vld [vmem:[#allocation2 + $0x7] sm:$0xff] }
 0x381   : > { %2497 = vst.msk [vmem:[#allocation3] sm:$0xff] %vm264_vm0, %v2465_v8 }
 0x382   : > { %v2404_v47 = vsel %vm2340_vm6, %v2251_v56, %v2372_v34  ;;  %v2594_v34 = vpop.permute.xlu1 %2593 }
 0x383   : > { %v2533_v11 = vld [vmem:[#allocation2 + $0x48] sm:$0xff]  ;;  %2436 = vst.msk [vmem:[#allocation2 + $0x50] sm:$0xff] %vm264_vm0, %v2404_v47 }
 0x384   : > { %v6245_v37 = vld [vmem:[#allocation2 + $0x47] sm:$0xff]  ;;  %2601 = vrot.lane.b32.xlu2 %v2533_v11, %s4979_s18  ;;  %2690 = vst.msk [vmem:[#allocation3] sm:$0xff] %vm2689_vm13, %v2594_v34 }
 0x385   : > { %2501 = vst.msk [vmem:[#allocation3 + $0x20] sm:$0xff] %vm264_vm0, %v6245_v37  ;;  %v2253_v48 = vpop.f32.mrf.mxu0 }
 0x386   : > { %v2254_v15 = vadd.f32 %v6212_v59, %v2253_v48 }
 0x388   : > { %vm2341_vm7 = vcmp.ge.f32.partialorder %v2254_v15, 0.0  ;;  %v2373_v18 = vmul.f32 0.2, %v2254_v15  ;;  %4726 = vmatmul.msk.f32.gmra.mxu0 %vm2123_vm2, %v2102_v1 }
 0x38a   : > { %v2405_v51 = vsel %vm2341_vm7, %v2254_v15, %v2373_v18  ;;  %v2534_v53 = vld [vmem:[#allocation2 + $0x50] sm:$0xff] }
 0x38b   : > { %v6253_v61 = vld [vmem:[#allocation2 + $0x4f] sm:$0xff]  ;;  %2437 = vst.msk [vmem:[#allocation2 + $0x68] sm:$0xff] %vm264_vm0, %v2405_v51  ;;  %2603 = vrot.lane.b32.xlu0 %v2534_v53, %s4979_s18 }
 0x38c   : > { %2502 = vst.msk [vmem:[#allocation3 + $0x28] sm:$0xff] %vm264_vm0, %v6253_v61 }
 0x38d   : > { %v2256_v9 = vpop.f32.mrf.mxu0 }
 0x38e   : > { %v2257_v55 = vadd.f32 %v6212_v59, %v2256_v9 }
 0x390   : > { %vm2342_vm8 = vcmp.ge.f32.partialorder %v2257_v55, 0.0  ;;  %v2374_v24 = vmul.f32 0.2, %v2257_v55  ;;  %4727 = vmatmul.msk.f32.gmra.mxu0 %vm2123_vm2, %v2103_v13 }
 0x392   : > { %v2406_v3 = vsel %vm2342_vm8, %v2257_v55, %v2374_v24  ;;  %v2535_v40 = vld [vmem:[#allocation2 + $0x68] sm:$0xff] }
 0x393   : > { %v6261_v10 = vld [vmem:[#allocation2 + $0x67] sm:$0xff]  ;;  %2438 = vst.msk [vmem:[#allocation2 + $0x70] sm:$0xff] %vm264_vm0, %v2406_v3  ;;  %2605 = vrot.lane.b32.xlu1 %v2535_v40, %s4979_s18 }
 0x394   : > { %2503 = vst.msk [vmem:[#allocation3 + $0x30] sm:$0xff] %vm264_vm0, %v6261_v10 }
 0x395   : > { %v2259_v62 = vpop.f32.mrf.mxu0 }
 0x396   : > { %v2260_v25 = vadd.f32 %v6212_v59, %v2259_v62 }
 0x398   : > { %vm2343_vm9 = vcmp.ge.f32.partialorder %v2260_v25, 0.0  ;;  %v2375_v33 = vmul.f32 0.2, %v2260_v25  ;;  %4728 = vmatmul.msk.f32.gmra.mxu0 %vm2123_vm2, %v2104_v54 }
 0x39a   : > { %v2407_v21 = vsel %vm2343_vm9, %v2260_v25, %v2375_v33  ;;  %v2536_v38 = vld [vmem:[#allocation2 + $0x70] sm:$0xff] }
 0x39b   : > { %v6269_v35 = vld [vmem:[#allocation2 + $0x6f] sm:$0xff]  ;;  %2439 = vst.msk [vmem:[#allocation2 + $0x88] sm:$0xff] %vm264_vm0, %v2407_v21  ;;  %2607 = vrot.lane.b32.xlu2 %v2536_v38, %s4979_s18 }
 0x39c   : > { %2504 = vst.msk [vmem:[#allocation3 + $0x38] sm:$0xff] %vm264_vm0, %v6269_v35 }
 0x39d   : > { %v2262_v22 = vpop.f32.mrf.mxu0 }
 0x39e   : > { %v2263_v45 = vadd.f32 %v6212_v59, %v2262_v22 }
 0x3a0   : > { %vm2344_vm10 = vcmp.ge.f32.partialorder %v2263_v45, 0.0  ;;  %v2376_v4 = vmul.f32 0.2, %v2263_v45  ;;  %4729 = vmatmul.msk.f32.gmra.mxu0 %vm2123_vm2, %v2105_v49  ;;  %v2313_v21 = vpop.f32.mrf.mxu3 }
 0x3a1   : > { %v2314_v38 = vadd.f32 %v6212_v59, %v2313_v21 }
 0x3a2   : > { %v2408_v50 = vsel %vm2344_vm10, %v2263_v45, %v2376_v4  ;;  %v2537_v63 = vld [vmem:[#allocation2 + $0x88] sm:$0xff] }
 0x3a3   : > { %v6277_v6 = vld [vmem:[#allocation2 + $0x87] sm:$0xff]  ;;  %2440 = vst.msk [vmem:[#allocation2 + $0x90] sm:$0xff] %vm264_vm0, %v2408_v50  ;;  %2609 = vrot.lane.b32.xlu0 %v2537_v63, %s4979_s18  ;;  %vm2361_vm7 = vcmp.ge.f32.partialorder %v2314_v38, 0.0  ;;  %v2393_v4 = vmul.f32 0.2, %v2314_v38 }
 0x3a4   : > { %2505 = vst.msk [vmem:[#allocation3 + $0x40] sm:$0xff] %vm264_vm0, %v6277_v6 }
 0x3a5   : > { %v2265_v60 = vpop.f32.mrf.mxu0 }
 0x3a6   : > { %v2266_v5 = vadd.f32 %v6212_v59, %v2265_v60  ;;  %v2425_v60 = vsel %vm2361_vm7, %v2314_v38, %v2393_v4 }
 0x3a7   : > { %2457 = vst.msk [vmem:[#allocation2 + $0x1a8] sm:$0xff] %vm264_vm0, %v2425_v60 }
 0x3a8   : > { %vm2345_vm11 = vcmp.ge.f32.partialorder %v2266_v5, 0.0  ;;  %v2377_v39 = vmul.f32 0.2, %v2266_v5 }
 0x3aa   : > { %v2409_v12 = vsel %vm2345_vm11, %v2266_v5, %v2377_v39  ;;  %v2538_v31 = vld [vmem:[#allocation2 + $0x90] sm:$0xff] }
 0x3ab   : > { %v6284_v41 = vld [vmem:[#allocation2 + $0x8f] sm:$0xff]  ;;  %2441 = vst.msk [vmem:[#allocation2 + $0xa8] sm:$0xff] %vm264_vm0, %v2409_v12  ;;  %2611 = vrot.lane.b32.xlu1 %v2538_v31, %s4979_s18 }
 0x3ac   : > { %2506 = vst.msk [vmem:[#allocation3 + $0x48] sm:$0xff] %vm264_vm0, %v6284_v41 }
 0x3ad   : > { %v2268_v43 = vpop.f32.mrf.mxu0 }
 0x3ae   : > { %v2269_v42 = vadd.f32 %v6212_v59, %v2268_v43 }
 0x3b0   : > { %vm2346_vm12 = vcmp.ge.f32.partialorder %v2269_v42, 0.0  ;;  %v2378_v14 = vmul.f32 0.2, %v2269_v42 }
 0x3b2   : > { %v2410_v20 = vsel %vm2346_vm12, %v2269_v42, %v2378_v14  ;;  %v2539_v44 = vld [vmem:[#allocation2 + $0xa8] sm:$0xff]  ;;  %v2316_v31 = vpop.f32.mrf.mxu3 }
 0x3b3   : > { %v6292_v19 = vld [vmem:[#allocation2 + $0xa7] sm:$0xff]  ;;  %2442 = vst.msk [vmem:[#allocation2 + $0xb0] sm:$0xff] %vm264_vm0, %v2410_v20  ;;  %2613 = vrot.lane.b32.xlu2 %v2539_v44, %s4979_s18  ;;  %v2317_v36 = vadd.f32 %v6212_v59, %v2316_v31 }
 0x3b4   : > { %2507 = vst.msk [vmem:[#allocation3 + $0x50] sm:$0xff] %vm264_vm0, %v6292_v19 }
 0x3b5   : > { %v2271_v52 = vpop.f32.mrf.mxu0  ;;  %vm2362_vm9 = vcmp.ge.f32.partialorder %v2317_v36, 0.0  ;;  %v2394_v14 = vmul.f32 0.2, %v2317_v36 }
 0x3b6   : > { %v2272_v23 = vadd.f32 %v6212_v59, %v2271_v52 }
 0x3b7   : > { %v2426_v58 = vsel %vm2362_vm9, %v2317_v36, %v2394_v14 }
 0x3b8   : > { %vm2347_vm3 = vcmp.ge.f32.partialorder %v2272_v23, 0.0  ;;  %v2379_v28 = vmul.f32 0.2, %v2272_v23  ;;  %2458 = vst.msk [vmem:[#allocation2 + $0x1b0] sm:$0xff] %vm264_vm0, %v2426_v58 }
 0x3ba   : > { %v2411_v29 = vsel %vm2347_vm3, %v2272_v23, %v2379_v28  ;;  %v2540_v30 = vld [vmem:[#allocation2 + $0xb0] sm:$0xff] }
 0x3bb   : > { %v6301_v27 = vld [vmem:[#allocation2 + $0xaf] sm:$0xff]  ;;  %2443 = vst.msk [vmem:[#allocation2 + $0xc8] sm:$0xff] %vm264_vm0, %v2411_v29  ;;  %2615 = vrot.lane.b32.xlu0 %v2540_v30, %s4979_s18  ;;  %v2319_v28 = vpop.f32.mrf.mxu3 }
 0x3bc   : > { %2508 = vst.msk [vmem:[#allocation3 + $0x58] sm:$0xff] %vm264_vm0, %v6301_v27  ;;  %v2320_v29 = vadd.f32 %v6212_v59, %v2319_v28 }
 0x3bd   : > { %v2274_v57 = vpop.f32.mrf.mxu0 }
 0x3be   : > { %v2275_v17 = vadd.f32 %v6212_v59, %v2274_v57  ;;  %vm2363_vm11 = vcmp.ge.f32.partialorder %v2320_v29, 0.0  ;;  %v2395_v57 = vmul.f32 0.2, %v2320_v29 }
 0x3c0   : > { %vm2348_vm4 = vcmp.ge.f32.partialorder %v2275_v17, 0.0  ;;  %v2380_v2 = vmul.f32 0.2, %v2275_v17 }
 0x3c2   : > { %v2412_v32 = vsel %vm2348_vm4, %v2275_v17, %v2380_v2  ;;  %v2541_v56 = vld [vmem:[#allocation2 + $0xc8] sm:$0xff]  ;;  %v2427_v2 = vsel %vm2363_vm11, %v2320_v29, %v2395_v57 }
 0x3c3   : > { %2444 = vst.msk [vmem:[#allocation2 + $0xd0] sm:$0xff] %vm264_vm0, %v2412_v32  ;;  %2617 = vrot.lane.b32.xlu1 %v2541_v56, %s4979_s18  ;;  %v6311_v0 = vld [vmem:[#allocation2 + $0xc7] sm:$0xff]  ;;  %v2322_v34 = vpop.f32.mrf.mxu3 }
 0x3c4   : > { %2509 = vst.msk [vmem:[#allocation3 + $0x60] sm:$0xff] %vm264_vm0, %v6311_v0 }
 0x3c5   : > { %v2277_v47 = vpop.f32.mrf.mxu0  ;;  %2459 = vst.msk [vmem:[#allocation2 + $0x1c8] sm:$0xff] %vm264_vm0, %v2427_v2 }
 0x3c6   : > { %v2278_v11 = vadd.f32 %v6212_v59, %v2277_v47  ;;  %v6384_v47 = vld [vmem:[#allocation2 + $0x1a7] sm:$0xff] }
 0x3c7   : > { %2523 = vst.msk [vmem:[#allocation3 + $0xd0] sm:$0xff] %vm264_vm0, %v6384_v47 }
 0x3c8   : > { %vm2349_vm15 = vcmp.ge.f32.partialorder %v2278_v11, 0.0  ;;  %v2381_v48 = vmul.f32 0.2, %v2278_v11 }
 0x3ca   : > { %v2413_v15 = vsel %vm2349_vm15, %v2278_v11, %v2381_v48  ;;  %v6318_v1 = vld [vmem:[#allocation2 + $0xd0] sm:$0xff]  ;;  %v2323_v11 = vadd.f32 %v6212_v59, %v2322_v34 }
 0x3cb   : > { %v6320_v18 = vld [vmem:[#allocation2 + $0xcf] sm:$0xff]  ;;  %2445 = vst.msk [vmem:[#allocation2 + $0xe8] sm:$0xff] %vm264_vm0, %v2413_v15  ;;  %2619 = vrot.lane.b32.xlu2 %v6318_v1, %s4979_s18  ;;  %v2325_v21 = vpop.f32.mrf.mxu3 }
 0x3cc   : > { %2510 = vst.msk [vmem:[#allocation3 + $0x68] sm:$0xff] %vm264_vm0, %v6320_v18  ;;  %v6389_v48 = vld [vmem:[#allocation2 + $0x1af] sm:$0xff]  ;;  %vm2364_vm3 = vcmp.ge.f32.partialorder %v2323_v11, 0.0  ;;  %v2326_v38 = vadd.f32 %v6212_v59, %v2325_v21 }
 0x3cd   : > { %v2280_v51 = vpop.f32.mrf.mxu0  ;;  %2524 = vst.msk [vmem:[#allocation3 + $0xd8] sm:$0xff] %vm264_vm0, %v6389_v48 }
 0x3ce   : > { %v2281_v53 = vadd.f32 %v6212_v59, %v2280_v51  ;;  %vm2365_vm15 = vcmp.ge.f32.partialorder %v2326_v38, 0.0  ;;  %v2397_v4 = vmul.f32 0.2, %v2326_v38 }
 0x3d0   : > { %vm2350_vm5 = vcmp.ge.f32.partialorder %v2281_v53, 0.0  ;;  %v2382_v9 = vmul.f32 0.2, %v2281_v53 }
 0x3d2   : > { %v2414_v55 = vsel %vm2350_vm5, %v2281_v53, %v2382_v9  ;;  %v6328_v13 = vld [vmem:[#allocation2 + $0xe8] sm:$0xff]  ;;  %v2396_v9 = vmul.f32 0.2, %v2323_v11 }
 0x3d3   : > { %v6330_v24 = vld [vmem:[#allocation2 + $0xe7] sm:$0xff]  ;;  %2446 = vst.msk [vmem:[#allocation2 + $0xf0] sm:$0xff] %vm264_vm0, %v2414_v55  ;;  %2621 = vrot.lane.b32.xlu0 %v6328_v13, %s4979_s18  ;;  %v2328_v36 = vpop.f32.mrf.mxu3 }
 0x3d4   : > { %2511 = vst.msk [vmem:[#allocation3 + $0x70] sm:$0xff] %vm264_vm0, %v6330_v24 }
 0x3d5   : > { %v2283_v3 = vpop.f32.mrf.mxu0 }
 0x3d6   : > { %v2284_v40 = vadd.f32 %v6212_v59, %v2283_v3  ;;  %v2428_v3 = vsel %vm2364_vm3, %v2323_v11, %v2396_v9  ;;  %v2113_v9 = vld [vmem:[#allocation3 + $0xf8] sm:$0xff]  ;;  %vm3461_vm3 = vcmask 392512  }
 0x3d7   : > { %2460 = vst.msk [vmem:[#allocation2 + $0x1d0] sm:$0xff] %vm264_vm0, %v2428_v3 }
 0x3d8   : > { %vm2351_vm6 = vcmp.ge.f32.partialorder %v2284_v40, 0.0  ;;  %v2383_v62 = vmul.f32 0.2, %v2284_v40 }
 0x3da   : > { %v2415_v25 = vsel %vm2351_vm6, %v2284_v40, %v2383_v62  ;;  %v6338_v54 = vld [vmem:[#allocation2 + $0xf0] sm:$0xff]  ;;  %v2598_v50 = vpop.permute.xlu0 %2597 }
 0x3db   : > { %v6340_v33 = vld [vmem:[#allocation2 + $0xef] sm:$0xff]  ;;  %2447 = vst.msk [vmem:[#allocation2 + $0x108] sm:$0xff] %vm264_vm0, %v2415_v25  ;;  %2623 = vrot.lane.b32.xlu1 %v6338_v54, %s4979_s18 }
 0x3dc   : > { %2512 = vst.msk [vmem:[#allocation3 + $0x78] sm:$0xff] %vm264_vm0, %v6340_v33 }
 0x3dd   : > { %v2286_v22 = vpop.f32.mrf.mxu0  ;;  %2692 = vst.msk [vmem:[#allocation3 + $0x10] sm:$0xff] %vm2689_vm13, %v2598_v50 }
 0x3de   : > { %v2602_v45 = vpop.permute.xlu2 %2601  ;;  %v2287_v49 = vadd.f32 %v6212_v59, %v2286_v22  ;;  %v6423_v14 = vld [vmem:[#allocation2 + $0x1cf] sm:$0xff] }
 0x3df   : > { %2694 = vst.msk [vmem:[#allocation3 + $0x20] sm:$0xff] %vm2689_vm13, %v2602_v45 }
 0x3e0   : > { %vm2352_vm8 = vcmp.ge.f32.partialorder %v2287_v49, 0.0  ;;  %v2384_v63 = vmul.f32 0.2, %v2287_v49  ;;  %2526 = vst.msk [vmem:[#allocation3 + $0xe8] sm:$0xff] %vm264_vm0, %v6423_v14 }
 0x3e2   : > { %v2416_v5 = vsel %vm2352_vm8, %v2287_v49, %v2384_v63  ;;  %v6352_v39 = vld [vmem:[#allocation2 + $0x108] sm:$0xff]  ;;  %v2429_v63 = vsel %vm2365_vm15, %v2326_v38, %v2397_v4  ;;  %vm4040_vm15 = vcmask 589312  }
 0x3e3   : > { %v6354_v12 = vld [vmem:[#allocation2 + $0x107] sm:$0xff]  ;;  %2448 = vst.msk [vmem:[#allocation2 + $0x110] sm:$0xff] %vm264_vm0, %v2416_v5  ;;  %2625 = vrot.lane.b32.xlu2 %v6352_v39, %s4979_s18 }
 0x3e4   : > { %2513 = vst.msk [vmem:[#allocation3 + $0x80] sm:$0xff] %vm264_vm0, %v6354_v12 }
 0x3e5   : > { %v2289_v43 = vpop.f32.mrf.mxu0  ;;  %2461 = vst.msk [vmem:[#allocation2 + $0x1e8] sm:$0xff] %vm264_vm0, %v2429_v63 }
 0x3e6   : > { %v2290_v42 = vadd.f32 %v6212_v59, %v2289_v43  ;;  %v6418_v43 = vld [vmem:[#allocation2 + $0x1c7] sm:$0xff] }
 0x3e7   : > { %2525 = vst.msk [vmem:[#allocation3 + $0xe0] sm:$0xff] %vm264_vm0, %v6418_v43 }
 0x3e8   : > { %vm2353_vm10 = vcmp.ge.f32.partialorder %v2290_v42, 0.0  ;;  %v2385_v20 = vmul.f32 0.2, %v2290_v42 }
 0x3ea   : > { %v2417_v52 = vsel %vm2353_vm10, %v2290_v42, %v2385_v20  ;;  %v6364_v7 = vld [vmem:[#allocation2 + $0x110] sm:$0xff]  ;;  %v2329_v42 = vadd.f32 %v6212_v59, %v2328_v36 }
 0x3eb   : > { %v6367_v23 = vld [vmem:[#allocation2 + $0x10f] sm:$0xff]  ;;  %2449 = vst.msk [vmem:[#allocation2 + $0x128] sm:$0xff] %vm264_vm0, %v2417_v52  ;;  %2627 = vrot.lane.b32.xlu0 %v6364_v7, %s4979_s18 }
 0x3ec   : > { %v2600_v44 = vpop.permute.xlu1 %2599  ;;  %2514 = vst.msk [vmem:[#allocation3 + $0x88] sm:$0xff] %vm264_vm0, %v6367_v23  ;;  %vm2366_vm6 = vcmp.ge.f32.partialorder %v2329_v42, 0.0  ;;  %v2398_v52 = vmul.f32 0.2, %v2329_v42  ;;  %v6455_v3 = vld [vmem:[#allocation2 + $0x1e7] sm:$0xff] }
 0x3ed   : > { %2693 = vst.msk [vmem:[#allocation3 + $0x18] sm:$0xff] %vm2689_vm13, %v2600_v44  ;;  %v2292_v30 = vpop.f32.mrf.mxu0 }
 0x3ee   : > { %v2293_v16 = vadd.f32 %v6212_v59, %v2292_v30  ;;  %v2430_v29 = vsel %vm2366_vm6, %v2329_v42, %v2398_v52 }
 0x3ef   : > { %2462 = vst.msk [vmem:[#allocation2 + $0x1f0] sm:$0xff] %vm264_vm0, %v2430_v29  ;;  %v6491_v29 = vld [vmem:[#allocation2 + $0x1d0] sm:$0xff] }
 0x3f0   : > { %vm2354_vm12 = vcmp.ge.f32.partialorder %v2293_v16, 0.0  ;;  %v2386_v17 = vmul.f32 0.2, %v2293_v16 }
 0x3f2   : > { %v2418_v32 = vsel %vm2354_vm12, %v2293_v16, %v2386_v17  ;;  %v6377_v56 = vld [vmem:[#allocation2 + $0x128] sm:$0xff] }
 0x3f3   : > { %v6379_v8 = vld [vmem:[#allocation2 + $0x127] sm:$0xff]  ;;  %2450 = vst.msk [vmem:[#allocation2 + $0x130] sm:$0xff] %vm264_vm0, %v2418_v32  ;;  %2629 = vrot.lane.b32.xlu1 %v6377_v56, %s4979_s18 }
 0x3f4   : > { %2515 = vst.msk [vmem:[#allocation3 + $0x90] sm:$0xff] %vm264_vm0, %v6379_v8 }
 0x3f5   : > { %v2295_v15 = vpop.f32.mrf.mxu0  ;;  %v2608_v51 = vpop.permute.xlu2 %2607 }
 0x3f6   : > { %v2296_v53 = vadd.f32 %v6212_v59, %v2295_v15  ;;  %2697 = vst.msk [vmem:[#allocation3 + $0x38] sm:$0xff] %vm2689_vm13, %v2608_v51 }
 0x3f8   : > { %vm2355_vm4 = vcmp.ge.f32.partialorder %v2296_v53, 0.0  ;;  %v2387_v55 = vmul.f32 0.2, %v2296_v53 }
 0x3fa   : > { %v2419_v40 = vsel %vm2355_vm4, %v2296_v53, %v2387_v55  ;;  %v6398_v62 = vld [vmem:[#allocation2 + $0x130] sm:$0xff]  ;;  %vm3847_vm4 = vcmask 523712  }
 0x3fb   : > { %v6400_v25 = vld [vmem:[#allocation2 + $0x12f] sm:$0xff]  ;;  %2451 = vst.msk [vmem:[#allocation2 + $0x148] sm:$0xff] %vm264_vm0, %v2419_v40  ;;  %2631 = vrot.lane.b32.xlu2 %v6398_v62, %s4979_s18 }
 0x3fc   : > { %2516 = vst.msk [vmem:[#allocation3 + $0x98] sm:$0xff] %vm264_vm0, %v6400_v25  ;;  %v2112_v53 = vld [vmem:[#allocation3 + $0xf0] sm:$0xff] }
 0x3fd   : > { %v2298_v22 = vpop.f32.mrf.mxu0  ;;  %v2604_v45 = vpop.permute.xlu0 %2603  ;;  %4736 = vmatmul.msk.f32.gmra.mxu3 %vm2123_vm2, %v2112_v53  ;;  %v6453_v55 = vld [vmem:[#allocation2 + $0x1ef] sm:$0xff]  ;;  %2527 = vst.msk [vmem:[#allocation3 + $0xf0] sm:$0xff] %vm264_vm0, %v6455_v3 }
 0x3fe   : > { %v2299_v49 = vadd.f32 %v6212_v59, %v2298_v22  ;;  %2695 = vst.msk [vmem:[#allocation3 + $0x28] sm:$0xff] %vm2689_vm13, %v2604_v45 }
 0x3ff   : > { %2528 = vst.msk [vmem:[#allocation3 + $0xf8] sm:$0xff] %vm264_vm0, %v6453_v55 }
 0x400   : > { %vm2356_vm5 = vcmp.ge.f32.partialorder %v2299_v49, 0.0  ;;  %v2388_v50 = vmul.f32 0.2, %v2299_v49 }
 0x402   : > { %v2420_v60 = vsel %vm2356_vm5, %v2299_v49, %v2388_v50  ;;  %v6411_v5 = vld [vmem:[#allocation2 + $0x148] sm:$0xff]  ;;  %vm4327_vm5 = vcmask 588800  }
 0x403   : > { %v6413_v31 = vld [vmem:[#allocation2 + $0x147] sm:$0xff]  ;;  %2452 = vst.msk [vmem:[#allocation2 + $0x150] sm:$0xff] %vm264_vm0, %v2420_v60  ;;  %2633 = vrot.lane.b32.xlu0 %v6411_v5, %s4979_s18 }
 0x404   : > { %2517 = vst.msk [vmem:[#allocation3 + $0xa0] sm:$0xff] %vm264_vm0, %v6413_v31 }
 0x405   : > { %v2301_v20 = vpop.f32.mrf.mxu0  ;;  %v2606_v44 = vpop.permute.xlu1 %2605  ;;  %4737 = vmatmul.msk.f32.gmra.mxu3 %vm2123_vm2, %v2113_v9  ;;  %v2723_v9 = vld [vmem:[#allocation2 + $0x11] sm:$0xff]  ;;  %vm2882_vm2 = vcmask 195712  }
 0x406   : > { %v2302_v58 = vadd.f32 %v6212_v59, %v2301_v20  ;;  %2696 = vst.msk [vmem:[#allocation3 + $0x30] sm:$0xff] %vm2689_vm13, %v2606_v44  ;;  %v6477_v44 = vld [vmem:[#allocation2 + $0x1a8] sm:$0xff] }
 0x408   : > { %vm2357_vm7 = vcmp.ge.f32.partialorder %v2302_v58, 0.0  ;;  %v2389_v28 = vmul.f32 0.2, %v2302_v58 }
 0x40a   : > { %v2421_v30 = vsel %vm2357_vm7, %v2302_v58, %v2389_v28  ;;  %v6432_v16 = vld [vmem:[#allocation2 + $0x150] sm:$0xff] }
 0x40b   : > { %2453 = vst.msk [vmem:[#allocation2 + $0x168] sm:$0xff] %vm264_vm0, %v2421_v30  ;;  %2635 = vrot.lane.b32.xlu1 %v6432_v16, %s4979_s18  ;;  %v6437_v57 = vld [vmem:[#allocation2 + $0x14f] sm:$0xff] }
 0x40c   : > { %2518 = vst.msk [vmem:[#allocation3 + $0xa8] sm:$0xff] %vm264_vm0, %v6437_v57  ;;  %v6489_v28 = vld [vmem:[#allocation2 + $0x1b0] sm:$0xff] }
 0x40d   : > { %v2304_v17 = vpop.f32.mrf.mxu0  ;;  %v2614_v2 = vpop.permute.xlu2 %2613 }
 0x40e   : > { %v2305_v32 = vadd.f32 %v6212_v59, %v2304_v17  ;;  %2700 = vst.msk [vmem:[#allocation3 + $0x50] sm:$0xff] %vm2689_vm13, %v2614_v2 }
 0x410   : > { %vm2358_vm8 = vcmp.ge.f32.partialorder %v2305_v32, 0.0  ;;  %v2390_v34 = vmul.f32 0.2, %v2305_v32 }
 0x412   : > { %v2422_v11 = vsel %vm2358_vm8, %v2305_v32, %v2390_v34  ;;  %v6443_v15 = vld [vmem:[#allocation2 + $0x168] sm:$0xff] }
 0x413   : > { %v6445_v51 = vld [vmem:[#allocation2 + $0x167] sm:$0xff]  ;;  %2454 = vst.msk [vmem:[#allocation2 + $0x170] sm:$0xff] %vm264_vm0, %v2422_v11  ;;  %2637 = vrot.lane.b32.xlu2 %v6443_v15, %s4979_s18 }
 0x414   : > { %2519 = vst.msk [vmem:[#allocation3 + $0xb0] sm:$0xff] %vm264_vm0, %v6445_v51  ;;  %v2722_v32 = vld [vmem:[#allocation2 + $0x9] sm:$0xff] }
 0x415   : > { %v2307_v40 = vpop.f32.mrf.mxu0  ;;  %v2610_v21 = vpop.permute.xlu0 %2609  ;;  %v6506_v34 = vld [vmem:[#allocation2 + $0x1e8] sm:$0xff] }
 0x416   : > { %v2308_v38 = vadd.f32 %v6212_v59, %v2307_v40  ;;  %2698 = vst.msk [vmem:[#allocation3 + $0x40] sm:$0xff] %vm2689_vm13, %v2610_v21  ;;  %v6511_v11 = vld [vmem:[#allocation2 + $0x1c8] sm:$0xff]  ;;  %v6516_v40 = vld [vmem:[#allocation2 + $0x1f0] sm:$0xff] }
 0x417   : > { %v6518_v21 = vld [vmem:[#allocation2 + $0x31] sm:$0xff] }
 0x418   : > { %vm2359_vm9 = vcmp.ge.f32.partialorder %v2308_v38, 0.0  ;;  %v2391_v22 = vmul.f32 0.2, %v2308_v38 }
 0x41a   : > { %v2423_v45 = vsel %vm2359_vm9, %v2308_v38, %v2391_v22  ;;  %v6463_v49 = vld [vmem:[#allocation2 + $0x170] sm:$0xff] }
 0x41b   : > { %2455 = vst.msk [vmem:[#allocation2 + $0x188] sm:$0xff] %vm264_vm0, %v2423_v45  ;;  %2639 = vrot.lane.b32.xlu0 %v6463_v49, %s4979_s18  ;;  %v6468_v4 = vld [vmem:[#allocation2 + $0x16f] sm:$0xff] }
 0x41c   : > { %2520 = vst.msk [vmem:[#allocation3 + $0xb8] sm:$0xff] %vm264_vm0, %v6468_v4  ;;  %v6526_v22 = vld [vmem:[#allocation2 + $0x69] sm:$0xff] }
 0x41d   : > { %v2310_v50 = vpop.f32.mrf.mxu0  ;;  %v2612_v63 = vpop.permute.xlu1 %2611  ;;  %v6528_v45 = vld [vmem:[#allocation2 + $0x49] sm:$0xff] }
 0x41e   : > { %v2311_v60 = vadd.f32 %v6212_v59, %v2310_v50  ;;  %2699 = vst.msk [vmem:[#allocation3 + $0x48] sm:$0xff] %vm2689_vm13, %v2612_v63  ;;  %v6534_v50 = vld [vmem:[#allocation2 + $0x29] sm:$0xff] }
 0x420   : > { %vm2360_vm10 = vcmp.ge.f32.partialorder %v2311_v60, 0.0  ;;  %v2392_v36 = vmul.f32 0.2, %v2311_v60 }
 0x422   : > { %v2424_v42 = vsel %vm2360_vm10, %v2311_v60, %v2392_v36  ;;  %v6475_v20 = vld [vmem:[#allocation2 + $0x188] sm:$0xff]  ;;  %v6539_v60 = vld [vmem:[#allocation2 + $0x91] sm:$0xff] }
 0x423   : > { %v6479_v58 = vld [vmem:[#allocation2 + $0x187] sm:$0xff]  ;;  %2456 = vst.msk [vmem:[#allocation2 + $0x190] sm:$0xff] %vm264_vm0, %v2424_v42  ;;  %2641 = vrot.lane.b32.xlu1 %v6475_v20, %s4979_s18  ;;  %2645 = vrot.lane.b32.xlu0 %v6477_v44, %s4979_s18  ;;  %v6541_v36 = vld [vmem:[#allocation2 + $0x71] sm:$0xff] }
 0x424   : > { %2521 = vst.msk [vmem:[#allocation3 + $0xc0] sm:$0xff] %vm264_vm0, %v6479_v58  ;;  %v6547_v42 = vld [vmem:[#allocation2 + $0x51] sm:$0xff] }
 0x425   : > { %v2620_v52 = vpop.permute.xlu2 %2619  ;;  %7448 = vst [vmem:[#allocation7_spill] sm:$0xff] %v6541_v36 }
 0x426   : > { %2703 = vst.msk [vmem:[#allocation3 + $0x68] sm:$0xff] %vm2689_vm13, %v2620_v52 }
 0x42a   : > { %v6493_v30 = vld [vmem:[#allocation2 + $0x190] sm:$0xff] }
 0x42b   : > { %2647 = vrot.lane.b32.xlu1 %v6489_v28, %s4979_s18  ;;  %2651 = vrot.lane.b32.xlu0 %v6491_v29, %s4979_s18  ;;  %v6499_v17 = vld [vmem:[#allocation2 + $0x18f] sm:$0xff] }
 0x42c   : > { %2643 = vrot.lane.b32.xlu2 %v6493_v30, %s4979_s18  ;;  %2522 = vst.msk [vmem:[#allocation3 + $0xc8] sm:$0xff] %vm264_vm0, %v6499_v17 }
 0x42d   : > { %v2616_v2 = vpop.permute.xlu0 %2615 }
 0x42e   : > { %2701 = vst.msk [vmem:[#allocation3 + $0x58] sm:$0xff] %vm2689_vm13, %v2616_v2  ;;  %v6552_v2 = vld [vmem:[#allocation2 + $0xc9] sm:$0xff] }
 0x42f   : > { %7449 = vst [vmem:[#allocation14_spill] sm:$0xff] %v6552_v2 }
 0x433   : > { %2653 = vrot.lane.b32.xlu1 %v6506_v34, %s4979_s18  ;;  %2786 = vrot.lane.b32.xlu0 %v2722_v32, %s4981_s20  ;;  %v6554_v32 = vld [vmem:[#allocation2 + $0xa9] sm:$0xff] }
 0x434   : > { %2649 = vrot.lane.b32.xlu2 %v6511_v11, %s4979_s18  ;;  %7450 = vst [vmem:[#allocation8_spill] sm:$0xff] %v6554_v32 }
 0x435   : > { %v2618_v53 = vpop.permute.xlu1 %2617 }
 0x436   : > { %2702 = vst.msk [vmem:[#allocation3 + $0x60] sm:$0xff] %vm2689_vm13, %v2618_v53  ;;  %v6560_v53 = vld [vmem:[#allocation2 + $0x89] sm:$0xff] }
 0x43b   : > { %2788 = vrot.lane.b32.xlu1 %v2723_v9, %s4981_s20  ;;  %2792 = vrot.lane.b32.xlu0 %v6518_v21, %s4981_s20 }
 0x43c   : > { %2655 = vrot.lane.b32.xlu2 %v6516_v40, %s4979_s18  ;;  %s4988_s18 = smov 56  }
 0x43d   : > { %v2626_v38 = vpop.permute.xlu2 %2625 }
 0x43e   : > { %2706 = vst.msk [vmem:[#allocation3 + $0x80] sm:$0xff] %vm2689_vm13, %v2626_v38  ;;  %v6565_v38 = vld [vmem:[#allocation2 + $0xf1] sm:$0xff] }
 0x43f   : > { %7451 = vst [vmem:[#allocation9_spill] sm:$0xff] %v6565_v38 }
 0x443   : > { %2798 = vrot.lane.b32.xlu0 %v6526_v22, %s4981_s20  ;;  %2794 = vrot.lane.b32.xlu1 %v6528_v45, %s4981_s20 }
 0x444   : > { %2790 = vrot.lane.b32.xlu2 %v6534_v50, %s4981_s20 }
 0x445   : > { %v2622_v63 = vpop.permute.xlu0 %2621 }
 0x446   : > { %2704 = vst.msk [vmem:[#allocation3 + $0x70] sm:$0xff] %vm2689_vm13, %v2622_v63  ;;  %v6567_v63 = vld [vmem:[#allocation2 + $0xd1] sm:$0xff] }
 0x447   : > { %7452 = vst [vmem:[#allocation10_spill] sm:$0xff] %v6567_v63 }
 0x44b   : > { %2804 = vrot.lane.b32.xlu0 %v6539_v60, %s4981_s20  ;;  %2800 = vrot.lane.b32.xlu1 %v6541_v36, %s4981_s20  ;;  %v6591_v36 = vld [vmem:[#allocation2 + $0x151] sm:$0xff] }
 0x44c   : > { %2796 = vrot.lane.b32.xlu2 %v6547_v42, %s4981_s20  ;;  %7456 = vst [vmem:[#allocation15_spill] sm:$0xff] %v6591_v36 }
 0x44d   : > { %v2624_v52 = vpop.permute.xlu1 %2623 }
 0x44e   : > { %2705 = vst.msk [vmem:[#allocation3 + $0x78] sm:$0xff] %vm2689_vm13, %v2624_v52  ;;  %v6573_v52 = vld [vmem:[#allocation2 + $0xb1] sm:$0xff] }
 0x453   : > { %2810 = vrot.lane.b32.xlu0 %v6552_v2, %s4981_s20  ;;  %2806 = vrot.lane.b32.xlu1 %v6554_v32, %s4981_s20  ;;  %v6578_v2 = vld [vmem:[#allocation2 + $0x129] sm:$0xff] }
 0x454   : > { %2802 = vrot.lane.b32.xlu2 %v6560_v53, %s4981_s20  ;;  %7453 = vst [vmem:[#allocation11_spill] sm:$0xff] %v6578_v2 }
 0x455   : > { %v2632_v9 = vpop.permute.xlu2 %2631 }
 0x456   : > { %2709 = vst.msk [vmem:[#allocation3 + $0x98] sm:$0xff] %vm2689_vm13, %v2632_v9  ;;  %v6580_v9 = vld [vmem:[#allocation2 + $0x109] sm:$0xff] }
 0x457   : > { %7454 = vst [vmem:[#allocation12_spill] sm:$0xff] %v6580_v9 }
 0x45b   : > { %2816 = vrot.lane.b32.xlu0 %v6565_v38, %s4981_s20  ;;  %2812 = vrot.lane.b32.xlu1 %v6567_v63, %s4981_s20  ;;  %v6586_v38 = vld [vmem:[#allocation2 + $0xe9] sm:$0xff] }
 0x45c   : > { %2808 = vrot.lane.b32.xlu2 %v6573_v52, %s4981_s20  ;;  %7455 = vst [vmem:[#allocation13_spill] sm:$0xff] %v6586_v38 }
 0x45d   : > { %v2628_v32 = vpop.permute.xlu0 %2627 }
 0x45e   : > { %2707 = vst.msk [vmem:[#allocation3 + $0x88] sm:$0xff] %vm2689_vm13, %v2628_v32  ;;  %v6593_v32 = vld [vmem:[#allocation2 + $0x131] sm:$0xff] }
 0x45f   : > { %7457 = vst [vmem:[#allocation16_spill] sm:$0xff] %v6593_v32 }
 0x463   : > { %2822 = vrot.lane.b32.xlu0 %v6578_v2, %s4981_s20  ;;  %2818 = vrot.lane.b32.xlu1 %v6580_v9, %s4981_s20  ;;  %v6599_v2 = vld [vmem:[#allocation2 + $0x111] sm:$0xff] }
 0x464   : > { %2814 = vrot.lane.b32.xlu2 %v6586_v38, %s4981_s20  ;;  %7458 = vst [vmem:[#allocation17_spill] sm:$0xff] %v6599_v2  ;;  %v6604_v38 = vld [vmem:[#allocation2 + $0x189] sm:$0xff] }
 0x465   : > { %v2630_v63 = vpop.permute.xlu1 %2629  ;;  %7459 = vst [vmem:[#allocation18_spill] sm:$0xff] %v6604_v38 }
 0x466   : > { %2708 = vst.msk [vmem:[#allocation3 + $0x90] sm:$0xff] %vm2689_vm13, %v2630_v63  ;;  %v6606_v63 = vld [vmem:[#allocation2 + $0x169] sm:$0xff] }
 0x467   : > { %7460 = vst [vmem:[#allocation19_spill] sm:$0xff] %v6606_v63 }
 0x46b   : > { %2828 = vrot.lane.b32.xlu0 %v6591_v36, %s4981_s20  ;;  %2824 = vrot.lane.b32.xlu1 %v6593_v32, %s4981_s20  ;;  %v6612_v36 = vld [vmem:[#allocation2 + $0x149] sm:$0xff] }
 0x46c   : > { %2820 = vrot.lane.b32.xlu2 %v6599_v2, %s4981_s20  ;;  %7461 = vst [vmem:[#allocation20_spill] sm:$0xff] %v6612_v36  ;;  %v6617_v2 = vld [vmem:[#allocation2 + $0x1b1] sm:$0xff] }
 0x46d   : > { %v2638_v9 = vpop.permute.xlu2 %2637  ;;  %7462 = vst [vmem:[#allocation21_spill] sm:$0xff] %v6617_v2 }
 0x46e   : > { %2712 = vst.msk [vmem:[#allocation3 + $0xb0] sm:$0xff] %vm2689_vm13, %v2638_v9  ;;  %v6619_v9 = vld [vmem:[#allocation2 + $0x191] sm:$0xff] }
 0x46f   : > { %7463 = vst [vmem:[#allocation22_spill] sm:$0xff] %v6619_v9 }
 0x473   : > { %2834 = vrot.lane.b32.xlu0 %v6604_v38, %s4981_s20  ;;  %2830 = vrot.lane.b32.xlu1 %v6606_v63, %s4981_s20  ;;  %v6625_v38 = vld [vmem:[#allocation2 + $0x171] sm:$0xff] }
 0x474   : > { %2826 = vrot.lane.b32.xlu2 %v6612_v36, %s4981_s20  ;;  %7464 = vst [vmem:[#allocation23_spill] sm:$0xff] %v6625_v38  ;;  %v6630_v36 = vld [vmem:[#allocation2 + $0x1e9] sm:$0xff] }
 0x475   : > { %v2634_v32 = vpop.permute.xlu0 %2633  ;;  %7465 = vst [vmem:[#allocation24_spill] sm:$0xff] %v6630_v36 }
 0x476   : > { %2710 = vst.msk [vmem:[#allocation3 + $0xa0] sm:$0xff] %vm2689_vm13, %v2634_v32  ;;  %v6632_v32 = vld [vmem:[#allocation2 + $0x1c9] sm:$0xff] }
 0x477   : > { %7466 = vst [vmem:[#allocation25_spill] sm:$0xff] %v6632_v32 }
 0x47b   : > { %2840 = vrot.lane.b32.xlu0 %v6617_v2, %s4981_s20  ;;  %2836 = vrot.lane.b32.xlu1 %v6619_v9, %s4981_s20  ;;  %v6638_v2 = vld [vmem:[#allocation2 + $0x1a9] sm:$0xff] }
 0x47c   : > { %2832 = vrot.lane.b32.xlu2 %v6625_v38, %s4981_s20  ;;  %v6643_v38 = vld [vmem:[#allocation2 + $0x1f1] sm:$0xff] }
 0x47d   : > { %v2636_v63 = vpop.permute.xlu1 %2635  ;;  %7467 = vst [vmem:[#allocation26_spill] sm:$0xff] %v6643_v38 }
 0x47e   : > { %2711 = vst.msk [vmem:[#allocation3 + $0xa8] sm:$0xff] %vm2689_vm13, %v2636_v63  ;;  %v6649_v63 = vld [vmem:[#allocation2 + $0x1d1] sm:$0xff] }
 0x483   : > { %2846 = vrot.lane.b32.xlu0 %v6630_v36, %s4981_s20  ;;  %2842 = vrot.lane.b32.xlu1 %v6632_v32, %s4981_s20 }
 0x484   : > { %2838 = vrot.lane.b32.xlu2 %v6638_v2, %s4981_s20 }
 0x486   : > { %v2644_v9 = vpop.permute.xlu2 %2643 }
 0x487   : > { %2715 = vst.msk [vmem:[#allocation3 + $0xc8] sm:$0xff] %vm2689_vm13, %v2644_v9 }
 0x48b   : > { %2981 = vrot.lane.b32.xlu0 %v6232_v26, %s4983_s28  ;;  %2848 = vrot.lane.b32.xlu1 %v6643_v38, %s4981_s20 }
 0x48c   : > { %2844 = vrot.lane.b32.xlu2 %v6649_v63, %s4981_s20  ;;  %s4989_s20 = smov 64  }
 0x48d   : > { %v2640_v32 = vpop.permute.xlu0 %2639 }
 0x48e   : > { %2713 = vst.msk [vmem:[#allocation3 + $0xb8] sm:$0xff] %vm2689_vm13, %v2640_v32  ;;  %v2650_v36 = vpop.permute.xlu2 %2649 }
 0x48f   : > { %2718 = vst.msk [vmem:[#allocation3 + $0xe0] sm:$0xff] %vm2689_vm13, %v2650_v36  ;;  %v2331_v36 = vpop.f32.mrf.mxu3 }
 0x493   : > { %2987 = vrot.lane.b32.xlu0 %v6261_v10, %s4983_s28  ;;  %2983 = vrot.lane.b32.xlu1 %v6245_v37, %s4983_s28 }
 0x494   : > { %2979 = vrot.lane.b32.xlu2 %v6223_v46, %s4983_s28 }
 0x495   : > { %v2642_v26 = vpop.permute.xlu1 %2641  ;;  %v2646_v9 = vpop.permute.xlu0 %2645 }
 0x496   : > { %2714 = vst.msk [vmem:[#allocation3 + $0xc0] sm:$0xff] %vm2689_vm13, %v2642_v26  ;;  %v2656_v38 = vpop.permute.xlu2 %2655 }
 0x497   : > { %2716 = vst.msk [vmem:[#allocation3 + $0xd0] sm:$0xff] %vm2689_vm13, %v2646_v9  ;;  %v2334_v9 = vpop.f32.mrf.mxu3 }
 0x498   : > { %2721 = vst.msk [vmem:[#allocation3 + $0xf8] sm:$0xff] %vm2689_vm13, %v2656_v38  ;;  %v2332_v38 = vadd.f32 %v6212_v59, %v2331_v36  ;;  %v6748_v36 = vld [vmem:[#allocation2 + $0x48] sm:$0xff] }
 0x49a   : > { %vm2367_vm11 = vcmp.ge.f32.partialorder %v2332_v38, 0.0 }
 0x49b   : > { %2993 = vrot.lane.b32.xlu0 %v6284_v41, %s4983_s28  ;;  %2989 = vrot.lane.b32.xlu1 %v6269_v35, %s4983_s28 }
 0x49c   : > { %2985 = vrot.lane.b32.xlu2 %v6253_v61, %s4983_s28  ;;  %v2399_v61 = vmul.f32 0.2, %v2332_v38 }
 0x49d   : > { %v2648_v37 = vpop.permute.xlu1 %2647  ;;  %v2652_v46 = vpop.permute.xlu0 %2651 }
 0x49e   : > { %2717 = vst.msk [vmem:[#allocation3 + $0xd8] sm:$0xff] %vm2689_vm13, %v2648_v37  ;;  %v2791_v10 = vpop.permute.xlu2 %2790  ;;  %v2431_v26 = vsel %vm2367_vm11, %v2332_v38, %v2399_v61  ;;  %v3108_v38 = vld [vmem:[#allocation2 + $0x28] sm:$0xff] }
 0x49f   : > { %2719 = vst.msk [vmem:[#allocation3 + $0xe8] sm:$0xff] %vm2689_vm13, %v2652_v46 }
 0x4a0   : > { %2885 = vst.msk [vmem:[#allocation3 + $0x10] sm:$0xff] %vm2882_vm2, %v2791_v10 }
 0x4a1   : > { %2463 = vst.msk [vmem:[#allocation2 + $0x208] sm:$0xff] %vm264_vm0, %v2431_v26  ;;  %v3109_v26 = vld [vmem:[#allocation2 + $0x30] sm:$0xff] }
 0x4a3   : > { %2999 = vrot.lane.b32.xlu0 %v6311_v0, %s4983_s28  ;;  %2995 = vrot.lane.b32.xlu1 %v6292_v19, %s4983_s28  ;;  %v2335_v19 = vadd.f32 %v6212_v59, %v2334_v9 }
 0x4a4   : > { %2991 = vrot.lane.b32.xlu2 %v6277_v6, %s4983_s28 }
 0x4a5   : > { %v2654_v35 = vpop.permute.xlu1 %2653  ;;  %v2787_v41 = vpop.permute.xlu0 %2786  ;;  %vm2368_vm12 = vcmp.ge.f32.partialorder %v2335_v19, 0.0  ;;  %v2400_v6 = vmul.f32 0.2, %v2335_v19 }
 0x4a6   : > { %2720 = vst.msk [vmem:[#allocation3 + $0xf0] sm:$0xff] %vm2689_vm13, %v2654_v35  ;;  %v2797_v32 = vpop.permute.xlu2 %2796  ;;  %vm3268_vm13 = vcmask 326912  }
 0x4a7   : > { %2883 = vst.msk [vmem:[#allocation3] sm:$0xff] %vm2882_vm2, %v2787_v41  ;;  %v2432_v10 = vsel %vm2368_vm12, %v2335_v19, %v2400_v6  ;;  %v6757_v41 = vld [vmem:[#allocation2 + $0x70] sm:$0xff] }
 0x4a8   : > { %2888 = vst.msk [vmem:[#allocation3 + $0x28] sm:$0xff] %vm2882_vm2, %v2797_v32  ;;  %v6759_v32 = vld [vmem:[#allocation2 + $0x50] sm:$0xff] }
 0x4a9   : > { %2464 = vst.msk [vmem:[#allocation2 + $0x210] sm:$0xff] %vm264_vm0, %v2432_v10  ;;  %vm3075_vm0 = vcmask 261312  }
 0x4ab   : > { %3005 = vrot.lane.b32.xlu0 %v6340_v33, %s4983_s28  ;;  %3001 = vrot.lane.b32.xlu1 %v6320_v18, %s4983_s28 }
 0x4ac   : > { %2997 = vrot.lane.b32.xlu2 %v6301_v27, %s4983_s28 }
 0x4ad   : > { %v2789_v0 = vpop.permute.xlu1 %2788  ;;  %v2793_v37 = vpop.permute.xlu0 %2792 }
 0x4ae   : > { %2884 = vst.msk [vmem:[#allocation3 + $0x8] sm:$0xff] %vm2882_vm2, %v2789_v0  ;;  %v2803_v46 = vpop.permute.xlu2 %2802  ;;  %v6769_v0 = vld [vmem:[#allocation2 + $0xa8] sm:$0xff] }
 0x4af   : > { %2886 = vst.msk [vmem:[#allocation3 + $0x18] sm:$0xff] %vm2882_vm2, %v2793_v37  ;;  %v6771_v37 = vld [vmem:[#allocation2 + $0x88] sm:$0xff] }
 0x4b0   : > { %2891 = vst.msk [vmem:[#allocation3 + $0x40] sm:$0xff] %vm2882_vm2, %v2803_v46  ;;  %v6777_v46 = vld [vmem:[#allocation2 + $0x68] sm:$0xff] }
 0x4b3   : > { %3011 = vrot.lane.b32.xlu0 %v6379_v8, %s4983_s28  ;;  %3007 = vrot.lane.b32.xlu1 %v6354_v12, %s4983_s28 }
 0x4b4   : > { %3003 = vrot.lane.b32.xlu2 %v6330_v24, %s4983_s28 }
 0x4b5   : > { %v2799_v59 = vpop.permute.xlu0 %2798  ;;  %v2795_v27 = vpop.permute.xlu1 %2794 }
 0x4b6   : > { %2889 = vst.msk [vmem:[#allocation3 + $0x30] sm:$0xff] %vm2882_vm2, %v2799_v59  ;;  %v2809_v18 = vpop.permute.xlu2 %2808 }
 0x4b7   : > { %2887 = vst.msk [vmem:[#allocation3 + $0x20] sm:$0xff] %vm2882_vm2, %v2795_v27 }
 0x4b8   : > { %2894 = vst.msk [vmem:[#allocation3 + $0x58] sm:$0xff] %vm2882_vm2, %v2809_v18  ;;  %v6784_v18 = vld [vmem:[#allocation2 + $0xb0] sm:$0xff] }
 0x4bb   : > { %3017 = vrot.lane.b32.xlu0 %v6437_v57, %s4983_s28  ;;  %3013 = vrot.lane.b32.xlu1 %v6400_v25, %s4983_s28 }
 0x4bc   : > { %3009 = vrot.lane.b32.xlu2 %v6367_v23, %s4983_s28 }
 0x4bd   : > { %v2805_v33 = vpop.permute.xlu0 %2804  ;;  %v2801_v24 = vpop.permute.xlu1 %2800 }
 0x4be   : > { %2892 = vst.msk [vmem:[#allocation3 + $0x48] sm:$0xff] %vm2882_vm2, %v2805_v33  ;;  %v2815_v12 = vpop.permute.xlu2 %2814  ;;  %v6790_v33 = vld [vmem:[#allocation2 + $0x90] sm:$0xff] }
 0x4bf   : > { %2890 = vst.msk [vmem:[#allocation3 + $0x38] sm:$0xff] %vm2882_vm2, %v2801_v24 }
 0x4c0   : > { %2897 = vst.msk [vmem:[#allocation3 + $0x70] sm:$0xff] %vm2882_vm2, %v2815_v12 }
 0x4c3   : > { %3023 = vrot.lane.b32.xlu0 %v6479_v58, %s4983_s28  ;;  %3019 = vrot.lane.b32.xlu1 %v6445_v51, %s4983_s28 }
 0x4c4   : > { %3015 = vrot.lane.b32.xlu2 %v6413_v31, %s4983_s28 }
 0x4c5   : > { %v2811_v8 = vpop.permute.xlu0 %2810  ;;  %v2807_v23 = vpop.permute.xlu1 %2806 }
 0x4c6   : > { %2895 = vst.msk [vmem:[#allocation3 + $0x60] sm:$0xff] %vm2882_vm2, %v2811_v8  ;;  %v2821_v25 = vpop.permute.xlu2 %2820 }
 0x4c7   : > { %2893 = vst.msk [vmem:[#allocation3 + $0x50] sm:$0xff] %vm2882_vm2, %v2807_v23 }
 0x4c8   : > { %2900 = vst.msk [vmem:[#allocation3 + $0x88] sm:$0xff] %vm2882_vm2, %v2821_v25 }
 0x4cb   : > { %3029 = vrot.lane.b32.xlu0 %v6389_v48, %s4983_s28  ;;  %3025 = vrot.lane.b32.xlu1 %v6499_v17, %s4983_s28  ;;  %v2946_v17 = vld [vmem:[#allocation2 + $0x20f] sm:$0xff] }
 0x4cc   : > { %3021 = vrot.lane.b32.xlu2 %v6468_v4, %s4983_s28 }
 0x4cd   : > { %v2817_v57 = vpop.permute.xlu0 %2816  ;;  %v2813_v31 = vpop.permute.xlu1 %2812 }
 0x4ce   : > { %2898 = vst.msk [vmem:[#allocation3 + $0x78] sm:$0xff] %vm2882_vm2, %v2817_v57  ;;  %v2827_v51 = vpop.permute.xlu2 %2826 }
 0x4cf   : > { %2896 = vst.msk [vmem:[#allocation3 + $0x68] sm:$0xff] %vm2882_vm2, %v2813_v31 }
 0x4d0   : > { %2903 = vst.msk [vmem:[#allocation3 + $0xa0] sm:$0xff] %vm2882_vm2, %v2827_v51  ;;  %v3138_v51 = vld [vmem:[#allocation2 + $0x208] sm:$0xff] }
 0x4d3   : > { %3035 = vrot.lane.b32.xlu0 %v6455_v3, %s4983_s28  ;;  %3031 = vrot.lane.b32.xlu1 %v6418_v43, %s4983_s28 }
 0x4d4   : > { %3027 = vrot.lane.b32.xlu2 %v6384_v47, %s4983_s28 }
 0x4d5   : > { %v2823_v48 = vpop.permute.xlu0 %2822  ;;  %v2819_v4 = vpop.permute.xlu1 %2818 }
 0x4d6   : > { %2901 = vst.msk [vmem:[#allocation3 + $0x90] sm:$0xff] %vm2882_vm2, %v2823_v48  ;;  %v2833_v58 = vpop.permute.xlu2 %2832 }
 0x4d7   : > { %2899 = vst.msk [vmem:[#allocation3 + $0x80] sm:$0xff] %vm2882_vm2, %v2819_v4 }
 0x4d8   : > { %2906 = vst.msk [vmem:[#allocation3 + $0xb8] sm:$0xff] %vm2882_vm2, %v2833_v58 }
 0x4db   : > { %3041 = vrot.lane.b32.xlu0 %v2946_v17, %s4983_s28  ;;  %3037 = vrot.lane.b32.xlu1 %v6453_v55, %s4983_s28  ;;  %v2945_v55 = vld [vmem:[#allocation2 + $0x207] sm:$0xff] }
 0x4dc   : > { %3033 = vrot.lane.b32.xlu2 %v6423_v14, %s4983_s28 }
 0x4dd   : > { %v2829_v43 = vpop.permute.xlu0 %2828  ;;  %v2825_v47 = vpop.permute.xlu1 %2824 }
 0x4de   : > { %2904 = vst.msk [vmem:[#allocation3 + $0xa8] sm:$0xff] %vm2882_vm2, %v2829_v43  ;;  %v2839_v3 = vpop.permute.xlu2 %2838  ;;  %v7469_v43 = vld [vmem:[#allocation13_spill] sm:$0xff] }
 0x4df   : > { %2902 = vst.msk [vmem:[#allocation3 + $0x98] sm:$0xff] %vm2882_vm2, %v2825_v47 }
 0x4e0   : > { %2909 = vst.msk [vmem:[#allocation3 + $0xd0] sm:$0xff] %vm2882_vm2, %v2839_v3 }
 0x4e3   : > { %3176 = vrot.lane.b32.xlu0 %v6748_v36, %s4985_s10  ;;  %3172 = vrot.lane.b32.xlu1 %v3108_v38, %s4985_s10 }
 0x4e4   : > { %3039 = vrot.lane.b32.xlu2 %v2945_v55, %s4983_s28  ;;  %v7472_v55 = vld [vmem:[#allocation17_spill] sm:$0xff] }
 0x4e5   : > { %v2835_v14 = vpop.permute.xlu0 %2834  ;;  %v2831_v61 = vpop.permute.xlu1 %2830 }
 0x4e6   : > { %2907 = vst.msk [vmem:[#allocation3 + $0xc0] sm:$0xff] %vm2882_vm2, %v2835_v14  ;;  %v2845_v35 = vpop.permute.xlu2 %2844  ;;  %v7473_v14 = vld [vmem:[#allocation9_spill] sm:$0xff] }
 0x4e7   : > { %2905 = vst.msk [vmem:[#allocation3 + $0xb0] sm:$0xff] %vm2882_vm2, %v2831_v61  ;;  %v7474_v61 = vld [vmem:[#allocation10_spill] sm:$0xff] }
 0x4e8   : > { %2912 = vst.msk [vmem:[#allocation3 + $0xe8] sm:$0xff] %vm2882_vm2, %v2845_v35 }
 0x4eb   : > { %3182 = vrot.lane.b32.xlu0 %v6757_v41, %s4985_s10  ;;  %3178 = vrot.lane.b32.xlu1 %v6759_v32, %s4985_s10 }
 0x4ec   : > { %3174 = vrot.lane.b32.xlu2 %v3109_v26, %s4985_s10 }
 0x4ed   : > { %v2841_v9 = vpop.permute.xlu0 %2840  ;;  %v2837_v19 = vpop.permute.xlu1 %2836 }
 0x4ee   : > { %2910 = vst.msk [vmem:[#allocation3 + $0xd8] sm:$0xff] %vm2882_vm2, %v2841_v9  ;;  %v2980_v6 = vpop.permute.xlu2 %2979 }
 0x4ef   : > { %2908 = vst.msk [vmem:[#allocation3 + $0xc8] sm:$0xff] %vm2882_vm2, %v2837_v19  ;;  %v7475_v19 = vld [vmem:[#allocation20_spill] sm:$0xff] }
 0x4f0   : > { %3076 = vst.msk [vmem:[#allocation3] sm:$0xff] %vm3075_vm0, %v2980_v6  ;;  %v7476_v6 = vld [vmem:[#allocation11_spill] sm:$0xff] }
 0x4f3   : > { %3188 = vrot.lane.b32.xlu0 %v6769_v0, %s4985_s10  ;;  %3184 = vrot.lane.b32.xlu1 %v6771_v37, %s4985_s10 }
 0x4f4   : > { %3180 = vrot.lane.b32.xlu2 %v6777_v46, %s4985_s10 }
 0x4f5   : > { %v2847_v10 = vpop.permute.xlu0 %2846  ;;  %v2843_v59 = vpop.permute.xlu1 %2842 }
 0x4f6   : > { %2913 = vst.msk [vmem:[#allocation3 + $0xf0] sm:$0xff] %vm2882_vm2, %v2847_v10  ;;  %v2986_v27 = vpop.permute.xlu2 %2985  ;;  %v7477_v10 = vld [vmem:[#allocation12_spill] sm:$0xff] }
 0x4f7   : > { %2911 = vst.msk [vmem:[#allocation3 + $0xe0] sm:$0xff] %vm2882_vm2, %v2843_v59 }
 0x4f8   : > { %3079 = vst.msk [vmem:[#allocation3 + $0x18] sm:$0xff] %vm3075_vm0, %v2986_v27 }
 0x4fb   : > { %3194 = vrot.lane.b32.xlu0 %v6318_v1, %s4985_s10  ;;  %3190 = vrot.lane.b32.xlu1 %v6784_v18, %s4985_s10  ;;  %v6801_v1 = vld [vmem:[#allocation2 + $0xc8] sm:$0xff] }
 0x4fc   : > { %3186 = vrot.lane.b32.xlu2 %v6790_v33, %s4985_s10 }
 0x4fd   : > { %v2982_v24 = vpop.permute.xlu0 %2981  ;;  %v2849_v12 = vpop.permute.xlu1 %2848 }
 0x4fe   : > { %3077 = vst.msk [vmem:[#allocation3 + $0x8] sm:$0xff] %vm3075_vm0, %v2982_v24  ;;  %v2992_v8 = vpop.permute.xlu2 %2991 }
 0x4ff   : > { %2914 = vst.msk [vmem:[#allocation3 + $0xf8] sm:$0xff] %vm2882_vm2, %v2849_v12  ;;  %v7478_v12 = vld [vmem:[#allocation23_spill] sm:$0xff] }
 0x500   : > { %3082 = vst.msk [vmem:[#allocation3 + $0x30] sm:$0xff] %vm3075_vm0, %v2992_v8  ;;  %v7479_v8 = vld [vmem:[#allocation15_spill] sm:$0xff] }
 0x503   : > { %3200 = vrot.lane.b32.xlu0 %v6352_v39, %s4985_s10  ;;  %3196 = vrot.lane.b32.xlu1 %v6328_v13, %s4985_s10 }
 0x504   : > { %3192 = vrot.lane.b32.xlu2 %v6801_v1, %s4985_s10 }
 0x505   : > { %v2988_v23 = vpop.permute.xlu0 %2987  ;;  %v2984_v25 = vpop.permute.xlu1 %2983 }
 0x506   : > { %3080 = vst.msk [vmem:[#allocation3 + $0x20] sm:$0xff] %vm3075_vm0, %v2988_v23  ;;  %v2998_v57 = vpop.permute.xlu2 %2997  ;;  %v7480_v23 = vld [vmem:[#allocation16_spill] sm:$0xff] }
 0x507   : > { %3078 = vst.msk [vmem:[#allocation3 + $0x10] sm:$0xff] %vm3075_vm0, %v2984_v25 }
 0x508   : > { %3085 = vst.msk [vmem:[#allocation3 + $0x48] sm:$0xff] %vm3075_vm0, %v2998_v57 }
 0x50b   : > { %3206 = vrot.lane.b32.xlu0 %v6398_v62, %s4985_s10  ;;  %3202 = vrot.lane.b32.xlu1 %v6364_v7, %s4985_s10 }
 0x50c   : > { %3198 = vrot.lane.b32.xlu2 %v6338_v54, %s4985_s10 }
 0x50d   : > { %v2994_v13 = vpop.permute.xlu0 %2993  ;;  %v2990_v39 = vpop.permute.xlu1 %2989 }
 0x50e   : > { %3083 = vst.msk [vmem:[#allocation3 + $0x38] sm:$0xff] %vm3075_vm0, %v2994_v13  ;;  %v3004_v31 = vpop.permute.xlu2 %3003 }
 0x50f   : > { %3081 = vst.msk [vmem:[#allocation3 + $0x28] sm:$0xff] %vm3075_vm0, %v2990_v39  ;;  %v7481_v39 = vld [vmem:[#allocation18_spill] sm:$0xff] }
 0x510   : > { %3088 = vst.msk [vmem:[#allocation3 + $0x60] sm:$0xff] %vm3075_vm0, %v3004_v31  ;;  %v7482_v31 = vld [vmem:[#allocation19_spill] sm:$0xff] }
 0x513   : > { %3212 = vrot.lane.b32.xlu0 %v6443_v15, %s4985_s10  ;;  %3208 = vrot.lane.b32.xlu1 %v6411_v5, %s4985_s10 }
 0x514   : > { %3204 = vrot.lane.b32.xlu2 %v6377_v56, %s4985_s10 }
 0x515   : > { %v3000_v7 = vpop.permute.xlu0 %2999  ;;  %v2996_v54 = vpop.permute.xlu1 %2995 }
 0x516   : > { %3086 = vst.msk [vmem:[#allocation3 + $0x50] sm:$0xff] %vm3075_vm0, %v3000_v7  ;;  %v3010_v62 = vpop.permute.xlu2 %3009 }
 0x517   : > { %3084 = vst.msk [vmem:[#allocation3 + $0x40] sm:$0xff] %vm3075_vm0, %v2996_v54 }
 0x518   : > { %3091 = vst.msk [vmem:[#allocation3 + $0x78] sm:$0xff] %vm3075_vm0, %v3010_v62 }
 0x51b   : > { %3218 = vrot.lane.b32.xlu0 %v6493_v30, %s4985_s10  ;;  %3214 = vrot.lane.b32.xlu1 %v6463_v49, %s4985_s10 }
 0x51c   : > { %3210 = vrot.lane.b32.xlu2 %v6432_v16, %s4985_s10 }
 0x51d   : > { %v3006_v5 = vpop.permute.xlu0 %3005  ;;  %v3002_v56 = vpop.permute.xlu1 %3001 }
 0x51e   : > { %3089 = vst.msk [vmem:[#allocation3 + $0x68] sm:$0xff] %vm3075_vm0, %v3006_v5  ;;  %v3016_v15 = vpop.permute.xlu2 %3015  ;;  %v7484_v5 = vld [vmem:[#allocation22_spill] sm:$0xff] }
 0x51f   : > { %3087 = vst.msk [vmem:[#allocation3 + $0x58] sm:$0xff] %vm3075_vm0, %v3002_v56 }
 0x520   : > { %3094 = vst.msk [vmem:[#allocation3 + $0x90] sm:$0xff] %vm3075_vm0, %v3016_v15 }
 0x523   : > { %3224 = vrot.lane.b32.xlu0 %v6511_v11, %s4985_s10  ;;  %3220 = vrot.lane.b32.xlu1 %v6477_v44, %s4985_s10 }
 0x524   : > { %3216 = vrot.lane.b32.xlu2 %v6475_v20, %s4985_s10 }
 0x525   : > { %v3012_v49 = vpop.permute.xlu0 %3011  ;;  %v3008_v16 = vpop.permute.xlu1 %3007 }
 0x526   : > { %3092 = vst.msk [vmem:[#allocation3 + $0x80] sm:$0xff] %vm3075_vm0, %v3012_v49  ;;  %v3022_v30 = vpop.permute.xlu2 %3021 }
 0x527   : > { %3090 = vst.msk [vmem:[#allocation3 + $0x70] sm:$0xff] %vm3075_vm0, %v3008_v16  ;;  %v6941_v16 = vld [vmem:[#allocation2 + $0x209] sm:$0xff] }
 0x528   : > { %3097 = vst.msk [vmem:[#allocation3 + $0xa8] sm:$0xff] %vm3075_vm0, %v3022_v30  ;;  %v7486_v30 = vld [vmem:[#allocation25_spill] sm:$0xff] }
 0x52b   : > { %3230 = vrot.lane.b32.xlu0 %v6516_v40, %s4985_s10  ;;  %3226 = vrot.lane.b32.xlu1 %v6491_v29, %s4985_s10 }
 0x52c   : > { %3222 = vrot.lane.b32.xlu2 %v6489_v28, %s4985_s10 }
 0x52d   : > { %v3018_v44 = vpop.permute.xlu0 %3017  ;;  %v3014_v20 = vpop.permute.xlu1 %3013 }
 0x52e   : > { %3095 = vst.msk [vmem:[#allocation3 + $0x98] sm:$0xff] %vm3075_vm0, %v3018_v44  ;;  %v3028_v11 = vpop.permute.xlu2 %3027 }
 0x52f   : > { %3093 = vst.msk [vmem:[#allocation3 + $0x88] sm:$0xff] %vm3075_vm0, %v3014_v20 }
 0x530   : > { %3100 = vst.msk [vmem:[#allocation3 + $0xc0] sm:$0xff] %vm3075_vm0, %v3028_v11 }
 0x533   : > { %3365 = vrot.lane.b32.xlu0 %v6534_v50, %s4986_s9  ;;  %3232 = vrot.lane.b32.xlu1 %v3138_v51, %s4985_s10  ;;  %v3139_v50 = vld [vmem:[#allocation2 + $0x210] sm:$0xff] }
 0x534   : > { %3228 = vrot.lane.b32.xlu2 %v6506_v34, %s4985_s10  ;;  %v3495_v51 = vld [vmem:[#allocation2 + $0x4f] sm:$0xff] }
 0x535   : > { %v3024_v28 = vpop.permute.xlu0 %3023  ;;  %v3020_v29 = vpop.permute.xlu1 %3019 }
 0x536   : > { %3098 = vst.msk [vmem:[#allocation3 + $0xb0] sm:$0xff] %vm3075_vm0, %v3024_v28  ;;  %v3034_v40 = vpop.permute.xlu2 %3033  ;;  %v6952_v28 = vld [vmem:[#allocation2 + $0x211] sm:$0xff] }
 0x537   : > { %3096 = vst.msk [vmem:[#allocation3 + $0xa0] sm:$0xff] %vm3075_vm0, %v3020_v29  ;;  %v7487_v29 = vld [vmem:[#allocation26_spill] sm:$0xff] }
 0x538   : > { %3103 = vst.msk [vmem:[#allocation3 + $0xd8] sm:$0xff] %vm3075_vm0, %v3034_v40 }
 0x53b   : > { %3371 = vrot.lane.b32.xlu0 %v6547_v42, %s4986_s9  ;;  %3367 = vrot.lane.b32.xlu1 %v6518_v21, %s4986_s9 }
 0x53c   : > { %3234 = vrot.lane.b32.xlu2 %v3139_v50, %s4985_s10  ;;  %s4625_s10 = scalar_lea.hbm %s7389_s6, %s4809_s15 }
 0x53d   : > { %v3030_v48 = vpop.permute.xlu0 %3029  ;;  %v3026_v34 = vpop.permute.xlu1 %3025  ;;  %s4629_s26 = sshll.u32 %s4625_s10, 4  ;;  %s4630_s26 = int_to_ptr.hbm [resolvable:$true] %s4629_s26 }
 0x53e   : > { %3101 = vst.msk [vmem:[#allocation3 + $0xc8] sm:$0xff] %vm3075_vm0, %v3030_v48  ;;  %v3040_v4 = vpop.permute.xlu2 %3039  ;;  %s4927_s29 = sshra.s32 %s4630_s26, 4  ;;  %s4928_s29 = int_to_ptr.hbm [resolvable:$true] %s4927_s29 }
 0x53f   : > { %3099 = vst.msk [vmem:[#allocation3 + $0xb8] sm:$0xff] %vm3075_vm0, %v3026_v34  ;;  %v3498_v34 = vld [vmem:[#allocation2 + $0x87] sm:$0xff]  ;;  %s4929_s11 = scalar_lea.hbm %s4928_s29, 16  ;;  %p4934_p0 = scmp.lt.s32.totalorder %s4928_s29, %s7389_s6 }
 0x540   : > { %3106 = vst.msk [vmem:[#allocation3 + $0xf0] sm:$0xff] %vm3075_vm0, %v3040_v4  ;;  %v3496_v4 = vld [vmem:[#allocation2 + $0x67] sm:$0xff]  ;;  %p4930_p11 = scmp.ne.s32.totalorder %s4928_s29, %s4929_s11 }
 0x542   : > { %p4931_p12 = pnand %p4930_p11, %p5064_p5 }
 0x543   : > { %3377 = vrot.lane.b32.xlu0 %v6560_v53, %s4986_s9  ;;  %3373 = vrot.lane.b32.xlu1 %v6526_v22, %s4986_s9  ;;  %v7468_v22 = vld [vmem:[#allocation7_spill] sm:$0xff] }
 0x544   : > { %3369 = vrot.lane.b32.xlu2 %v6528_v45, %s4986_s9  ;;  %p4932_p13 = pneg %p4931_p12 }
 0x545   : > { %v3036_v21 = vpop.permute.xlu0 %3035  ;;  %v3032_v42 = vpop.permute.xlu1 %3031 }
 0x546   : > { %3104 = vst.msk [vmem:[#allocation3 + $0xe0] sm:$0xff] %vm3075_vm0, %v3036_v21  ;;  %v3175_v58 = vpop.permute.xlu2 %3174  ;;  %v3494_v21 = vld [vmem:[#allocation2 + $0x47] sm:$0xff] }
 0x547   : > { %3102 = vst.msk [vmem:[#allocation3 + $0xd0] sm:$0xff] %vm3075_vm0, %v3032_v42 }
 0x548   : > { %3270 = vst.msk [vmem:[#allocation3 + $0x8] sm:$0xff] %vm3268_vm13, %v3175_v58 }
 0x54b   : > { %3383 = vrot.lane.b32.xlu0 %v6573_v52, %s4986_s9  ;;  %3379 = vrot.lane.b32.xlu1 %v6539_v60, %s4986_s9  ;;  %v7470_v52 = vld [vmem:[#allocation14_spill] sm:$0xff]  ;;  %v7471_v60 = vld [vmem:[#allocation8_spill] sm:$0xff] }
 0x54c   : > { %3375 = vrot.lane.b32.xlu2 %v7468_v22, %s4986_s9 }
 0x54d   : > { %v3042_v45 = vpop.permute.xlu0 %3041  ;;  %v3038_v53 = vpop.permute.xlu1 %3037 }
 0x54e   : > { %3107 = vst.msk [vmem:[#allocation3 + $0xf8] sm:$0xff] %vm3075_vm0, %v3042_v45  ;;  %v3181_v17 = vpop.permute.xlu2 %3180  ;;  %v3501_v45 = vld [vmem:[#allocation2 + $0xaf] sm:$0xff] }
 0x54f   : > { %3105 = vst.msk [vmem:[#allocation3 + $0xe8] sm:$0xff] %vm3075_vm0, %v3038_v53  ;;  %v3499_v53 = vld [vmem:[#allocation2 + $0x8f] sm:$0xff] }
 0x550   : > { %3273 = vst.msk [vmem:[#allocation3 + $0x20] sm:$0xff] %vm3268_vm13, %v3181_v17  ;;  %v3497_v17 = vld [vmem:[#allocation2 + $0x6f] sm:$0xff] }
 0x553   : > { %3389 = vrot.lane.b32.xlu0 %v7469_v43, %s4986_s9  ;;  %3385 = vrot.lane.b32.xlu1 %v7470_v52, %s4986_s9 }
 0x554   : > { %3381 = vrot.lane.b32.xlu2 %v7471_v60, %s4986_s9 }
 0x555   : > { %v3177_v47 = vpop.permute.xlu0 %3176  ;;  %v3173_v3 = vpop.permute.xlu1 %3172 }
 0x556   : > { %3271 = vst.msk [vmem:[#allocation3 + $0x10] sm:$0xff] %vm3268_vm13, %v3177_v47  ;;  %v3187_v38 = vpop.permute.xlu2 %3186  ;;  %v3502_v47 = vld [vmem:[#allocation2 + $0xc7] sm:$0xff] }
 0x557   : > { %3269 = vst.msk [vmem:[#allocation3] sm:$0xff] %vm3268_vm13, %v3173_v3  ;;  %v3500_v3 = vld [vmem:[#allocation2 + $0xa7] sm:$0xff] }
 0x558   : > { %3276 = vst.msk [vmem:[#allocation3 + $0x38] sm:$0xff] %vm3268_vm13, %v3187_v38 }
 0x55b   : > { %3395 = vrot.lane.b32.xlu0 %v7472_v55, %s4986_s9  ;;  %3391 = vrot.lane.b32.xlu1 %v7473_v14, %s4986_s9 }
 0x55c   : > { %3387 = vrot.lane.b32.xlu2 %v7474_v61, %s4986_s9  ;;  %v3503_v61 = vld [vmem:[#allocation2 + $0xcf] sm:$0xff] }
 0x55d   : > { %v3183_v35 = vpop.permute.xlu0 %3182  ;;  %v3179_v26 = vpop.permute.xlu1 %3178 }
 0x55e   : > { %3274 = vst.msk [vmem:[#allocation3 + $0x28] sm:$0xff] %vm3268_vm13, %v3183_v35  ;;  %v3193_v9 = vpop.permute.xlu2 %3192  ;;  %v3880_v35 = vld [vmem:[#allocation2 + $0x49] sm:$0xff] }
 0x55f   : > { %3272 = vst.msk [vmem:[#allocation3 + $0x18] sm:$0xff] %vm3268_vm13, %v3179_v26 }
 0x560   : > { %3279 = vst.msk [vmem:[#allocation3 + $0x50] sm:$0xff] %vm3268_vm13, %v3193_v9 }
 0x563   : > { %3401 = vrot.lane.b32.xlu0 %v7475_v19, %s4986_s9  ;;  %3397 = vrot.lane.b32.xlu1 %v7476_v6, %s4986_s9 }
 0x564   : > { %3393 = vrot.lane.b32.xlu2 %v7477_v10, %s4986_s9 }
 0x565   : > { %v3189_v59 = vpop.permute.xlu0 %3188  ;;  %v3185_v27 = vpop.permute.xlu1 %3184 }
 0x566   : > { %3277 = vst.msk [vmem:[#allocation3 + $0x40] sm:$0xff] %vm3268_vm13, %v3189_v59  ;;  %v3199_v24 = vpop.permute.xlu2 %3198  ;;  %v3883_v59 = vld [vmem:[#allocation2 + $0x71] sm:$0xff] }
 0x567   : > { %3275 = vst.msk [vmem:[#allocation3 + $0x30] sm:$0xff] %vm3268_vm13, %v3185_v27 }
 0x568   : > { %3282 = vst.msk [vmem:[#allocation3 + $0x68] sm:$0xff] %vm3268_vm13, %v3199_v24 }
 0x56b   : > { %3407 = vrot.lane.b32.xlu0 %v7478_v12, %s4986_s9  ;;  %3403 = vrot.lane.b32.xlu1 %v7479_v8, %s4986_s9  ;;  %v3884_v12 = vld [vmem:[#allocation2 + $0x89] sm:$0xff] }
 0x56c   : > { %3399 = vrot.lane.b32.xlu2 %v7480_v23, %s4986_s9 }
 0x56d   : > { %v3195_v25 = vpop.permute.xlu0 %3194  ;;  %v3191_v57 = vpop.permute.xlu1 %3190 }
 0x56e   : > { %3280 = vst.msk [vmem:[#allocation3 + $0x58] sm:$0xff] %vm3268_vm13, %v3195_v25  ;;  %v3205_v13 = vpop.permute.xlu2 %3204 }
 0x56f   : > { %3278 = vst.msk [vmem:[#allocation3 + $0x48] sm:$0xff] %vm3268_vm13, %v3191_v57  ;;  %v3886_v57 = vld [vmem:[#allocation2 + $0xa9] sm:$0xff] }
 0x570   : > { %3285 = vst.msk [vmem:[#allocation3 + $0x80] sm:$0xff] %vm3268_vm13, %v3205_v13  ;;  %v3885_v13 = vld [vmem:[#allocation2 + $0x91] sm:$0xff] }
 0x573   : > { %3413 = vrot.lane.b32.xlu0 %v6638_v2, %s4986_s9  ;;  %3409 = vrot.lane.b32.xlu1 %v7481_v39, %s4986_s9  ;;  %v7483_v2 = vld [vmem:[#allocation21_spill] sm:$0xff]  ;;  %v4114_v39 = vld [vmem:[%s7388_s5] sm:$0xf] }
 0x574   : > { %3405 = vrot.lane.b32.xlu2 %v7482_v31, %s4986_s9  ;;  %4738 = vmatpush.msk.msra.mxu1 %vm2220_vm14, %v4114_v39 }
 0x575   : > { %v3201_v7 = vpop.permute.xlu0 %3200  ;;  %v3197_v54 = vpop.permute.xlu1 %3196  ;;  %4815 = vmatpush.msk.msrb.mxu3 %vm2220_vm14, %v4114_v39  ;;  %vm3654_vm14 = vcmask 458112   ;;  %v3510_v39 = vld [vmem:[#allocation2 + $0x147] sm:$0xff] }
 0x576   : > { %3283 = vst.msk [vmem:[#allocation3 + $0x70] sm:$0xff] %vm3268_vm13, %v3201_v7  ;;  %v3211_v62 = vpop.permute.xlu2 %3210 }
 0x577   : > { %3281 = vst.msk [vmem:[#allocation3 + $0x60] sm:$0xff] %vm3268_vm13, %v3197_v54 }
 0x578   : > { %3288 = vst.msk [vmem:[#allocation3 + $0x98] sm:$0xff] %vm3268_vm13, %v3211_v62  ;;  %v4881_v62 = vld [vmem:[%s5096_s16] sm:$0xff] }
 0x579   : > { %4739 = vmatmul.msk.f32.vlgmr.msra.gmra.mxu1 %vm440_vm1, %v4881_v62  ;;  %v4895_v62 = vld [vmem:[%s5096_s16 + $0x38] sm:$0xff] }
 0x57b   : > { %3419 = vrot.lane.b32.xlu0 %v6649_v63, %s4986_s9  ;;  %3415 = vrot.lane.b32.xlu1 %v7483_v2, %s4986_s9  ;;  %v7485_v63 = vld [vmem:[#allocation24_spill] sm:$0xff] }
 0x57c   : > { %3411 = vrot.lane.b32.xlu2 %v7484_v5, %s4986_s9  ;;  %v4882_v2 = vld [vmem:[%s5096_s16 + $0xc8] sm:$0xff]  ;;  %v3887_v5 = vld [vmem:[#allocation2 + $0xb1] sm:$0xff] }
 0x57d   : > { %v3207_v56 = vpop.permute.xlu0 %3206  ;;  %v3203_v15 = vpop.permute.xlu1 %3202  ;;  %4764 = vmatmul.msk.f32.vlgmr.msrb.gmra.mxu3 %vm440_vm1, %v4882_v2  ;;  %v3895_v2 = vld [vmem:[#allocation2 + $0x131] sm:$0xff] }
 0x57e   : > { %3286 = vst.msk [vmem:[#allocation3 + $0x88] sm:$0xff] %vm3268_vm13, %v3207_v56  ;;  %v3217_v49 = vpop.permute.xlu2 %3216  ;;  %v3506_v56 = vld [vmem:[#allocation2 + $0x107] sm:$0xff] }
 0x57f   : > { %3284 = vst.msk [vmem:[#allocation3 + $0x78] sm:$0xff] %vm3268_vm13, %v3203_v15 }
 0x580   : > { %3291 = vst.msk [vmem:[#allocation3 + $0xb0] sm:$0xff] %vm3268_vm13, %v3217_v49 }
 0x583   : > { %3425 = vrot.lane.b32.xlu0 %v6941_v16, %s4986_s9  ;;  %3421 = vrot.lane.b32.xlu1 %v7485_v63, %s4986_s9 }
 0x584   : > { %3417 = vrot.lane.b32.xlu2 %v7486_v30, %s4986_s9  ;;  %v4883_v30 = vld [vmem:[%s5096_s16 + $0x8] sm:$0xff] }
 0x585   : > { %v3213_v44 = vpop.permute.xlu0 %3212  ;;  %v3209_v20 = vpop.permute.xlu1 %3208  ;;  %4740 = vmatmul.msk.f32.gmra.mxu1 %vm440_vm1, %v4883_v30  ;;  %v4896_v30 = vld [vmem:[%s5096_s16 + $0x40] sm:$0xff] }
 0x586   : > { %3289 = vst.msk [vmem:[#allocation3 + $0xa0] sm:$0xff] %vm3268_vm13, %v3213_v44  ;;  %v3223_v11 = vpop.permute.xlu2 %3222  ;;  %v4884_v44 = vld [vmem:[%s5096_s16 + $0xd0] sm:$0xff] }
 0x587   : > { %3287 = vst.msk [vmem:[#allocation3 + $0x90] sm:$0xff] %vm3268_vm13, %v3209_v20  ;;  %4765 = vmatmul.msk.f32.gmra.mxu3 %vm440_vm1, %v4884_v44  ;;  %v3888_v20 = vld [vmem:[#allocation2 + $0xc9] sm:$0xff] }
 0x588   : > { %3294 = vst.msk [vmem:[#allocation3 + $0xc8] sm:$0xff] %vm3268_vm13, %v3223_v11  ;;  %v3507_v11 = vld [vmem:[#allocation2 + $0x10f] sm:$0xff] }
 0x589   : > { %v3896_v44 = vld [vmem:[#allocation2 + $0x149] sm:$0xff] }
 0x58b   : > { %3560 = vrot.lane.b32.xlu0 %v3495_v51, %s4987_s13  ;;  %3427 = vrot.lane.b32.xlu1 %v6952_v28, %s4986_s9 }
 0x58c   : > { %3423 = vrot.lane.b32.xlu2 %v7487_v29, %s4986_s9 }
 0x58d   : > { %v3219_v40 = vpop.permute.xlu0 %3218  ;;  %v3215_v50 = vpop.permute.xlu1 %3214 }
 0x58e   : > { %3292 = vst.msk [vmem:[#allocation3 + $0xb8] sm:$0xff] %vm3268_vm13, %v3219_v40  ;;  %v3229_v48 = vpop.permute.xlu2 %3228  ;;  %v4885_v40 = vld [vmem:[%s5096_s16 + $0x10] sm:$0xff] }
 0x58f   : > { %3290 = vst.msk [vmem:[#allocation3 + $0xa8] sm:$0xff] %vm3268_vm13, %v3215_v50  ;;  %4741 = vmatmul.msk.f32.gmra.mxu1 %vm440_vm1, %v4885_v40  ;;  %v4886_v50 = vld [vmem:[%s5096_s16 + $0xd8] sm:$0xff]  ;;  %v4897_v40 = vld [vmem:[%s5096_s16 + $0x48] sm:$0xff] }
 0x590   : > { %3297 = vst.msk [vmem:[#allocation3 + $0xe0] sm:$0xff] %vm3268_vm13, %v3229_v48  ;;  %4766 = vmatmul.msk.f32.gmra.mxu3 %vm440_vm1, %v4886_v50  ;;  %v3508_v48 = vld [vmem:[#allocation2 + $0x127] sm:$0xff]  ;;  %v3897_v50 = vld [vmem:[#allocation2 + $0x151] sm:$0xff] }
 0x593   : > { %3566 = vrot.lane.b32.xlu0 %v3498_v34, %s4987_s13  ;;  %3562 = vrot.lane.b32.xlu1 %v3496_v4, %s4987_s13  ;;  %v3696_v34 = vld [vmem:[#allocation2 + $0xd0] sm:$0xff] }
 0x594   : > { %3558 = vrot.lane.b32.xlu2 %v3494_v21, %s4987_s13 }
 0x595   : > { %v3225_v42 = vpop.permute.xlu0 %3224  ;;  %v3221_v58 = vpop.permute.xlu1 %3220 }
 0x596   : > { %3295 = vst.msk [vmem:[#allocation3 + $0xd0] sm:$0xff] %vm3268_vm13, %v3225_v42  ;;  %v3235_v22 = vpop.permute.xlu2 %3234  ;;  %v4887_v42 = vld [vmem:[%s5096_s16 + $0x18] sm:$0xff] }
 0x597   : > { %3293 = vst.msk [vmem:[#allocation3 + $0xc0] sm:$0xff] %vm3268_vm13, %v3221_v58  ;;  %4742 = vmatmul.msk.f32.gmra.mxu1 %vm440_vm1, %v4887_v42  ;;  %v4888_v58 = vld [vmem:[%s5096_s16 + $0xe0] sm:$0xff]  ;;  %v4898_v42 = vld [vmem:[%s5096_s16 + $0x50] sm:$0xff] }
 0x598   : > { %3300 = vst.msk [vmem:[#allocation3 + $0xf8] sm:$0xff] %vm3268_vm13, %v3235_v22  ;;  %4767 = vmatmul.msk.f32.gmra.mxu3 %vm440_vm1, %v4888_v58  ;;  %v3509_v22 = vld [vmem:[#allocation2 + $0x12f] sm:$0xff] }
 0x59b   : > { %3572 = vrot.lane.b32.xlu0 %v3501_v45, %s4987_s13  ;;  %3568 = vrot.lane.b32.xlu1 %v3499_v53, %s4987_s13  ;;  %v3697_v45 = vld [vmem:[#allocation2 + $0xe8] sm:$0xff] }
 0x59c   : > { %3564 = vrot.lane.b32.xlu2 %v3497_v17, %s4987_s13 }
 0x59d   : > { %v3231_v43 = vpop.permute.xlu0 %3230  ;;  %v3227_v52 = vpop.permute.xlu1 %3226 }
 0x59e   : > { %3298 = vst.msk [vmem:[#allocation3 + $0xe8] sm:$0xff] %vm3268_vm13, %v3231_v43  ;;  %v3370_v60 = vpop.permute.xlu2 %3369 }
 0x59f   : > { %3296 = vst.msk [vmem:[#allocation3 + $0xd8] sm:$0xff] %vm3268_vm13, %v3227_v52  ;;  %v4889_v52 = vld [vmem:[%s5096_s16 + $0x20] sm:$0xff] }
 0x5a0   : > { %3464 = vst.msk [vmem:[#allocation3 + $0x10] sm:$0xff] %vm3461_vm3, %v3370_v60  ;;  %4743 = vmatmul.msk.f32.gmra.mxu1 %vm440_vm1, %v4889_v52  ;;  %v4890_v60 = vld [vmem:[%s5096_s16 + $0xe8] sm:$0xff]  ;;  %v4899_v52 = vld [vmem:[%s5096_s16 + $0x58] sm:$0xff] }
 0x5a1   : > { %4768 = vmatmul.msk.f32.gmra.mxu3 %vm440_vm1, %v4890_v60 }
 0x5a3   : > { %3574 = vrot.lane.b32.xlu0 %v3502_v47, %s4987_s13  ;;  %3751 = vrot.lane.b32.xlu1 %v6748_v36, %s4988_s18  ;;  %v4113_v47 = vld [vmem:[%s7387_s4 + $0x40] sm:$0xff] }
 0x5a4   : > { %3570 = vrot.lane.b32.xlu2 %v3500_v3, %s4987_s13  ;;  %v4112_v3 = vld [vmem:[%s7387_s4 + $0x38] sm:$0xff]  ;;  %4431 = vmatpush.msra.mxu2 %v4113_v47 }
 0x5a5   : > { %v3366_v38 = vpop.permute.xlu0 %3365  ;;  %v3233_v55 = vpop.permute.xlu1 %3232  ;;  %4816 = vmatpush.msra.mxu3 %v4113_v47  ;;  %v3518_v47 = vld [vmem:[#allocation2 + $0x1c7] sm:$0xff] }
 0x5a6   : > { %3462 = vst.msk [vmem:[#allocation3] sm:$0xff] %vm3461_vm3, %v3366_v38  ;;  %v3376_v14 = vpop.permute.xlu2 %3375  ;;  %v4111_v38 = vld [vmem:[%s7387_s4 + $0x30] sm:$0xff]  ;;  %4432 = vmatpush.msra.mxu2 %v4112_v3 }
 0x5a7   : > { %3299 = vst.msk [vmem:[#allocation3 + $0xf0] sm:$0xff] %vm3268_vm13, %v3233_v55  ;;  %v3699_v55 = vld [vmem:[#allocation2 + $0x108] sm:$0xff]  ;;  %4817 = vmatpush.msra.mxu3 %v4112_v3 }
 0x5a8   : > { %3467 = vst.msk [vmem:[#allocation3 + $0x28] sm:$0xff] %vm3461_vm3, %v3376_v14  ;;  %v3698_v14 = vld [vmem:[#allocation2 + $0xf0] sm:$0xff]  ;;  %4433 = vmatpush.msra.mxu2 %v4111_v38  ;;  %v3705_v3 = vld [vmem:[#allocation2 + $0x168] sm:$0xff] }
 0x5a9   : > { %4818 = vmatpush.msra.mxu3 %v4111_v38  ;;  %v3710_v38 = vld [vmem:[#allocation2 + $0x1b0] sm:$0xff] }
 0x5ab   : > { %3576 = vrot.lane.b32.xlu0 %v3503_v61, %s4987_s13  ;;  %3753 = vrot.lane.b32.xlu1 %v6759_v32, %s4988_s18  ;;  %v3881_v32 = vld [vmem:[#allocation2 + $0x51] sm:$0xff]  ;;  %v3890_v61 = vld [vmem:[#allocation2 + $0xe9] sm:$0xff] }
 0x5ac   : > { %3944 = vrot.lane.b32.xlu2 %v3880_v35, %s4989_s20  ;;  %v4110_v35 = vld [vmem:[%s7387_s4 + $0x28] sm:$0xff] }
 0x5ad   : > { %v3372_v36 = vpop.permute.xlu0 %3371  ;;  %v3368_v26 = vpop.permute.xlu1 %3367  ;;  %4434 = vmatpush.msra.mxu2 %v4110_v35  ;;  %4819 = vmatpush.msra.mxu3 %v4110_v35  ;;  %v4900_v35 = vld [vmem:[%s5096_s16 + $0x60] sm:$0xff] }
 0x5ae   : > { %3465 = vst.msk [vmem:[#allocation3 + $0x18] sm:$0xff] %vm3461_vm3, %v3372_v36  ;;  %v3382_v9 = vpop.permute.xlu2 %3381 }
 0x5af   : > { %3463 = vst.msk [vmem:[#allocation3 + $0x8] sm:$0xff] %vm3461_vm3, %v3368_v26 }
 0x5b0   : > { %3470 = vst.msk [vmem:[#allocation3 + $0x40] sm:$0xff] %vm3461_vm3, %v3382_v9 }
 0x5b3   : > { %3757 = vrot.lane.b32.xlu0 %v6757_v41, %s4988_s18  ;;  %3755 = vrot.lane.b32.xlu1 %v6777_v46, %s4988_s18  ;;  %v3882_v41 = vld [vmem:[#allocation2 + $0x69] sm:$0xff] }
 0x5b4   : > { %3946 = vrot.lane.b32.xlu2 %v3881_v32, %s4989_s20  ;;  %v4891_v32 = vld [vmem:[%s5096_s16 + $0x28] sm:$0xff] }
 0x5b5   : > { %v3378_v19 = vpop.permute.xlu0 %3377  ;;  %v3374_v6 = vpop.permute.xlu1 %3373  ;;  %4744 = vmatmul.msk.f32.gmra.mxu1 %vm440_vm1, %v4891_v32  ;;  %v3898_v32 = vld [vmem:[#allocation2 + $0x169] sm:$0xff] }
 0x5b6   : > { %3468 = vst.msk [vmem:[#allocation3 + $0x30] sm:$0xff] %vm3461_vm3, %v3378_v19  ;;  %v3388_v10 = vpop.permute.xlu2 %3387  ;;  %v4892_v19 = vld [vmem:[%s5096_s16 + $0xf0] sm:$0xff] }
 0x5b7   : > { %3466 = vst.msk [vmem:[#allocation3 + $0x20] sm:$0xff] %vm3461_vm3, %v3374_v6  ;;  %4769 = vmatmul.msk.f32.gmra.mxu3 %vm440_vm1, %v4892_v19  ;;  %v4109_v6 = vld [vmem:[%s7387_s4 + $0x20] sm:$0xff] }
 0x5b8   : > { %3473 = vst.msk [vmem:[#allocation3 + $0x58] sm:$0xff] %vm3461_vm3, %v3388_v10  ;;  %4435 = vmatpush.msra.mxu2 %v4109_v6  ;;  %v4108_v10 = vld [vmem:[%s7387_s4 + $0x18] sm:$0xff]  ;;  %4820 = vmatpush.msra.mxu3 %v4109_v6 }
 0x5ba   : > { %4436 = vmatpush.msra.mxu2 %v4108_v10  ;;  %4821 = vmatpush.msra.mxu3 %v4108_v10 }
 0x5bb   : > { %3759 = vrot.lane.b32.xlu0 %v6771_v37, %s4988_s18  ;;  %3950 = vrot.lane.b32.xlu1 %v3883_v59, %s4989_s20  ;;  %v3504_v37 = vld [vmem:[#allocation2 + $0xe7] sm:$0xff]  ;;  %v3700_v59 = vld [vmem:[#allocation2 + $0x110] sm:$0xff] }
 0x5bc   : > { %3948 = vrot.lane.b32.xlu2 %v3882_v41, %s4989_s20  ;;  %v3892_v41 = vld [vmem:[#allocation2 + $0x109] sm:$0xff] }
 0x5bd   : > { %v3384_v46 = vpop.permute.xlu0 %3383  ;;  %v3380_v27 = vpop.permute.xlu1 %3379 }
 0x5be   : > { %3471 = vst.msk [vmem:[#allocation3 + $0x48] sm:$0xff] %vm3461_vm3, %v3384_v46  ;;  %v3394_v24 = vpop.permute.xlu2 %3393  ;;  %v3891_v46 = vld [vmem:[#allocation2 + $0xf1] sm:$0xff] }
 0x5bf   : > { %3469 = vst.msk [vmem:[#allocation3 + $0x38] sm:$0xff] %vm3461_vm3, %v3380_v27  ;;  %v4107_v27 = vld [vmem:[%s7387_s4 + $0x10] sm:$0xff] }
 0x5c0   : > { %3476 = vst.msk [vmem:[#allocation3 + $0x70] sm:$0xff] %vm3461_vm3, %v3394_v24  ;;  %4437 = vmatpush.msra.mxu2 %v4107_v27  ;;  %4822 = vmatpush.msra.mxu3 %v4107_v27  ;;  %v3899_v27 = vld [vmem:[#allocation2 + $0x171] sm:$0xff] }
 0x5c3   : > { %3761 = vrot.lane.b32.xlu0 %v6790_v33, %s4988_s18  ;;  %3952 = vrot.lane.b32.xlu1 %v3884_v12, %s4989_s20  ;;  %v3505_v33 = vld [vmem:[#allocation2 + $0xef] sm:$0xff] }
 0x5c4   : > { %3578 = vrot.lane.b32.xlu2 %v3504_v37, %s4987_s13  ;;  %v4106_v37 = vld [vmem:[%s7387_s4 + $0x8] sm:$0xff] }
 0x5c5   : > { %v3390_v8 = vpop.permute.xlu0 %3389  ;;  %v3386_v23 = vpop.permute.xlu1 %3385  ;;  %4438 = vmatpush.msra.mxu2 %v4106_v37  ;;  %4823 = vmatpush.msra.mxu3 %v4106_v37 }
 0x5c6   : > { %3474 = vst.msk [vmem:[#allocation3 + $0x60] sm:$0xff] %vm3461_vm3, %v3390_v8  ;;  %v3400_v25 = vpop.permute.xlu2 %3399 }
 0x5c7   : > { %3472 = vst.msk [vmem:[#allocation3 + $0x50] sm:$0xff] %vm3461_vm3, %v3386_v23  ;;  %v4893_v23 = vld [vmem:[%s5096_s16 + $0x30] sm:$0xff] }
 0x5c8   : > { %3479 = vst.msk [vmem:[#allocation3 + $0x88] sm:$0xff] %vm3461_vm3, %v3400_v25  ;;  %4745 = vmatmul.msk.f32.gmra.mxu1 %vm440_vm1, %v4893_v23  ;;  %v4894_v25 = vld [vmem:[%s5096_s16 + $0xf8] sm:$0xff] }
 0x5c9   : > { %4770 = vmatmul.msk.f32.gmra.mxu3 %vm440_vm1, %v4894_v25  ;;  %v4902_v25 = vld [vmem:[%s5096_s16 + $0x70] sm:$0xff] }
 0x5cb   : > { %3956 = vrot.lane.b32.xlu0 %v3886_v57, %s4989_s20  ;;  %3954 = vrot.lane.b32.xlu1 %v3885_v13, %s4989_s20  ;;  %v4105_v57 = vld [vmem:[%s7387_s4] sm:$0xff]  ;;  %v3701_v13 = vld [vmem:[#allocation2 + $0x128] sm:$0xff] }
 0x5cc   : > { %3580 = vrot.lane.b32.xlu2 %v3505_v33, %s4987_s13  ;;  %v3893_v33 = vld [vmem:[#allocation2 + $0x111] sm:$0xff]  ;;  %4439 = vmatpush.msra.mxu2 %v4105_v57 }
 0x5cd   : > { %v3396_v31 = vpop.permute.xlu0 %3395  ;;  %v3392_v7 = vpop.permute.xlu1 %3391  ;;  %4824 = vmatpush.msra.mxu3 %v4105_v57  ;;  %v3707_v57 = vld [vmem:[#allocation2 + $0x188] sm:$0xff] }
 0x5ce   : > { %3477 = vst.msk [vmem:[#allocation3 + $0x78] sm:$0xff] %vm3461_vm3, %v3396_v31  ;;  %v3406_v54 = vpop.permute.xlu2 %3405 }
 0x5cf   : > { %3475 = vst.msk [vmem:[#allocation3 + $0x68] sm:$0xff] %vm3461_vm3, %v3392_v7 }
 0x5d0   : > { %3482 = vst.msk [vmem:[#allocation3 + $0xa0] sm:$0xff] %vm3461_vm3, %v3406_v54  ;;  %4746 = vmatmul.msk.f32.gmra.mxu1 %vm440_vm1, %v4895_v62  ;;  %v4903_v62 = vld [vmem:[%s5096_s16 + $0x78] sm:$0xff] }
 0x5d3   : > { %3958 = vrot.lane.b32.xlu0 %v3887_v5, %s4989_s20  ;;  %3582 = vrot.lane.b32.xlu1 %v3506_v56, %s4987_s13  ;;  %v3894_v5 = vld [vmem:[#allocation2 + $0x129] sm:$0xff] }
 0x5d4   : > { %3763 = vrot.lane.b32.xlu2 %v6769_v0, %s4988_s18  ;;  %v3511_v56 = vld [vmem:[#allocation2 + $0x14f] sm:$0xff] }
 0x5d5   : > { %v3402_v15 = vpop.permute.xlu0 %3401  ;;  %v3398_v49 = vpop.permute.xlu1 %3397 }
 0x5d6   : > { %3480 = vst.msk [vmem:[#allocation3 + $0x90] sm:$0xff] %vm3461_vm3, %v3402_v15  ;;  %v3412_v63 = vpop.permute.xlu2 %3411 }
 0x5d7   : > { %3478 = vst.msk [vmem:[#allocation3 + $0x80] sm:$0xff] %vm3461_vm3, %v3398_v49 }
 0x5d8   : > { %3485 = vst.msk [vmem:[#allocation3 + $0xb8] sm:$0xff] %vm3461_vm3, %v3412_v63  ;;  %4747 = vmatmul.msk.f32.gmra.mxu1 %vm440_vm1, %v4896_v30  ;;  %v4904_v30 = vld [vmem:[%s5096_s16 + $0x80] sm:$0xff] }
 0x5db   : > { %3960 = vrot.lane.b32.xlu0 %v3888_v20, %s4989_s20  ;;  %3584 = vrot.lane.b32.xlu1 %v3507_v11, %s4987_s13  ;;  %v3512_v20 = vld [vmem:[#allocation2 + $0x167] sm:$0xff]  ;;  %v3702_v11 = vld [vmem:[#allocation2 + $0x130] sm:$0xff] }
 0x5dc   : > { %3765 = vrot.lane.b32.xlu2 %v6784_v18, %s4988_s18 }
 0x5dd   : > { %v3408_v0 = vpop.permute.xlu0 %3407  ;;  %v3404_v51 = vpop.permute.xlu1 %3403 }
 0x5de   : > { %3483 = vst.msk [vmem:[#allocation3 + $0xa8] sm:$0xff] %vm3461_vm3, %v3408_v0  ;;  %v3418_v29 = vpop.permute.xlu2 %3417 }
 0x5df   : > { %3481 = vst.msk [vmem:[#allocation3 + $0x98] sm:$0xff] %vm3461_vm3, %v3404_v51 }
 0x5e0   : > { %3488 = vst.msk [vmem:[#allocation3 + $0xd0] sm:$0xff] %vm3461_vm3, %v3418_v29  ;;  %4748 = vmatmul.msk.f32.gmra.mxu1 %vm440_vm1, %v4897_v40 }
 0x5e3   : > { %3586 = vrot.lane.b32.xlu0 %v3508_v48, %s4987_s13  ;;  %3769 = vrot.lane.b32.xlu1 %v3696_v34, %s4988_s18  ;;  %v3513_v48 = vld [vmem:[#allocation2 + $0x16f] sm:$0xff] }
 0x5e4   : > { %3767 = vrot.lane.b32.xlu2 %v6801_v1, %s4988_s18  ;;  %v3889_v1 = vld [vmem:[#allocation2 + $0xd1] sm:$0xff]  ;;  %v3703_v34 = vld [vmem:[#allocation2 + $0x148] sm:$0xff] }
 0x5e5   : > { %v3414_v18 = vpop.permute.xlu0 %3413  ;;  %v3410_v4 = vpop.permute.xlu1 %3409 }
 0x5e6   : > { %3486 = vst.msk [vmem:[#allocation3 + $0xc0] sm:$0xff] %vm3461_vm3, %v3414_v18  ;;  %v3424_v21 = vpop.permute.xlu2 %3423 }
 0x5e7   : > { %3484 = vst.msk [vmem:[#allocation3 + $0xb0] sm:$0xff] %vm3461_vm3, %v3410_v4 }
 0x5e8   : > { %3491 = vst.msk [vmem:[#allocation3 + $0xe8] sm:$0xff] %vm3461_vm3, %v3424_v21  ;;  %4749 = vmatmul.msk.f32.gmra.mxu1 %vm440_vm1, %v4898_v42 }
 0x5eb   : > { %3588 = vrot.lane.b32.xlu0 %v3509_v22, %s4987_s13  ;;  %3771 = vrot.lane.b32.xlu1 %v3697_v45, %s4988_s18  ;;  %v3903_v22 = vld [vmem:[#allocation2 + $0x1b1] sm:$0xff] }
 0x5ec   : > { %3962 = vrot.lane.b32.xlu2 %v3889_v1, %s4989_s20  ;;  %v3517_v45 = vld [vmem:[#allocation2 + $0x1af] sm:$0xff] }
 0x5ed   : > { %v3420_v53 = vpop.permute.xlu0 %3419  ;;  %v3416_v17 = vpop.permute.xlu1 %3415  ;;  %v3704_v1 = vld [vmem:[#allocation2 + $0x150] sm:$0xff] }
 0x5ee   : > { %3489 = vst.msk [vmem:[#allocation3 + $0xd8] sm:$0xff] %vm3461_vm3, %v3420_v53  ;;  %v3559_v43 = vpop.permute.xlu2 %3558 }
 0x5ef   : > { %3487 = vst.msk [vmem:[#allocation3 + $0xc8] sm:$0xff] %vm3461_vm3, %v3416_v17 }
 0x5f0   : > { %3655 = vst.msk [vmem:[#allocation3] sm:$0xff] %vm3654_vm14, %v3559_v43  ;;  %4750 = vmatmul.msk.f32.gmra.mxu1 %vm440_vm1, %v4899_v52 }
 0x5f3   : > { %3775 = vrot.lane.b32.xlu0 %v3699_v55, %s4988_s18  ;;  %3773 = vrot.lane.b32.xlu1 %v3698_v14, %s4988_s18 }
 0x5f4   : > { %3964 = vrot.lane.b32.xlu2 %v3890_v61, %s4989_s20 }
 0x5f5   : > { %v3426_v36 = vpop.permute.xlu0 %3425  ;;  %v3422_v26 = vpop.permute.xlu1 %3421 }
 0x5f6   : > { %3492 = vst.msk [vmem:[#allocation3 + $0xf0] sm:$0xff] %vm3461_vm3, %v3426_v36  ;;  %v3565_v9 = vpop.permute.xlu2 %3564 }
 0x5f7   : > { %3490 = vst.msk [vmem:[#allocation3 + $0xe0] sm:$0xff] %vm3461_vm3, %v3422_v26  ;;  %v3706_v26 = vld [vmem:[#allocation2 + $0x170] sm:$0xff] }
 0x5f8   : > { %3658 = vst.msk [vmem:[#allocation3 + $0x18] sm:$0xff] %vm3654_vm14, %v3565_v9  ;;  %4751 = vmatmul.msk.f32.gmra.mxu1 %vm440_vm1, %v4900_v35  ;;  %v3711_v9 = vld [vmem:[#allocation2 + $0x1c8] sm:$0xff] }
 0x5fb   : > { %3777 = vrot.lane.b32.xlu0 %v3700_v59, %s4988_s18  ;;  %3968 = vrot.lane.b32.xlu1 %v3892_v41, %s4989_s20  ;;  %v4901_v41 = vld [vmem:[%s5096_s16 + $0x68] sm:$0xff] }
 0x5fc   : > { %3966 = vrot.lane.b32.xlu2 %v3891_v46, %s4989_s20  ;;  %v3712_v46 = vld [vmem:[#allocation2 + $0x1d0] sm:$0xff] }
 0x5fd   : > { %v3561_v24 = vpop.permute.xlu0 %3560  ;;  %v3428_v12 = vpop.permute.xlu1 %3427 }
 0x5fe   : > { %3656 = vst.msk [vmem:[#allocation3 + $0x8] sm:$0xff] %vm3654_vm14, %v3561_v24  ;;  %v3571_v8 = vpop.permute.xlu2 %3570  ;;  %v3904_v24 = vld [vmem:[#allocation2 + $0x1c9] sm:$0xff] }
 0x5ff   : > { %3493 = vst.msk [vmem:[#allocation3 + $0xf8] sm:$0xff] %vm3461_vm3, %v3428_v12 }
 0x600   : > { %3661 = vst.msk [vmem:[#allocation3 + $0x30] sm:$0xff] %vm3654_vm14, %v3571_v8  ;;  %4752 = vmatmul.msk.f32.gmra.mxu1 %vm440_vm1, %v4901_v41  ;;  %v4909_v41 = vld [vmem:[%s5096_s16 + $0xa8] sm:$0xff] }
 0x603   : > { %3779 = vrot.lane.b32.xlu0 %v3701_v13, %s4988_s18  ;;  %3970 = vrot.lane.b32.xlu1 %v3893_v33, %s4989_s20  ;;  %v3905_v13 = vld [vmem:[#allocation2 + $0x1d1] sm:$0xff] }
 0x604   : > { %3590 = vrot.lane.b32.xlu2 %v3510_v39, %s4987_s13  ;;  %v3519_v33 = vld [vmem:[#allocation2 + $0x1cf] sm:$0xff] }
 0x605   : > { %v3567_v31 = vpop.permute.xlu0 %3566  ;;  %v3563_v7 = vpop.permute.xlu1 %3562 }
 0x606   : > { %3659 = vst.msk [vmem:[#allocation3 + $0x20] sm:$0xff] %vm3654_vm14, %v3567_v31  ;;  %v3945_v54 = vpop.permute.xlu2 %3944 }
 0x607   : > { %3657 = vst.msk [vmem:[#allocation3 + $0x10] sm:$0xff] %vm3654_vm14, %v3563_v7 }
 0x608   : > { %4753 = vmatmul.msk.f32.gmra.mxu1 %vm440_vm1, %v4902_v25 }
 0x60b   : > { %3974 = vrot.lane.b32.xlu0 %v3895_v2, %s4989_s20  ;;  %3972 = vrot.lane.b32.xlu1 %v3894_v5, %s4989_s20  ;;  %v3713_v2 = vld [vmem:[#allocation2 + $0x1e8] sm:$0xff] }
 0x60c   : > { %3592 = vrot.lane.b32.xlu2 %v3511_v56, %s4987_s13  ;;  %v3900_v5 = vld [vmem:[#allocation2 + $0x189] sm:$0xff] }
 0x60d   : > { %v3573_v15 = vpop.permute.xlu0 %3572  ;;  %v3569_v49 = vpop.permute.xlu1 %3568  ;;  %v3514_v56 = vld [vmem:[#allocation2 + $0x187] sm:$0xff] }
 0x60e   : > { %3662 = vst.msk [vmem:[#allocation3 + $0x38] sm:$0xff] %vm3654_vm14, %v3573_v15  ;;  %v3947_v63 = vpop.permute.xlu2 %3946 }
 0x60f   : > { %3660 = vst.msk [vmem:[#allocation3 + $0x28] sm:$0xff] %vm3654_vm14, %v3569_v49 }
 0x610   : > { %4754 = vmatmul.msk.f32.gmra.mxu1 %vm440_vm1, %v4903_v62 }
 0x613   : > { %3976 = vrot.lane.b32.xlu0 %v3896_v44, %s4989_s20  ;;  %3594 = vrot.lane.b32.xlu1 %v3512_v20, %s4987_s13  ;;  %v3708_v20 = vld [vmem:[#allocation2 + $0x190] sm:$0xff] }
 0x614   : > { %3781 = vrot.lane.b32.xlu2 %v3702_v11, %s4988_s18  ;;  %v3906_v11 = vld [vmem:[#allocation2 + $0x1e9] sm:$0xff] }
 0x615   : > { %v3575_v0 = vpop.permute.xlu0 %3574  ;;  %v3752_v51 = vpop.permute.xlu1 %3751 }
 0x616   : > { %3663 = vst.msk [vmem:[#allocation3 + $0x40] sm:$0xff] %vm3654_vm14, %v3575_v0  ;;  %v3949_v29 = vpop.permute.xlu2 %3948  ;;  %v3520_v0 = vld [vmem:[#allocation2 + $0x1e7] sm:$0xff] }
 0x617   : > { %3848 = vst.msk [vmem:[#allocation3] sm:$0xff] %vm3847_vm4, %v3752_v51 }
 0x618   : > { %4041 = vst.msk [vmem:[#allocation3] sm:$0xff] %vm4040_vm15, %v3945_v54  ;;  %4755 = vmatmul.msk.f32.gmra.mxu1 %vm440_vm1, %v4904_v30 }
 0x61b   : > { %3978 = vrot.lane.b32.xlu0 %v3897_v50, %s4989_s20  ;;  %3596 = vrot.lane.b32.xlu1 %v3513_v48, %s4987_s13  ;;  %v4905_v50 = vld [vmem:[%s5096_s16 + $0x88] sm:$0xff] }
 0x61c   : > { %3783 = vrot.lane.b32.xlu2 %v3703_v34, %s4988_s18  ;;  %v3714_v34 = vld [vmem:[#allocation2 + $0x1f0] sm:$0xff] }
 0x61d   : > { %v3577_v18 = vpop.permute.xlu0 %3576  ;;  %v3754_v4 = vpop.permute.xlu1 %3753 }
 0x61e   : > { %3664 = vst.msk [vmem:[#allocation3 + $0x48] sm:$0xff] %vm3654_vm14, %v3577_v18  ;;  %v3579_v21 = vpop.permute.xlu2 %3578  ;;  %v3901_v18 = vld [vmem:[#allocation2 + $0x191] sm:$0xff] }
 0x61f   : > { %3849 = vst.msk [vmem:[#allocation3 + $0x8] sm:$0xff] %vm3847_vm4, %v3754_v4  ;;  %v4073_v58 = vld [vmem:[#allocation3] sm:$0xff]  ;;  %v3515_v4 = vld [vmem:[#allocation2 + $0x18f] sm:$0xff] }
 0x620   : > { %4042 = vst.msk [vmem:[#allocation3 + $0x8] sm:$0xff] %vm4040_vm15, %v3947_v63  ;;  %4771 = vmatmul.msk.f32.vlgmr.msra.gmra.mxu2 %vm4327_vm5, %v4073_v58  ;;  %4756 = vmatmul.msk.f32.gmra.mxu1 %vm440_vm1, %v4905_v50 }
 0x621   : > { %3665 = vst.msk [vmem:[#allocation3 + $0x50] sm:$0xff] %vm3654_vm14, %v3579_v21 }
 0x623   : > { %3990 = vrot.lane.b32.xlu0 %v3903_v22, %s4989_s20  ;;  %3604 = vrot.lane.b32.xlu1 %v3517_v45, %s4987_s13  ;;  %v4906_v22 = vld [vmem:[%s5096_s16 + $0x90] sm:$0xff] }
 0x624   : > { %3785 = vrot.lane.b32.xlu2 %v3704_v1, %s4988_s18  ;;  %v3709_v1 = vld [vmem:[#allocation2 + $0x1a8] sm:$0xff] }
 0x625   : > { %v3758_v53 = vpop.permute.xlu0 %3757  ;;  %v3756_v17 = vpop.permute.xlu1 %3755 }
 0x626   : > { %3851 = vst.msk [vmem:[#allocation3 + $0x18] sm:$0xff] %vm3847_vm4, %v3758_v53  ;;  %v3581_v43 = vpop.permute.xlu2 %3580  ;;  %v3907_v53 = vld [vmem:[#allocation2 + $0x1f1] sm:$0xff] }
 0x627   : > { %3850 = vst.msk [vmem:[#allocation3 + $0x10] sm:$0xff] %vm3847_vm4, %v3756_v17  ;;  %v4074_v60 = vld [vmem:[#allocation3 + $0x8] sm:$0xff] }
 0x628   : > { %4043 = vst.msk [vmem:[#allocation3 + $0x10] sm:$0xff] %vm4040_vm15, %v3949_v29  ;;  %4772 = vmatmul.msk.f32.gmra.mxu2 %vm4327_vm5, %v4074_v60  ;;  %4757 = vmatmul.msk.f32.gmra.mxu1 %vm440_vm1, %v4906_v22  ;;  %v3521_v17 = vld [vmem:[#allocation2 + $0x1ef] sm:$0xff] }
 0x629   : > { %3666 = vst.msk [vmem:[#allocation3 + $0x58] sm:$0xff] %vm3654_vm14, %v3581_v43 }
 0x62b   : > { %3606 = vrot.lane.b32.xlu0 %v3518_v47, %s4987_s13  ;;  %3787 = vrot.lane.b32.xlu1 %v3705_v3, %s4988_s18  ;;  %v4907_v47 = vld [vmem:[%s5096_s16 + $0x98] sm:$0xff] }
 0x62c   : > { %3797 = vrot.lane.b32.xlu2 %v3710_v38, %s4988_s18  ;;  %v3715_v38 = vld [vmem:[#allocation2 + $0x208] sm:$0xff] }
 0x62d   : > { %v3760_v55 = vpop.permute.xlu0 %3759  ;;  %v3951_v14 = vpop.permute.xlu1 %3950 }
 0x62e   : > { %3852 = vst.msk [vmem:[#allocation3 + $0x20] sm:$0xff] %vm3847_vm4, %v3760_v55  ;;  %v3764_v61 = vpop.permute.xlu2 %3763  ;;  %v3902_v55 = vld [vmem:[#allocation2 + $0x1a9] sm:$0xff] }
 0x62f   : > { %4044 = vst.msk [vmem:[#allocation3 + $0x18] sm:$0xff] %vm4040_vm15, %v3951_v14  ;;  %v4075_v36 = vld [vmem:[#allocation3 + $0x10] sm:$0xff]  ;;  %v3516_v14 = vld [vmem:[#allocation2 + $0x1a7] sm:$0xff] }
 0x630   : > { %3854 = vst.msk [vmem:[#allocation3 + $0x30] sm:$0xff] %vm3847_vm4, %v3764_v61  ;;  %4773 = vmatmul.msk.f32.gmra.mxu2 %vm4327_vm5, %v4075_v36  ;;  %4758 = vmatmul.msk.f32.gmra.mxu1 %vm440_vm1, %v4907_v47 }
 0x633   : > { %3789 = vrot.lane.b32.xlu0 %v3706_v26, %s4988_s18  ;;  %3799 = vrot.lane.b32.xlu1 %v3711_v9, %s4988_s18  ;;  %v4908_v26 = vld [vmem:[%s5096_s16 + $0xa0] sm:$0xff] }
 0x634   : > { %3980 = vrot.lane.b32.xlu2 %v3898_v32, %s4989_s20  ;;  %v3716_v32 = vld [vmem:[#allocation2 + $0x210] sm:$0xff] }
 0x635   : > { %v3762_v19 = vpop.permute.xlu0 %3761  ;;  %v3953_v6 = vpop.permute.xlu1 %3952 }
 0x636   : > { %3853 = vst.msk [vmem:[#allocation3 + $0x28] sm:$0xff] %vm3847_vm4, %v3762_v19  ;;  %v3766_v10 = vpop.permute.xlu2 %3765  ;;  %v4076_v59 = vld [vmem:[#allocation3 + $0x18] sm:$0xff]  ;;  %v3522_v19 = vld [vmem:[#allocation2 + $0x207] sm:$0xff] }
 0x637   : > { %4045 = vst.msk [vmem:[#allocation3 + $0x20] sm:$0xff] %vm4040_vm15, %v3953_v6 }
 0x638   : > { %3855 = vst.msk [vmem:[#allocation3 + $0x38] sm:$0xff] %vm3847_vm4, %v3766_v10  ;;  %4774 = vmatmul.msk.f32.gmra.mxu2 %vm4327_vm5, %v4076_v59  ;;  %4759 = vmatmul.msk.f32.gmra.mxu1 %vm440_vm1, %v4908_v26 }
 0x63b   : > { %3801 = vrot.lane.b32.xlu0 %v3712_v46, %s4988_s18  ;;  %3982 = vrot.lane.b32.xlu1 %v3899_v27, %s4989_s20  ;;  %v3523_v27 = vld [vmem:[#allocation2 + $0x20f] sm:$0xff] }
 0x63c   : > { %3992 = vrot.lane.b32.xlu2 %v3904_v24, %s4989_s20  ;;  %v7251_v24 = vpop.f32.mrf.mxu1 }
 0x63d   : > { %v3957_v12 = vpop.permute.xlu0 %3956  ;;  %v3955_v37 = vpop.permute.xlu1 %3954 }
 0x63e   : > { %4047 = vst.msk [vmem:[#allocation3 + $0x30] sm:$0xff] %vm4040_vm15, %v3957_v12  ;;  %v3768_v8 = vpop.permute.xlu2 %3767  ;;  %v4077_v23 = vld [vmem:[#allocation3 + $0x20] sm:$0xff] }
 0x63f   : > { %4046 = vst.msk [vmem:[#allocation3 + $0x28] sm:$0xff] %vm4040_vm15, %v3955_v37 }
 0x640   : > { %3856 = vst.msk [vmem:[#allocation3 + $0x40] sm:$0xff] %vm3847_vm4, %v3768_v8  ;;  %4775 = vmatmul.msk.f32.gmra.mxu2 %vm4327_vm5, %v4077_v23  ;;  %4760 = vmatmul.msk.f32.gmra.mxu1 %vm440_vm1, %v4909_v41  ;;  %v4910_v23 = vld [vmem:[%s5096_s16 + $0xb0] sm:$0xff] }
 0x643   : > { %3791 = vrot.lane.b32.xlu0 %v3707_v57, %s4988_s18  ;;  %3994 = vrot.lane.b32.xlu1 %v3905_v13, %s4989_s20  ;;  %v3718_v57 = vld [vmem:[#allocation2 + $0x230] sm:$0xff]  ;;  %v3524_v13 = vld [vmem:[#allocation2 + $0x227] sm:$0xff] }
 0x644   : > { %3608 = vrot.lane.b32.xlu2 %v3519_v33, %s4987_s13 }
 0x645   : > { %v3959_v39 = vpop.permute.xlu0 %3958  ;;  %v3583_v31 = vpop.permute.xlu1 %3582  ;;  %v4079_v44 = vld [vmem:[#allocation3 + $0x30] sm:$0xff] }
 0x646   : > { %4048 = vst.msk [vmem:[#allocation3 + $0x38] sm:$0xff] %vm4040_vm15, %v3959_v39  ;;  %v3963_v7 = vpop.permute.xlu2 %3962  ;;  %v4078_v54 = vld [vmem:[#allocation3 + $0x28] sm:$0xff] }
 0x647   : > { %3667 = vst.msk [vmem:[#allocation3 + $0x60] sm:$0xff] %vm3654_vm14, %v3583_v31  ;;  %v7263_v31 = vpop.f32.mrf.mxu1 }
 0x648   : > { %4776 = vmatmul.msk.f32.gmra.mxu2 %vm4327_vm5, %v4078_v54  ;;  %4761 = vmatmul.msk.f32.gmra.mxu1 %vm440_vm1, %v4910_v23  ;;  %v4911_v54 = vld [vmem:[%s5096_s16 + $0xb8] sm:$0xff] }
 0x64b   : > { %3803 = vrot.lane.b32.xlu0 %v3713_v2, %s4988_s18  ;;  %3984 = vrot.lane.b32.xlu1 %v3900_v5, %s4989_s20  ;;  %v3911_v2 = vld [vmem:[#allocation2 + $0x231] sm:$0xff] }
 0x64c   : > { %3598 = vrot.lane.b32.xlu2 %v3514_v56, %s4987_s13  ;;  %v3525_v5 = vld [vmem:[#allocation2 + $0x22f] sm:$0xff] }
 0x64d   : > { %v3961_v15 = vpop.permute.xlu0 %3960  ;;  %v3585_v49 = vpop.permute.xlu1 %3584  ;;  %v4080_v48 = vld [vmem:[#allocation3 + $0x38] sm:$0xff] }
 0x64e   : > { %4049 = vst.msk [vmem:[#allocation3 + $0x40] sm:$0xff] %vm4040_vm15, %v3961_v15  ;;  %v3965_v63 = vpop.permute.xlu2 %3964 }
 0x64f   : > { %3668 = vst.msk [vmem:[#allocation3 + $0x68] sm:$0xff] %vm3654_vm14, %v3585_v49 }
 0x650   : > { %4777 = vmatmul.msk.f32.gmra.mxu2 %vm4327_vm5, %v4079_v44  ;;  %4762 = vmatmul.msk.f32.gmra.mxu1 %vm440_vm1, %v4911_v54  ;;  %v7276_v44 = vpop.f32.mrf.mxu1 }
 0x653   : > { %3793 = vrot.lane.b32.xlu0 %v3708_v20, %s4988_s18  ;;  %3996 = vrot.lane.b32.xlu1 %v3906_v11, %s4989_s20 }
 0x654   : > { %3610 = vrot.lane.b32.xlu2 %v3520_v0, %s4987_s13 }
 0x655   : > { %v3587_v51 = vpop.permute.xlu0 %3586  ;;  %v3770_v29 = vpop.permute.xlu1 %3769  ;;  %v4081_v45 = vld [vmem:[#allocation3 + $0x40] sm:$0xff] }
 0x656   : > { %3669 = vst.msk [vmem:[#allocation3 + $0x70] sm:$0xff] %vm3654_vm14, %v3587_v51  ;;  %v3967_v40 = vpop.permute.xlu2 %3966 }
 0x657   : > { %3857 = vst.msk [vmem:[#allocation3 + $0x48] sm:$0xff] %vm3847_vm4, %v3770_v29 }
 0x658   : > { %4050 = vst.msk [vmem:[#allocation3 + $0x48] sm:$0xff] %vm4040_vm15, %v3963_v7  ;;  %4778 = vmatmul.msk.f32.gmra.mxu2 %vm4327_vm5, %v4080_v48  ;;  %v7283_v29 = vpop.f32.mrf.mxu1 }
 0x65b   : > { %3805 = vrot.lane.b32.xlu0 %v3714_v34, %s4988_s18  ;;  %3986 = vrot.lane.b32.xlu1 %v3901_v18, %s4989_s20 }
 0x65c   : > { %3600 = vrot.lane.b32.xlu2 %v3515_v4, %s4987_s13 }
 0x65d   : > { %v3589_v21 = vpop.permute.xlu0 %3588  ;;  %v3772_v42 = vpop.permute.xlu1 %3771 }
 0x65e   : > { %3670 = vst.msk [vmem:[#allocation3 + $0x78] sm:$0xff] %vm3654_vm14, %v3589_v21  ;;  %v3591_v58 = vpop.permute.xlu2 %3590 }
 0x65f   : > { %3858 = vst.msk [vmem:[#allocation3 + $0x50] sm:$0xff] %vm3847_vm4, %v3772_v42  ;;  %v4082_v3 = vld [vmem:[#allocation3 + $0x48] sm:$0xff] }
 0x660   : > { %4051 = vst.msk [vmem:[#allocation3 + $0x50] sm:$0xff] %vm4040_vm15, %v3965_v63  ;;  %4779 = vmatmul.msk.f32.gmra.mxu2 %vm4327_vm5, %v4081_v45  ;;  %v4912_v63 = vld [vmem:[%s5096_s16 + $0xc0] sm:$0xff]  ;;  %v7291_v21 = vpop.f32.mrf.mxu1  ;;  %s4933_s16 = scalar_lea.hbm %s7389_s6, 32 }
 0x661   : > { %3671 = vst.msk [vmem:[#allocation3 + $0x80] sm:$0xff] %vm3654_vm14, %v3591_v58  ;;  %4763 = vmatmul.msk.f32.gmra.mxu1 %vm440_vm1, %v4912_v63  ;;  %p4935_p1 = scmp.lt.s32.totalorder %s4933_s16, %s4929_s11 }
 0x663   : > { %3795 = vrot.lane.b32.xlu0 %v3709_v1, %s4988_s18  ;;  %3998 = vrot.lane.b32.xlu1 %v3907_v53, %s4989_s20  ;;  %p4936_p2 = por %p4935_p1, %p4934_p0 }
 0x664   : > { %3612 = vrot.lane.b32.xlu2 %v3521_v17, %s4987_s13 }
 0x665   : > { %v3776_v43 = vpop.permute.xlu0 %3775  ;;  %v3774_v52 = vpop.permute.xlu1 %3773  ;;  %p4937_p3 = pnand %p4936_p2, %p4932_p13 }
 0x666   : > { %3860 = vst.msk [vmem:[#allocation3 + $0x60] sm:$0xff] %vm3847_vm4, %v3776_v43  ;;  %v3593_v60 = vpop.permute.xlu2 %3592 }
 0x667   : > { %3859 = vst.msk [vmem:[#allocation3 + $0x58] sm:$0xff] %vm3847_vm4, %v3774_v52  ;;  %v4083_v9 = vld [vmem:[#allocation3 + $0x50] sm:$0xff] }
 0x668   : > { %4052 = vst.msk [vmem:[#allocation3 + $0x58] sm:$0xff] %vm4040_vm15, %v3967_v40  ;;  %4780 = vmatmul.msk.f32.gmra.mxu2 %vm4327_vm5, %v4082_v3  ;;  %v7298_v43 = vpop.f32.mrf.mxu1 }
 0x669   : > { %3672 = vst.msk [vmem:[#allocation3 + $0x88] sm:$0xff] %vm3654_vm14, %v3593_v60 }
 0x66b   : > { %3807 = vrot.lane.b32.xlu0 %v3715_v38, %s4988_s18  ;;  %3988 = vrot.lane.b32.xlu1 %v3902_v55, %s4989_s20 }
 0x66c   : > { %3602 = vrot.lane.b32.xlu2 %v3516_v14, %s4987_s13 }
 0x66d   : > { %v3778_v61 = vpop.permute.xlu0 %3777  ;;  %v3969_v35 = vpop.permute.xlu1 %3968 }
 0x66e   : > { %3861 = vst.msk [vmem:[#allocation3 + $0x68] sm:$0xff] %vm3847_vm4, %v3778_v61  ;;  %v3782_v36 = vpop.permute.xlu2 %3781 }
 0x66f   : > { %4053 = vst.msk [vmem:[#allocation3 + $0x60] sm:$0xff] %vm4040_vm15, %v3969_v35  ;;  %v4084_v46 = vld [vmem:[#allocation3 + $0x58] sm:$0xff] }
 0x670   : > { %3863 = vst.msk [vmem:[#allocation3 + $0x78] sm:$0xff] %vm3847_vm4, %v3782_v36  ;;  %4781 = vmatmul.msk.f32.gmra.mxu2 %vm4327_vm5, %v4083_v9  ;;  %v4249_v36 = vpop.f32.mrf.mxu1 }
 0x673   : > { %3809 = vrot.lane.b32.xlu0 %v3716_v32, %s4988_s18  ;;  %4000 = vrot.lane.b32.xlu1 %v6941_v16, %s4989_s20  ;;  %v3717_v16 = vld [vmem:[#allocation2 + $0x228] sm:$0xff] }
 0x674   : > { %3614 = vrot.lane.b32.xlu2 %v3522_v19, %s4987_s13 }
 0x675   : > { %v3780_v6 = vpop.permute.xlu0 %3779  ;;  %v3971_v10 = vpop.permute.xlu1 %3970 }
 0x676   : > { %3862 = vst.msk [vmem:[#allocation3 + $0x70] sm:$0xff] %vm3847_vm4, %v3780_v6  ;;  %v3784_v59 = vpop.permute.xlu2 %3783  ;;  %v4085_v25 = vld [vmem:[#allocation3 + $0x60] sm:$0xff] }
 0x677   : > { %4054 = vst.msk [vmem:[#allocation3 + $0x68] sm:$0xff] %vm4040_vm15, %v3971_v10 }
 0x678   : > { %3864 = vst.msk [vmem:[#allocation3 + $0x80] sm:$0xff] %vm3847_vm4, %v3784_v59  ;;  %4782 = vmatmul.msk.f32.gmra.mxu2 %vm4327_vm5, %v4084_v46  ;;  %v4252_v41 = vpop.f32.mrf.mxu1 }
 0x67b   : > { %4002 = vrot.lane.b32.xlu1 %v6952_v28, %s4989_s20  ;;  %3811 = vrot.lane.b32.xlu0 %v3717_v16, %s4988_s18  ;;  %v3910_v28 = vld [vmem:[#allocation2 + $0x229] sm:$0xff] }
 0x67c   : > { %3616 = vrot.lane.b32.xlu2 %v3523_v27, %s4987_s13 }
 0x67d   : > { %v3975_v12 = vpop.permute.xlu0 %3974  ;;  %v3973_v37 = vpop.permute.xlu1 %3972 }
 0x67e   : > { %4056 = vst.msk [vmem:[#allocation3 + $0x78] sm:$0xff] %vm4040_vm15, %v3975_v12  ;;  %v3786_v8 = vpop.permute.xlu2 %3785  ;;  %v4086_v62 = vld [vmem:[#allocation3 + $0x68] sm:$0xff] }
 0x67f   : > { %4055 = vst.msk [vmem:[#allocation3 + $0x70] sm:$0xff] %vm4040_vm15, %v3973_v37 }
 0x680   : > { %3865 = vst.msk [vmem:[#allocation3 + $0x88] sm:$0xff] %vm3847_vm4, %v3786_v8  ;;  %4783 = vmatmul.msk.f32.gmra.mxu2 %vm4327_vm5, %v4085_v25  ;;  %v4255_v23 = vpop.f32.mrf.mxu1 }
 0x683   : > { %4004 = vrot.lane.b32.xlu1 %v3910_v28, %s4989_s20  ;;  %3813 = vrot.lane.b32.xlu0 %v3718_v57, %s4988_s18  ;;  %s253_s18 = sand.u32 1, %s4967_s22  }
 0x684   : > { %3618 = vrot.lane.b32.xlu2 %v3524_v13, %s4987_s13  ;;  %s4614_s25 = scalar_lea.sflag [#allocation5], %s253_s18 }
 0x685   : > { %v3977_v33 = vpop.permute.xlu0 %3976  ;;  %v3595_v39 = vpop.permute.xlu1 %3594  ;;  %v4088_v51 = vld [vmem:[#allocation3 + $0x78] sm:$0xff] }
 0x686   : > { %4057 = vst.msk [vmem:[#allocation3 + $0x80] sm:$0xff] %vm4040_vm15, %v3977_v33  ;;  %v3798_v7 = vpop.permute.xlu2 %3797  ;;  %v4087_v30 = vld [vmem:[#allocation3 + $0x70] sm:$0xff] }
 0x687   : > { %3673 = vst.msk [vmem:[#allocation3 + $0x90] sm:$0xff] %vm3654_vm14, %v3595_v39 }
 0x688   : > { %4784 = vmatmul.msk.f32.gmra.mxu2 %vm4327_vm5, %v4086_v62  ;;  %v4258_v54 = vpop.f32.mrf.mxu1 }
 0x68b   : > { %4006 = vrot.lane.b32.xlu1 %v3911_v2, %s4989_s20  ;;  %s4702_s20 = sshll.u32 %s253_s18, 4 }
 0x68c   : > { %3620 = vrot.lane.b32.xlu2 %v3525_v5, %s4987_s13  ;;  %s255_s17 = scalar_lea.vmem [#allocation4], %s4702_s20 }
 0x68d   : > { %v3979_v56 = vpop.permute.xlu0 %3978  ;;  %v3597_v15 = vpop.permute.xlu1 %3596  ;;  %v4089_v34 = vld [vmem:[#allocation3 + $0x80] sm:$0xff]  ;;  %s4627_s19 = sshll.u32 %s255_s17, 4  ;;  %s4628_s19 = int_to_ptr.vmem [resolvable:$true] %s4627_s19 }
 0x68e   : > { %4058 = vst.msk [vmem:[#allocation3 + $0x88] sm:$0xff] %vm4040_vm15, %v3979_v56  ;;  %v3981_v49 = vpop.permute.xlu2 %3980 }
 0x68f   : > { %3674 = vst.msk [vmem:[#allocation3 + $0x98] sm:$0xff] %vm3654_vm14, %v3597_v15 }
 0x690   : > { %4785 = vmatmul.msk.f32.gmra.mxu2 %vm4327_vm5, %v4087_v30 }
 0x695   : > { %v3991_v20 = vpop.permute.xlu0 %3990  ;;  %v3605_v11 = vpop.permute.xlu1 %3604  ;;  %v4090_v45 = vld [vmem:[#allocation3 + $0x88] sm:$0xff] }
 0x696   : > { %3678 = vst.msk [vmem:[#allocation3 + $0xb8] sm:$0xff] %vm3654_vm14, %v3605_v11  ;;  %v3993_v0 = vpop.permute.xlu2 %3992 }
 0x697   : > { %3871 = vst.msk [vmem:[#allocation3 + $0xb8] sm:$0xff] %vm3847_vm4, %v3798_v7 }
 0x698   : > { %4064 = vst.msk [vmem:[#allocation3 + $0xb8] sm:$0xff] %vm4040_vm15, %v3991_v20  ;;  %4786 = vmatmul.msk.f32.gmra.mxu2 %vm4327_vm5, %v4088_v51 }
 0x69d   : > { %v3607_v40 = vpop.permute.xlu0 %3606  ;;  %v3788_v50 = vpop.permute.xlu1 %3787 }
 0x69e   : > { %3679 = vst.msk [vmem:[#allocation3 + $0xc0] sm:$0xff] %vm3654_vm14, %v3607_v40  ;;  %v3609_v48 = vpop.permute.xlu2 %3608 }
 0x69f   : > { %3866 = vst.msk [vmem:[#allocation3 + $0x90] sm:$0xff] %vm3847_vm4, %v3788_v50  ;;  %v4096_v18 = vld [vmem:[#allocation3 + $0xb8] sm:$0xff] }
 0x6a0   : > { %4059 = vst.msk [vmem:[#allocation3 + $0x90] sm:$0xff] %vm4040_vm15, %v3981_v49  ;;  %4787 = vmatmul.msk.f32.gmra.mxu2 %vm4327_vm5, %v4089_v34  ;;  %4794 = vmatmul.msk.f32.vlgmr.msra.gmra.mxu3 %vm4327_vm5, %v4096_v18 }
 0x6a1   : > { %3680 = vst.msk [vmem:[#allocation3 + $0xc8] sm:$0xff] %vm3654_vm14, %v3609_v48 }
 0x6a3   : > { %v4441_v4 = vpop.f32.mrf.mxu2 }
 0x6a4   : > { %v4442_v3 = vadd.f32 %v4441_v4, %v7251_v24 }
 0x6a5   : > { %v3790_v42 = vpop.permute.xlu0 %3789  ;;  %v3800_v58 = vpop.permute.xlu1 %3799 }
 0x6a6   : > { %3867 = vst.msk [vmem:[#allocation3 + $0x98] sm:$0xff] %vm3847_vm4, %v3790_v42  ;;  %v3599_v22 = vpop.permute.xlu2 %3598 }
 0x6a7   : > { %3872 = vst.msk [vmem:[#allocation3 + $0xc0] sm:$0xff] %vm3847_vm4, %v3800_v58  ;;  %v4091_v60 = vld [vmem:[#allocation3 + $0x90] sm:$0xff] }
 0x6a8   : > { %4065 = vst.msk [vmem:[#allocation3 + $0xc0] sm:$0xff] %vm4040_vm15, %v3993_v0  ;;  %4788 = vmatmul.msk.f32.gmra.mxu2 %vm4327_vm5, %v4090_v45 }
 0x6a9   : > { %3675 = vst.msk [vmem:[#allocation3 + $0xa0] sm:$0xff] %vm3654_vm14, %v3599_v22 }
 0x6ab   : > { %v4444_v1 = vpop.f32.mrf.mxu2 }
 0x6ac   : > { %v4445_v26 = vadd.f32 %v4444_v1, %v7263_v31 }
 0x6ad   : > { %v3802_v53 = vpop.permute.xlu0 %3801  ;;  %v3983_v17 = vpop.permute.xlu1 %3982 }
 0x6ae   : > { %3873 = vst.msk [vmem:[#allocation3 + $0xc8] sm:$0xff] %vm3847_vm4, %v3802_v53  ;;  %v3611_v52 = vpop.permute.xlu2 %3610 }
 0x6af   : > { %4060 = vst.msk [vmem:[#allocation3 + $0x98] sm:$0xff] %vm4040_vm15, %v3983_v17  ;;  %v4097_v47 = vld [vmem:[#allocation3 + $0xc0] sm:$0xff] }
 0x6b0   : > { %3681 = vst.msk [vmem:[#allocation3 + $0xd0] sm:$0xff] %vm3654_vm14, %v3611_v52  ;;  %4789 = vmatmul.msk.f32.gmra.mxu2 %vm4327_vm5, %v4091_v60  ;;  %4795 = vmatmul.msk.f32.gmra.mxu3 %vm4327_vm5, %v4097_v47 }
 0x6b2   : > { %4537 = vxpose.xlu2.b32.start [1/16] (narrow) %v4442_v3, 8 }
 0x6b3   : > { %v4447_v38 = vpop.f32.mrf.mxu2 }
 0x6b4   : > { %v4448_v59 = vadd.f32 %v4447_v38, %v7276_v44  ;;  %v4261_v44 = vpop.f32.mrf.mxu1 }
 0x6b5   : > { %v3792_v55 = vpop.permute.xlu0 %3791  ;;  %v3995_v14 = vpop.permute.xlu1 %3994 }
 0x6b6   : > { %3868 = vst.msk [vmem:[#allocation3 + $0xa0] sm:$0xff] %vm3847_vm4, %v3792_v55  ;;  %v3601_v61 = vpop.permute.xlu2 %3600  ;;  %v4092_v35 = vld [vmem:[#allocation3 + $0x98] sm:$0xff] }
 0x6b7   : > { %4066 = vst.msk [vmem:[#allocation3 + $0xc8] sm:$0xff] %vm4040_vm15, %v3995_v14 }
 0x6b8   : > { %3676 = vst.msk [vmem:[#allocation3 + $0xa8] sm:$0xff] %vm3654_vm14, %v3601_v61  ;;  %4790 = vmatmul.msk.f32.gmra.mxu2 %vm4327_vm5, %v4092_v35 }
 0x6ba   : > { %4538 = vxpose.xlu2.b32.cont [2/16] (narrow) %v4445_v26, 8 }
 0x6bb   : > { %v4450_v9 = vpop.f32.mrf.mxu2 }
 0x6bc   : > { %v4451_v37 = vadd.f32 %v4450_v9, %v7283_v29  ;;  %v4264_v48 = vpop.f32.mrf.mxu1 }
 0x6bd   : > { %v3804_v32 = vpop.permute.xlu0 %3803  ;;  %v3985_v19 = vpop.permute.xlu1 %3984 }
 0x6be   : > { %3874 = vst.msk [vmem:[#allocation3 + $0xd0] sm:$0xff] %vm3847_vm4, %v3804_v32  ;;  %v3613_v6 = vpop.permute.xlu2 %3612  ;;  %v4098_v10 = vld [vmem:[#allocation3 + $0xc8] sm:$0xff] }
 0x6bf   : > { %4061 = vst.msk [vmem:[#allocation3 + $0xa0] sm:$0xff] %vm4040_vm15, %v3985_v19  ;;  %4796 = vmatmul.msk.f32.gmra.mxu3 %vm4327_vm5, %v4098_v10 }
 0x6c0   : > { %3682 = vst.msk [vmem:[#allocation3 + $0xd8] sm:$0xff] %vm3654_vm14, %v3613_v6 }
 0x6c2   : > { %4539 = vxpose.xlu2.b32.cont [3/16] (narrow) %v4448_v59, 8 }
 0x6c3   : > { %v4453_v46 = vpop.f32.mrf.mxu2 }
 0x6c4   : > { %v4454_v33 = vadd.f32 %v4453_v46, %v7291_v21  ;;  %v4267_v22 = vpop.f32.mrf.mxu1 }
 0x6c5   : > { %v3794_v16 = vpop.permute.xlu0 %3793  ;;  %v3997_v27 = vpop.permute.xlu1 %3996 }
 0x6c6   : > { %3869 = vst.msk [vmem:[#allocation3 + $0xa8] sm:$0xff] %vm3847_vm4, %v3794_v16  ;;  %v3603_v24 = vpop.permute.xlu2 %3602  ;;  %v4093_v12 = vld [vmem:[#allocation3 + $0xa0] sm:$0xff] }
 0x6c7   : > { %4067 = vst.msk [vmem:[#allocation3 + $0xd0] sm:$0xff] %vm4040_vm15, %v3997_v27  ;;  %4791 = vmatmul.msk.f32.gmra.mxu2 %vm4327_vm5, %v4093_v12 }
 0x6c8   : > { %3677 = vst.msk [vmem:[#allocation3 + $0xb0] sm:$0xff] %vm3654_vm14, %v3603_v24 }
 0x6ca   : > { %4540 = vxpose.xlu2.b32.cont [4/16] (narrow) %v4451_v37, 8 }
 0x6cb   : > { %v4456_v8 = vpop.f32.mrf.mxu2 }
 0x6cc   : > { %v4457_v5 = vadd.f32 %v4456_v8, %v7298_v43  ;;  %v4270_v47 = vpop.f32.mrf.mxu1 }
 0x6cd   : > { %v3806_v25 = vpop.permute.xlu0 %3805  ;;  %v3987_v28 = vpop.permute.xlu1 %3986 }
 0x6ce   : > { %3875 = vst.msk [vmem:[#allocation3 + $0xd8] sm:$0xff] %vm3847_vm4, %v3806_v25  ;;  %v3615_v57 = vpop.permute.xlu2 %3614  ;;  %v4099_v13 = vld [vmem:[#allocation3 + $0xd0] sm:$0xff] }
 0x6cf   : > { %4062 = vst.msk [vmem:[#allocation3 + $0xa8] sm:$0xff] %vm4040_vm15, %v3987_v28  ;;  %4797 = vmatmul.msk.f32.gmra.mxu3 %vm4327_vm5, %v4099_v13 }
 0x6d0   : > { %3683 = vst.msk [vmem:[#allocation3 + $0xe0] sm:$0xff] %vm3654_vm14, %v3615_v57 }
 0x6d2   : > { %4541 = vxpose.xlu2.b32.cont [5/16] (narrow) %v4454_v33, 8 }
 0x6d3   : > { %v4459_v39 = vpop.f32.mrf.mxu2 }
 0x6d4   : > { %v4460_v20 = vadd.f32 %v4459_v39, %v4249_v36  ;;  %v4273_v61 = vpop.f32.mrf.mxu1 }
 0x6d5   : > { %v3796_v31 = vpop.permute.xlu0 %3795  ;;  %v3999_v7 = vpop.permute.xlu1 %3998 }
 0x6d6   : > { %3870 = vst.msk [vmem:[#allocation3 + $0xb0] sm:$0xff] %vm3847_vm4, %v3796_v31  ;;  %v3617_v62 = vpop.permute.xlu2 %3616  ;;  %v4094_v2 = vld [vmem:[#allocation3 + $0xa8] sm:$0xff] }
 0x6d7   : > { %4068 = vst.msk [vmem:[#allocation3 + $0xd8] sm:$0xff] %vm4040_vm15, %v3999_v7  ;;  %4792 = vmatmul.msk.f32.gmra.mxu2 %vm4327_vm5, %v4094_v2 }
 0x6d8   : > { %3684 = vst.msk [vmem:[#allocation3 + $0xe8] sm:$0xff] %vm3654_vm14, %v3617_v62 }
 0x6da   : > { %4542 = vxpose.xlu2.b32.cont [6/16] (narrow) %v4457_v5, 8 }
 0x6db   : > { %v4462_v56 = vpop.f32.mrf.mxu2 }
 0x6dc   : > { %v4463_v50 = vadd.f32 %v4462_v56, %v4252_v41  ;;  %v4276_v26 = vpop.f32.mrf.mxu1  ;;  %v4306_v41 = vpop.f32.mrf.mxu3 }
 0x6dd   : > { %v3808_v15 = vpop.permute.xlu0 %3807  ;;  %v3989_v49 = vpop.permute.xlu1 %3988 }
 0x6de   : > { %3876 = vst.msk [vmem:[#allocation3 + $0xe0] sm:$0xff] %vm3847_vm4, %v3808_v15  ;;  %v4100_v63 = vld [vmem:[#allocation3 + $0xd8] sm:$0xff]  ;;  %v3619_v30 = vpop.permute.xlu2 %3618 }
 0x6df   : > { %4063 = vst.msk [vmem:[#allocation3 + $0xb0] sm:$0xff] %vm4040_vm15, %v3989_v49  ;;  %4798 = vmatmul.msk.f32.gmra.mxu3 %vm4327_vm5, %v4100_v63 }
 0x6e0   : > { %3685 = vst.msk [vmem:[#allocation3 + $0xf0] sm:$0xff] %vm3654_vm14, %v3619_v30 }
 0x6e2   : > { %4543 = vxpose.xlu2.b32.cont [7/16] (narrow) %v4460_v20, 8 }
 0x6e3   : > { %v4465_v11 = vpop.f32.mrf.mxu2 }
 0x6e4   : > { %v4466_v42 = vadd.f32 %v4465_v11, %v4255_v23  ;;  %v4279_v6 = vpop.f32.mrf.mxu1  ;;  %v4309_v37 = vpop.f32.mrf.mxu3 }
 0x6e5   : > { %v3810_v0 = vpop.permute.xlu0 %3809  ;;  %v4001_v51 = vpop.permute.xlu1 %4000 }
 0x6e6   : > { %3877 = vst.msk [vmem:[#allocation3 + $0xe8] sm:$0xff] %vm3847_vm4, %v3810_v0  ;;  %v4095_v29 = vld [vmem:[#allocation3 + $0xb0] sm:$0xff]  ;;  %v3621_v40 = vpop.permute.xlu2 %3620 }
 0x6e7   : > { %4069 = vst.msk [vmem:[#allocation3 + $0xe0] sm:$0xff] %vm4040_vm15, %v4001_v51  ;;  %4793 = vmatmul.msk.f32.gmra.mxu2 %vm4327_vm5, %v4095_v29 }
 0x6e8   : > { %3686 = vst.msk [vmem:[#allocation3 + $0xf8] sm:$0xff] %vm3654_vm14, %v3621_v40 }
 0x6ea   : > { %4544 = vxpose.xlu2.b32.cont [8/16] (narrow) %v4463_v50, 8 }
 0x6eb   : > { %v4468_v34 = vpop.f32.mrf.mxu2 }
 0x6ec   : > { %v4469_v17 = vadd.f32 %v4468_v34, %v4258_v54  ;;  %v4282_v16 = vpop.f32.mrf.mxu1  ;;  %v4312_v28 = vpop.f32.mrf.mxu3  ;;  %v4990_v34 = vmov 0  }
 0x6ed   : > { %v4003_v18 = vpop.permute.xlu1 %4002  ;;  %v3812_v4 = vpop.permute.xlu0 %3811  ;;  %4878 = vset.pattern.permute.xlu1 %v4990_v34 }
 0x6ee   : > { %4070 = vst.msk [vmem:[#allocation3 + $0xe8] sm:$0xff] %vm4040_vm15, %v4003_v18  ;;  %v4101_v21 = vld [vmem:[#allocation3 + $0xe0] sm:$0xff] }
 0x6ef   : > { %4799 = vmatmul.msk.f32.gmra.mxu3 %vm4327_vm5, %v4101_v21  ;;  %3878 = vst.msk [vmem:[#allocation3 + $0xf0] sm:$0xff] %vm3847_vm4, %v3812_v4 }
 0x6f2   : > { %4545 = vxpose.xlu2.b32.cont [9/16] (narrow) %v4466_v42, 8 }
 0x6f3   : > { %v4471_v58 = vpop.f32.mrf.mxu2 }
 0x6f4   : > { %v4472_v3 = vadd.f32 %v4471_v58, %v4261_v44  ;;  %v4285_v8 = vpop.f32.mrf.mxu1  ;;  %v4315_v39 = vpop.f32.mrf.mxu3 }
 0x6f5   : > { %v4005_v45 = vpop.permute.xlu1 %4004  ;;  %v4102_v1 = vld [vmem:[#allocation3 + $0xe8] sm:$0xff]  ;;  %v3814_v53 = vpop.permute.xlu0 %3813 }
 0x6f6   : > { %4071 = vst.msk [vmem:[#allocation3 + $0xf0] sm:$0xff] %vm4040_vm15, %v4005_v45 }
 0x6f7   : > { %4800 = vmatmul.msk.f32.gmra.mxu3 %vm4327_vm5, %v4102_v1  ;;  %3879 = vst.msk [vmem:[#allocation3 + $0xf8] sm:$0xff] %vm3847_vm4, %v3814_v53 }
 0x6fa   : > { %4546 = vxpose.xlu2.b32.cont [10/16] (narrow) %v4469_v17, 8 }
 0x6fb   : > { %v4474_v43 = vpop.f32.mrf.mxu2 }
 0x6fc   : > { %v4475_v14 = vadd.f32 %v4474_v43, %v4264_v48  ;;  %v4288_v57 = vpop.f32.mrf.mxu1  ;;  %v4318_v62 = vpop.f32.mrf.mxu3  ;;  %v4601_v48 = vld [vmem:[%s7385_s2] sm:$0xff] }
 0x6fd   : > { %v4007_v52 = vpop.permute.xlu1 %4006  ;;  %v4103_v60 = vld [vmem:[#allocation3 + $0xf0] sm:$0xff]  ;;  %4604 = vperm.xlu1 %4878, %v4601_v48  }
 0x6fe   : > { %4072 = vst.msk [vmem:[#allocation3 + $0xf8] sm:$0xff] %vm4040_vm15, %v4007_v52 }
 0x6ff   : > { %4801 = vmatmul.msk.f32.gmra.mxu3 %vm4327_vm5, %v4103_v60 }
 0x702   : > { %4547 = vxpose.xlu2.b32.cont [11/16] (narrow) %v4472_v3, 8 }
 0x703   : > { %v4477_v38 = vpop.f32.mrf.mxu2 }
 0x704   : > { %v4478_v36 = vadd.f32 %v4477_v38, %v4267_v22  ;;  %v4291_v31 = vpop.f32.mrf.mxu1  ;;  %v4321_v2 = vpop.f32.mrf.mxu3 }
 0x705   : > { %v4104_v55 = vld [vmem:[#allocation3 + $0xf8] sm:$0xff] }
 0x707   : > { %4802 = vmatmul.msk.f32.gmra.mxu3 %vm4327_vm5, %v4104_v55 }
 0x70a   : > { %4548 = vxpose.xlu2.b32.cont [12/16] (narrow) %v4475_v14, 8 }
 0x70b   : > { %v4480_v35 = vpop.f32.mrf.mxu2 }
 0x70c   : > { %v4481_v32 = vadd.f32 %v4480_v35, %v4270_v47  ;;  %v4294_v5 = vpop.f32.mrf.mxu1  ;;  %v4324_v49 = vpop.f32.mrf.mxu3 }
 0x712   : > { %4549 = vxpose.xlu2.b32.cont [13/16] (narrow) %v4478_v36, 8 }
 0x713   : > { %v4483_v9 = vpop.f32.mrf.mxu2 }
 0x714   : > { %v4484_v10 = vadd.f32 %v4483_v9, %v4273_v61  ;;  %v4297_v63 = vpop.f32.mrf.mxu1 }
 0x71a   : > { %4550 = vxpose.xlu2.b32.cont [14/16] (narrow) %v4481_v32, 8 }
 0x71b   : > { %v4486_v19 = vpop.f32.mrf.mxu2 }
 0x71c   : > { %v4487_v27 = vadd.f32 %v4486_v19, %v4276_v26  ;;  %v4300_v11 = vpop.f32.mrf.mxu1 }
 0x722   : > { %4551 = vxpose.xlu2.b32.cont [15/16] (narrow) %v4484_v10, 8 }
 0x723   : > { %v4489_v59 = vpop.f32.mrf.mxu2  ;;  %v4510_v30 = vpop.f32.mrf.mxu3 }
 0x724   : > { %v4490_v46 = vadd.f32 %v4489_v59, %v4279_v6  ;;  %v4511_v51 = vadd.f32 %v4510_v30, %v4300_v11  ;;  %v4303_v29 = vpop.f32.mrf.mxu1 }
 0x726   : > { %4569 = vxpose.xlu0.b32.start [1/16] (narrow) %v4490_v46, 8 }
 0x72a   : > { %4552 = vxpose.xlu2.b32.end [16/16] (narrow) %v4487_v27, 8 }
 0x72b   : > { %v4492_v24 = vpop.f32.mrf.mxu2 }
 0x72c   : > { %v4493_v12 = vadd.f32 %v4492_v24, %v4282_v16 }
 0x72e   : > { %4570 = vxpose.xlu0.b32.cont [2/16] (narrow) %v4493_v12, 8 }
 0x733   : > { %v4495_v23 = vpop.f32.mrf.mxu2  ;;  %v4513_v0 = vpop.f32.mrf.mxu3 }
 0x734   : > { %v4496_v25 = vadd.f32 %v4495_v23, %v4285_v8  ;;  %v4514_v50 = vadd.f32 %v4513_v0, %v4303_v29 }
 0x736   : > { %4571 = vxpose.xlu0.b32.cont [3/16] (narrow) %v4496_v25, 8 }
 0x73b   : > { %v4498_v13 = vpop.f32.mrf.mxu2 }
 0x73c   : > { %v4499_v33 = vadd.f32 %v4498_v13, %v4288_v57 }
 0x73e   : > { %4572 = vxpose.xlu0.b32.cont [4/16] (narrow) %v4499_v33, 8 }
 0x742   : > { %v4516_v40 = vpop.f32.mrf.mxu3 }
 0x743   : > { %v4517_v4 = vadd.f32 %v4516_v40, %v4306_v41 }
 0x74a   : > { %v4501_v7 = vpop.f32.mrf.mxu2 }
 0x74b   : > { %v4502_v54 = vadd.f32 %v4501_v7, %v4291_v31  ;;  %v4553_v3 = vpop.trf.xlu2 }
 0x74d   : > { %4573 = vxpose.xlu0.b32.cont [5/16] (narrow) %v4502_v54, 8 }
 0x752   : > { %v4519_v18 = vpop.f32.mrf.mxu3 }
 0x753   : > { %v4520_v42 = vadd.f32 %v4519_v18, %v4309_v37 }
 0x75a   : > { %v4504_v56 = vpop.f32.mrf.mxu2 }
 0x75b   : > { %v4505_v15 = vadd.f32 %v4504_v56, %v4294_v5 }
 0x75d   : > { %4574 = vxpose.xlu0.b32.cont [6/16] (narrow) %v4505_v15, 8 }
 0x762   : > { %v4522_v21 = vpop.f32.mrf.mxu3 }
 0x763   : > { %v4523_v22 = vadd.f32 %v4522_v21, %v4312_v28 }
 0x76a   : > { %v4507_v44 = vpop.f32.mrf.mxu2 }
 0x76b   : > { %v4508_v20 = vadd.f32 %v4507_v44, %v4297_v63 }
 0x76d   : > { %4575 = vxpose.xlu0.b32.cont [7/16] (narrow) %v4508_v20, 8 }
 0x76f   : > { %v4605_v38 = vpop.permute.xlu1 %4604 }
 0x770   : > { %v4607_v14 = vadd.f32 %v4605_v38, %v4553_v3 }
 0x772   : > { %v4525_v58 = vpop.f32.mrf.mxu3  ;;  %v4609_v35 = vmul.f32 0.70710677, %v4607_v14 }
 0x773   : > { %v4526_v45 = vadd.f32 %v4525_v58, %v4315_v39 }
 0x774   : > { %4611 = vst [vmem:[%s255_s17] sm:$0xff] %v4609_v35 }
 0x775   : > { %4576 = vxpose.xlu0.b32.cont [8/16] (narrow) %v4511_v51, 8 }
 0x77a   : > { %v4528_v1 = vpop.f32.mrf.mxu3 }
 0x77b   : > { %v4529_v53 = vadd.f32 %v4528_v1, %v4318_v62 }
 0x77d   : > { %4577 = vxpose.xlu0.b32.cont [9/16] (narrow) %v4514_v50, 8 }
 0x782   : > { %v4531_v17 = vpop.f32.mrf.mxu3 }
 0x783   : > { %v4532_v43 = vadd.f32 %v4531_v17, %v4321_v2 }
 0x785   : > { %4578 = vxpose.xlu0.b32.cont [10/16] (narrow) %v4517_v4, 8 }
 0x78a   : > { %v4534_v52 = vpop.f32.mrf.mxu3 }
 0x78b   : > { %v4535_v60 = vadd.f32 %v4534_v52, %v4324_v49 }
 0x78d   : > { %4579 = vxpose.xlu0.b32.cont [11/16] (narrow) %v4520_v42, 8 }
 0x795   : > { %4580 = vxpose.xlu0.b32.cont [12/16] (narrow) %v4523_v22, 8 }
 0x79d   : > { %4581 = vxpose.xlu0.b32.cont [13/16] (narrow) %v4526_v45, 8 }
 0x7a5   : > { %4582 = vxpose.xlu0.b32.cont [14/16] (narrow) %v4529_v53, 8 }
 0x7ad   : > { %4583 = vxpose.xlu0.b32.cont [15/16] (narrow) %v4532_v43, 8 }
 0x7b5   : > { %4584 = vxpose.xlu0.b32.end [16/16] (narrow) %v4535_v60, 8 }
 0x7e1   : > { %v4585_v47 = vpop.trf.xlu0 }
 0x7e2   : > { %v4608_v55 = vadd.f32 %v4605_v38, %v4585_v47 }
 0x7e4   : > { %v4610_v61 = vmul.f32 0.70710677, %v4608_v55 }
 0x7e6   : > { %4612 = vst [vmem:[%s255_s17 + $0x8] sm:$0xff] %v4610_v61 }
 0x7e7   : > { %4940 = shalt.err (!%p4937_p3)
}
 0x7e8   : > { %4825 = dma.vmem_to_hbm [thread:$0]  (%p5064_p5), %s4628_s19, 256, %s4630_s26, %s4614_s25  }
 0x81c   : > { %4879 = vset.pattern.permute.xlu0 %v4990_v34 }
 0x81d PF: > { %p4831_p4 = scmp.ge.s32.totalorder %s4975_s24, 2  ;;  %s4641_s18 = sand.u32 1, %s4963_s21  }
 0x81e   : > { %s4642_s15 = scalar_lea.sflag [#allocation5], %s4641_s18 }
 0x81f   : > { %p4828_p7 = pnand %p4831_p4, %p5068_p6 }
 0x821   : > { %p4829_p8 = pneg %p4828_p7 }
 0x823   : > { %4958 = dma.done.wait (%p4829_p8), %s4642_s15, 256  }
 0x824   : > { %4960 = vsyncadd (%p4829_p8), %s4642_s15, 4294967040  ;;  %p16_p9 = scmp.ge.s32.totalorder %s5051_s27, 4   ;;  %s7488_s21 = smov %s4967_s22 }
 0x825   : > { %s7489_s22 = smov %s4971_s23  ;;  %s7490_s23 = smov %s5062_s30 }
 0x826   : > { %s7491_s24 = smov %s5051_s27  ;;  %18 = sbr.rel (!%p16_p9) target bundleno = 3 (0x3), region = 85 }
 0x82b   :  { %4648 = vsyncpa [#allocation5], 1 }
 0x82c   :  { %4650 = vsyncpa [#allocation5 + $0x1], 1 }

</bundles_post_ra>
